<compile_context>
chip_gen: v5e
topology: v5e:2x2
jax: 0.10.0
libtpu: 0.0.40
codegen_flags: <defaults>
</compile_context>

<pallas_src>
import functools

import jax
import jax.numpy as jnp
from jax.experimental import pallas as pl
from jax.experimental.pallas import tpu as pltpu

NUM_FEATURES = 18   # params.num_features
HIDDEN_SIZE = 4     # params.hidden_size
NUM_LAYERS = 2      # params.num_layers (fixed at 2 in this implementation)
SUBLANE = 8         # sublane tile height


# --------------------------------------------------------------------------
# Fused GRU cell helpers.
# Packed gate-column order is [n | r | z] (reordered from PyTorch's [r | z | n]
# at pack time) so the candidate (n) pre-activation sits at lane offset 0.
# --------------------------------------------------------------------------
def _gru_gates(gi, gh, h):
    """gi, gh: (rows, 3*Hout) with gate columns [n | r | z]; h: (rows, Hout)."""
    hs = h.shape[-1]
    s = jax.nn.sigmoid(gi + gh)                       # ONE EUP push covers r and z
    r = s[:, hs:2 * hs]
    z = s[:, 2 * hs:]
    n = jnp.tanh(gi[:, :hs] + r * gh[:, :hs])         # n columns at lane offset 0
    return (1.0 - z) * n + z * h


def _rank1_rows(w, rows):
    """Pre-broadcast each row of a tiny (K, N) weight to (rows, N) ONCE, outside
    the recurrence (JAX does not CSE broadcast_in_dim inside unrolled loops)."""
    return [jnp.broadcast_to(w[k:k + 1, :], (rows, w.shape[1]))
            for k in range(w.shape[0])]


def _rank1_matmul(h, w_rows):
    """(rows, K) @ (K, N) for tiny K as K VPU broadcast-multiply-adds, avoiding an
    MXU push->pop round trip that would sit on the serial recurrence critical path."""
    acc = h[:, 0:1] * w_rows[0]
    for k in range(1, len(w_rows)):
        acc = acc + h[:, k:k + 1] * w_rows[k]
    return acc


# --------------------------------------------------------------------------
# Pallas kernel
# --------------------------------------------------------------------------
def rnnae_kernel(x_ref, w_ref, out_ref, *, layout, T, B, BP, F, H):
    # x_ref : (T*BP, F)  time-major input, batch zero-padded to BP rows per step
    # w_ref : (Rtot, Cmax) packed weights; every block starts on an 8-row boundary
    # out_ref: (BP, F)   rows >= B are padding (sliced off in the wrapper)

    def wslice(name):
        r0, nr, nc = layout[name]          # r0 is a multiple of 8 -> aligned extract
        return w_ref[r0:r0 + nr, 0:nc]

    e_wih0 = wslice("e_wih0")                                   # (F, 3H)
    d_wih0 = wslice("d_wih0"); d_whh0 = wslice("d_whh0")        # (H, 3F), (F, 3F)
    d_wih1 = wslice("d_wih1"); d_whh1 = wslice("d_whh1")        # (F, 3F), (F, 3F)
    fc_w = wslice("fc_w"); fc_b = wslice("fc_b")                # (F, F),  (1, F)

    # Tiny (K=H) recurrent weights: pre-broadcast their rows once; the recurrence
    # then only does VPU mul/adds for these (no MXU round trips on the chain).
    e_whh0_r = _rank1_rows(wslice("e_whh0"), BP)                # H x (BP, 3H)
    e_wih1_r = _rank1_rows(wslice("e_wih1"), BP)
    e_whh1_r = _rank1_rows(wslice("e_whh1"), BP)

    # ---------------- Encoder: 2-layer GRU over time (batch = BP) ----------------
    # Layer-0 input projection for ALL timesteps in one hoisted MXU matmul.
    gi0_all = jnp.dot(x_ref[...], e_wih0, preferred_element_type=jnp.float32)  # (T*BP, 3H)

    h0 = jnp.zeros((BP, H), jnp.float32)
    h1 = jnp.zeros((BP, H), jnp.float32)
    for t in range(T):                                 # fully unrolled (T static)
        gi0 = gi0_all[t * BP:(t + 1) * BP, :]          # 8-row-aligned sublane slice
        h0 = _gru_gates(gi0, _rank1_matmul(h0, e_whh0_r), h0)
        gi1 = _rank1_matmul(h0, e_wih1_r)
        h1 = _gru_gates(gi1, _rank1_matmul(h1, e_whh1_r), h1)
    latent = h1                                        # (BP, H); rows >= B are zero

    # ---------------- Decoder: 2-layer GRU over the latent ----------------
    # The (B, H) latent is a 2-D tensor => PyTorch treats it as an *unbatched*
    # sequence of length B.  Only the B real rows are decoded (serially, in vregs).
    # TODO(synk): inter-layer GRU dropout (p=0.1) is a train-time op; eval semantics here.
    gi_d0_all = jnp.dot(latent, d_wih0, preferred_element_type=jnp.float32)   # (BP, 3F)

    d0 = jnp.zeros((1, F), jnp.float32)
    d1 = jnp.zeros((1, F), jnp.float32)
    rows = []
    for s in range(B):                                 # fully unrolled (B static)
        gh0 = jnp.dot(d0, d_whh0, preferred_element_type=jnp.float32)   # K=F: keep MXU
        d0 = _gru_gates(gi_d0_all[s:s + 1, :], gh0, d0)
        gi1 = jnp.dot(d0, d_wih1, preferred_element_type=jnp.float32)
        gh1 = jnp.dot(d1, d_whh1, preferred_element_type=jnp.float32)
        d1 = _gru_gates(gi1, gh1, d1)
        rows.append(d1)
    if BP > B:
        rows.append(jnp.zeros((BP - B, F), jnp.float32))
    out_rnn = jnp.concatenate(rows, axis=0)            # (BP, F), stays in vregs

    # ---------------- Final Linear: out = out_rnn @ W.T + b ----------------
    out_ref[...] = jnp.dot(out_rnn, fc_w, preferred_element_type=jnp.float32) + fc_b


# --------------------------------------------------------------------------
# Wrapper (glue: weight re-layout / packing, transpose, batch pad, pallas_call)
# --------------------------------------------------------------------------
_PACK_ORDER = ("e_wih0", "e_whh0", "e_wih1", "e_whh1",
               "d_wih0", "d_whh0", "d_wih1", "d_whh1",
               "fc_w", "fc_b")


def _fused_gate_layout(w_pt):
    """PyTorch GRU weight (3*Hout, in), gate rows [r; z; n]  ->  (in, 3*Hout) with
    gate columns reordered to [n | r | z] so each GRU cell needs only one gi and one
    gh matmul and the candidate pre-activation needs no lane realign in the kernel."""
    hout = w_pt.shape[0] // 3
    return jnp.concatenate([w_pt[2 * hout:, :], w_pt[:2 * hout, :]], axis=0).T


def _pack_weights(w):
    """Pack all params into one 2-D f32 buffer; return (buffer, static layout dict).
    Every block is padded to a multiple of 8 rows so its start row is sublane-aligned."""
    F = w["fc_w"].shape[0]
    mats = {
        "e_wih0": _fused_gate_layout(w["enc_wih0"]), "e_whh0": _fused_gate_layout(w["enc_whh0"]),
        "e_wih1": _fused_gate_layout(w["enc_wih1"]), "e_whh1": _fused_gate_layout(w["enc_whh1"]),
        "d_wih0": _fused_gate_layout(w["dec_wih0"]), "d_whh0": _fused_gate_layout(w["dec_whh0"]),
        "d_wih1": _fused_gate_layout(w["dec_wih1"]), "d_whh1": _fused_gate_layout(w["dec_whh1"]),
        "fc_w": w["fc_w"].T, "fc_b": w["fc_b"].reshape(1, F),
    }
    cmax = max(int(m.shape[1]) for m in mats.values())
    layout, blocks, r = {}, [], 0
    for name in _PACK_ORDER:
        m = mats[name].astype(jnp.float32)
        nr, nc = int(m.shape[0]), int(m.shape[1])
        nr_pad = -(-nr // SUBLANE) * SUBLANE
        layout[name] = (r, nr, nc)
        blocks.append(jnp.pad(m, ((0, nr_pad - nr), (0, cmax - nc))))
        r += nr_pad
    return jnp.concatenate(blocks, axis=0), layout


def rnnae_forward(x, w):
    B, T, F = x.shape
    H = w["enc_whh0"].shape[0] // 3
    BP = -(-B // SUBLANE) * SUBLANE            # pad batch to a full sublane tile

    # Time-major, batch zero-padded, flattened to (T*BP, F): layout plumbing so the
    # encoder layer-0 input projection is one matmul and every per-step slice is aligned.
    x_tm = jnp.transpose(x, (1, 0, 2)).astype(jnp.float32)        # (T, B, F)
    if BP > B:
        x_tm = jnp.pad(x_tm, ((0, 0), (0, BP - B), (0, 0)))       # zero rows stay zero in GRU
    x_tm = x_tm.reshape(T * BP, F)
    pack, layout = _pack_weights(w)

    kernel = functools.partial(rnnae_kernel, layout=layout, T=T, B=B, BP=BP, F=F, H=H)
    vmem = pl.BlockSpec(memory_space=pltpu.MemorySpace.VMEM)
    out = pl.pallas_call(
        kernel,
        out_shape=jax.ShapeDtypeStruct((BP, F), jnp.float32),
        in_specs=[vmem, vmem],          # 2 inputs total -> minimal DMA overhead
        out_specs=vmem,
    )(x_tm, pack)
    return out[:B]                      # drop padded batch rows


# --------------------------------------------------------------------------
# Deterministic parameter init (shapes match nn.GRU / nn.Linear in the module)
# --------------------------------------------------------------------------
def init_weights(key, num_features=NUM_FEATURES, hidden_size=HIDDEN_SIZE):
    F, H = num_features, hidden_size
    ks = jax.random.split(key, 10)
    u = lambda k, shp, b: jax.random.uniform(k, shp, jnp.float32, -b, b)
    ke = 1.0 / (H ** 0.5)     # encoder GRU: hidden_size = H
    kd = 1.0 / (F ** 0.5)     # decoder GRU / fc: hidden_size = F
    return {
        # Encoder GRU(input=F, hidden=H, layers=2, bias=False)
        "enc_wih0": u(ks[0], (3 * H, F), ke),
        "enc_whh0": u(ks[1], (3 * H, H), ke),
        "enc_wih1": u(ks[2], (3 * H, H), ke),
        "enc_whh1": u(ks[3], (3 * H, H), ke),
        # Decoder GRU(input=H, hidden=F, layers=2, bias=False)
        "dec_wih0": u(ks[4], (3 * F, H), kd),
        "dec_whh0": u(ks[5], (3 * F, F), kd),
        "dec_wih1": u(ks[6], (3 * F, F), kd),
        "dec_whh1": u(ks[7], (3 * F, F), kd),
        # fc = Linear(F, F)
        "fc_w": u(ks[8], (F, F), kd),
        "fc_b": u(ks[9], (F,), kd),
    }


# --------------------------------------------------------------------------
# Pure-JAX reference (mirrors PyTorch GRU/Linear semantics, original gate order)
# --------------------------------------------------------------------------
def _gru_cell_ref(x_t, h, wih, whh):
    hs = wih.shape[0] // 3
    gi = x_t @ wih.T
    gh = h @ whh.T
    r = jax.nn.sigmoid(gi[..., :hs] + gh[..., :hs])
    z = jax.nn.sigmoid(gi[..., hs:2 * hs] + gh[..., hs:2 * hs])
    n = jnp.tanh(gi[..., 2 * hs:] + r * gh[..., 2 * hs:])
    return (1.0 - z) * n + z * h


def rnnae_reference(x, w):
    B, T, F = x.shape
    H = w["enc_whh0"].shape[0] // 3
    h0 = jnp.zeros((B, H), jnp.float32)
    h1 = jnp.zeros((B, H), jnp.float32)
    for t in range(T):
        h0 = _gru_cell_ref(x[:, t, :], h0, w["enc_wih0"], w["enc_whh0"])
        h1 = _gru_cell_ref(h0, h1, w["enc_wih1"], w["enc_whh1"])
    latent = h1                                    # (B, H) == h_n[-1]
    d0 = jnp.zeros((1, F), jnp.float32)
    d1 = jnp.zeros((1, F), jnp.float32)
    rows = []
    for s in range(B):                             # unbatched decode over latent rows
        d0 = _gru_cell_ref(latent[s:s + 1, :], d0, w["dec_wih0"], w["dec_whh0"])
        d1 = _gru_cell_ref(d0, d1, w["dec_wih1"], w["dec_whh1"])
        rows.append(d1)
    out_rnn = jnp.concatenate(rows, axis=0)        # (B, F)
    return out_rnn @ w["fc_w"].T + w["fc_b"]


if __name__ == "__main__":
    B, T = 2, 8
    key = jax.random.PRNGKey(0)
    kx, kw = jax.random.split(key)
    x = jax.random.normal(kx, (B, T, NUM_FEATURES), jnp.float32)
    w = init_weights(kw)

    out = jax.block_until_ready(rnnae_forward(x, w))
    ref = rnnae_reference(x, w)

    assert out.shape == (B, NUM_FEATURES), out.shape
    if not jnp.allclose(out, ref, atol=1e-4, rtol=1e-4):
        raise AssertionError(f"mismatch: max abs diff {jnp.max(jnp.abs(out - ref))}")
    print("KERNEL_OK")
</pallas_src>

<mosaic_0001>
module attributes {stable_mosaic.version = 11 : i64} {
  func.func @rnnae_kernel(%arg0: memref<64x18xf32, #tpu.memory_space<vmem>>, %arg1: memref<160x54xf32, #tpu.memory_space<vmem>>, %arg2: memref<8x18xf32, #tpu.memory_space<vmem>>) attributes {dimension_semantics = [], scalar_prefetch = 0 : i64, scratch_operands = 0 : i64, tpu.core_type = #tpu.core_type<tc>} {
    %c0 = arith.constant 0 : index
    %c0_0 = arith.constant 0 : index
    %0 = vector.load %arg1[%c0, %c0_0] : memref<160x54xf32, #tpu.memory_space<vmem>>, vector<18x12xf32>
    %c48 = arith.constant 48 : index
    %c0_1 = arith.constant 0 : index
    %1 = vector.load %arg1[%c48, %c0_1] : memref<160x54xf32, #tpu.memory_space<vmem>>, vector<4x54xf32>
    %c56 = arith.constant 56 : index
    %c0_2 = arith.constant 0 : index
    %2 = vector.load %arg1[%c56, %c0_2] : memref<160x54xf32, #tpu.memory_space<vmem>>, vector<18x54xf32>
    %c80 = arith.constant 80 : index
    %c0_3 = arith.constant 0 : index
    %3 = vector.load %arg1[%c80, %c0_3] : memref<160x54xf32, #tpu.memory_space<vmem>>, vector<18x54xf32>
    %c104 = arith.constant 104 : index
    %c0_4 = arith.constant 0 : index
    %4 = vector.load %arg1[%c104, %c0_4] : memref<160x54xf32, #tpu.memory_space<vmem>>, vector<18x54xf32>
    %c128 = arith.constant 128 : index
    %c0_5 = arith.constant 0 : index
    %5 = vector.load %arg1[%c128, %c0_5] : memref<160x54xf32, #tpu.memory_space<vmem>>, vector<18x18xf32>
    %c152 = arith.constant 152 : index
    %c0_6 = arith.constant 0 : index
    %6 = vector.load %arg1[%c152, %c0_6] : memref<160x54xf32, #tpu.memory_space<vmem>>, vector<1x18xf32>
    %c24 = arith.constant 24 : index
    %c0_7 = arith.constant 0 : index
    %7 = vector.load %arg1[%c24, %c0_7] : memref<160x54xf32, #tpu.memory_space<vmem>>, vector<4x12xf32>
    %8 = vector.extract_strided_slice %7 {offsets = [0, 0], sizes = [1, 12], strides = [1, 1]} : vector<4x12xf32> to vector<1x12xf32>
    %9 = vector.shape_cast %8 : vector<1x12xf32> to vector<1x12xf32>
    %10 = vector.broadcast %9 : vector<1x12xf32> to vector<8x12xf32>
    %11 = vector.extract_strided_slice %7 {offsets = [1, 0], sizes = [1, 12], strides = [1, 1]} : vector<4x12xf32> to vector<1x12xf32>
    %12 = vector.shape_cast %11 : vector<1x12xf32> to vector<1x12xf32>
    %13 = vector.broadcast %12 : vector<1x12xf32> to vector<8x12xf32>
    %14 = vector.extract_strided_slice %7 {offsets = [2, 0], sizes = [1, 12], strides = [1, 1]} : vector<4x12xf32> to vector<1x12xf32>
    %15 = vector.shape_cast %14 : vector<1x12xf32> to vector<1x12xf32>
    %16 = vector.broadcast %15 : vector<1x12xf32> to vector<8x12xf32>
    %17 = vector.extract_strided_slice %7 {offsets = [3, 0], sizes = [1, 12], strides = [1, 1]} : vector<4x12xf32> to vector<1x12xf32>
    %18 = vector.shape_cast %17 : vector<1x12xf32> to vector<1x12xf32>
    %19 = vector.broadcast %18 : vector<1x12xf32> to vector<8x12xf32>
    %c32 = arith.constant 32 : index
    %c0_8 = arith.constant 0 : index
    %20 = vector.load %arg1[%c32, %c0_8] : memref<160x54xf32, #tpu.memory_space<vmem>>, vector<4x12xf32>
    %21 = vector.extract_strided_slice %20 {offsets = [0, 0], sizes = [1, 12], strides = [1, 1]} : vector<4x12xf32> to vector<1x12xf32>
    %22 = vector.shape_cast %21 : vector<1x12xf32> to vector<1x12xf32>
    %23 = vector.broadcast %22 : vector<1x12xf32> to vector<8x12xf32>
    %24 = vector.extract_strided_slice %20 {offsets = [1, 0], sizes = [1, 12], strides = [1, 1]} : vector<4x12xf32> to vector<1x12xf32>
    %25 = vector.shape_cast %24 : vector<1x12xf32> to vector<1x12xf32>
    %26 = vector.broadcast %25 : vector<1x12xf32> to vector<8x12xf32>
    %27 = vector.extract_strided_slice %20 {offsets = [2, 0], sizes = [1, 12], strides = [1, 1]} : vector<4x12xf32> to vector<1x12xf32>
    %28 = vector.shape_cast %27 : vector<1x12xf32> to vector<1x12xf32>
    %29 = vector.broadcast %28 : vector<1x12xf32> to vector<8x12xf32>
    %30 = vector.extract_strided_slice %20 {offsets = [3, 0], sizes = [1, 12], strides = [1, 1]} : vector<4x12xf32> to vector<1x12xf32>
    %31 = vector.shape_cast %30 : vector<1x12xf32> to vector<1x12xf32>
    %32 = vector.broadcast %31 : vector<1x12xf32> to vector<8x12xf32>
    %c40 = arith.constant 40 : index
    %c0_9 = arith.constant 0 : index
    %33 = vector.load %arg1[%c40, %c0_9] : memref<160x54xf32, #tpu.memory_space<vmem>>, vector<4x12xf32>
    %34 = vector.extract_strided_slice %33 {offsets = [0, 0], sizes = [1, 12], strides = [1, 1]} : vector<4x12xf32> to vector<1x12xf32>
    %35 = vector.shape_cast %34 : vector<1x12xf32> to vector<1x12xf32>
    %36 = vector.broadcast %35 : vector<1x12xf32> to vector<8x12xf32>
    %37 = vector.extract_strided_slice %33 {offsets = [1, 0], sizes = [1, 12], strides = [1, 1]} : vector<4x12xf32> to vector<1x12xf32>
    %38 = vector.shape_cast %37 : vector<1x12xf32> to vector<1x12xf32>
    %39 = vector.broadcast %38 : vector<1x12xf32> to vector<8x12xf32>
    %40 = vector.extract_strided_slice %33 {offsets = [2, 0], sizes = [1, 12], strides = [1, 1]} : vector<4x12xf32> to vector<1x12xf32>
    %41 = vector.shape_cast %40 : vector<1x12xf32> to vector<1x12xf32>
    %42 = vector.broadcast %41 : vector<1x12xf32> to vector<8x12xf32>
    %43 = vector.extract_strided_slice %33 {offsets = [3, 0], sizes = [1, 12], strides = [1, 1]} : vector<4x12xf32> to vector<1x12xf32>
    %44 = vector.shape_cast %43 : vector<1x12xf32> to vector<1x12xf32>
    %45 = vector.broadcast %44 : vector<1x12xf32> to vector<8x12xf32>
    %c0_10 = arith.constant 0 : index
    %c0_11 = arith.constant 0 : index
    %46 = vector.load %arg0[%c0_10, %c0_11] : memref<64x18xf32, #tpu.memory_space<vmem>>, vector<64x18xf32>
    %cst = arith.constant dense<0.000000e+00> : vector<64x12xf32>
    %47 = tpu.matmul %46, %0, %cst {dimension_numbers = #tpu.dot_dimension_numbers<[1], [0], [0], [1], [0, 0, 1, 1], [], []>} : vector<64x18xf32>, vector<18x12xf32>, vector<64x12xf32> -> vector<64x12xf32>
    %cst_12 = arith.constant 0.000000e+00 : f32
    %48 = vector.broadcast %cst_12 : f32 to vector<8x4xf32>
    %cst_13 = arith.constant 0.000000e+00 : f32
    %49 = vector.broadcast %cst_13 : f32 to vector<8x4xf32>
    %50 = vector.extract_strided_slice %47 {offsets = [0, 0], sizes = [8, 12], strides = [1, 1]} : vector<64x12xf32> to vector<8x12xf32>
    %51 = vector.extract_strided_slice %48 {offsets = [0, 0], sizes = [8, 1], strides = [1, 1]} : vector<8x4xf32> to vector<8x1xf32>
    %52 = vector.broadcast %51 : vector<8x1xf32> to vector<8x12xf32>
    %53 = arith.mulf %52, %10 : vector<8x12xf32>
    %54 = vector.extract_strided_slice %48 {offsets = [0, 1], sizes = [8, 1], strides = [1, 1]} : vector<8x4xf32> to vector<8x1xf32>
    %55 = vector.broadcast %54 : vector<8x1xf32> to vector<8x12xf32>
    %56 = arith.mulf %55, %13 : vector<8x12xf32>
    %57 = arith.addf %53, %56 : vector<8x12xf32>
    %58 = vector.extract_strided_slice %48 {offsets = [0, 2], sizes = [8, 1], strides = [1, 1]} : vector<8x4xf32> to vector<8x1xf32>
    %59 = vector.broadcast %58 : vector<8x1xf32> to vector<8x12xf32>
    %60 = arith.mulf %59, %16 : vector<8x12xf32>
    %61 = arith.addf %57, %60 : vector<8x12xf32>
    %62 = vector.extract_strided_slice %48 {offsets = [0, 3], sizes = [8, 1], strides = [1, 1]} : vector<8x4xf32> to vector<8x1xf32>
    %63 = vector.broadcast %62 : vector<8x1xf32> to vector<8x12xf32>
    %64 = arith.mulf %63, %19 : vector<8x12xf32>
    %65 = arith.addf %61, %64 : vector<8x12xf32>
    %66 = arith.addf %50, %65 : vector<8x12xf32>
    %67 = arith.negf %66 : vector<8x12xf32>
    %68 = math.exp %67 : vector<8x12xf32>
    %cst_14 = arith.constant 1.000000e+00 : f32
    %69 = vector.broadcast %cst_14 : f32 to vector<8x12xf32>
    %70 = arith.addf %69, %68 : vector<8x12xf32>
    %71 = arith.divf %69, %70 : vector<8x12xf32>
    %72 = vector.extract_strided_slice %71 {offsets = [0, 4], sizes = [8, 4], strides = [1, 1]} : vector<8x12xf32> to vector<8x4xf32>
    %73 = vector.extract_strided_slice %71 {offsets = [0, 8], sizes = [8, 4], strides = [1, 1]} : vector<8x12xf32> to vector<8x4xf32>
    %74 = vector.extract_strided_slice %50 {offsets = [0, 0], sizes = [8, 4], strides = [1, 1]} : vector<8x12xf32> to vector<8x4xf32>
    %75 = vector.extract_strided_slice %65 {offsets = [0, 0], sizes = [8, 4], strides = [1, 1]} : vector<8x12xf32> to vector<8x4xf32>
    %76 = arith.mulf %72, %75 : vector<8x4xf32>
    %77 = arith.addf %74, %76 : vector<8x4xf32>
    %78 = math.tanh %77 : vector<8x4xf32>
    %cst_15 = arith.constant 1.000000e+00 : f32
    %79 = vector.broadcast %cst_15 : f32 to vector<8x4xf32>
    %80 = arith.subf %79, %73 : vector<8x4xf32>
    %81 = arith.mulf %80, %78 : vector<8x4xf32>
    %82 = arith.mulf %73, %48 : vector<8x4xf32>
    %83 = arith.addf %81, %82 : vector<8x4xf32>
    %84 = vector.extract_strided_slice %83 {offsets = [0, 0], sizes = [8, 1], strides = [1, 1]} : vector<8x4xf32> to vector<8x1xf32>
    %85 = vector.broadcast %84 : vector<8x1xf32> to vector<8x12xf32>
    %86 = arith.mulf %85, %23 : vector<8x12xf32>
    %87 = vector.extract_strided_slice %83 {offsets = [0, 1], sizes = [8, 1], strides = [1, 1]} : vector<8x4xf32> to vector<8x1xf32>
    %88 = vector.broadcast %87 : vector<8x1xf32> to vector<8x12xf32>
    %89 = arith.mulf %88, %26 : vector<8x12xf32>
    %90 = arith.addf %86, %89 : vector<8x12xf32>
    %91 = vector.extract_strided_slice %83 {offsets = [0, 2], sizes = [8, 1], strides = [1, 1]} : vector<8x4xf32> to vector<8x1xf32>
    %92 = vector.broadcast %91 : vector<8x1xf32> to vector<8x12xf32>
    %93 = arith.mulf %92, %29 : vector<8x12xf32>
    %94 = arith.addf %90, %93 : vector<8x12xf32>
    %95 = vector.extract_strided_slice %83 {offsets = [0, 3], sizes = [8, 1], strides = [1, 1]} : vector<8x4xf32> to vector<8x1xf32>
    %96 = vector.broadcast %95 : vector<8x1xf32> to vector<8x12xf32>
    %97 = arith.mulf %96, %32 : vector<8x12xf32>
    %98 = arith.addf %94, %97 : vector<8x12xf32>
    %99 = vector.extract_strided_slice %49 {offsets = [0, 0], sizes = [8, 1], strides = [1, 1]} : vector<8x4xf32> to vector<8x1xf32>
    %100 = vector.broadcast %99 : vector<8x1xf32> to vector<8x12xf32>
    %101 = arith.mulf %100, %36 : vector<8x12xf32>
    %102 = vector.extract_strided_slice %49 {offsets = [0, 1], sizes = [8, 1], strides = [1, 1]} : vector<8x4xf32> to vector<8x1xf32>
    %103 = vector.broadcast %102 : vector<8x1xf32> to vector<8x12xf32>
    %104 = arith.mulf %103, %39 : vector<8x12xf32>
    %105 = arith.addf %101, %104 : vector<8x12xf32>
    %106 = vector.extract_strided_slice %49 {offsets = [0, 2], sizes = [8, 1], strides = [1, 1]} : vector<8x4xf32> to vector<8x1xf32>
    %107 = vector.broadcast %106 : vector<8x1xf32> to vector<8x12xf32>
    %108 = arith.mulf %107, %42 : vector<8x12xf32>
    %109 = arith.addf %105, %108 : vector<8x12xf32>
    %110 = vector.extract_strided_slice %49 {offsets = [0, 3], sizes = [8, 1], strides = [1, 1]} : vector<8x4xf32> to vector<8x1xf32>
    %111 = vector.broadcast %110 : vector<8x1xf32> to vector<8x12xf32>
    %112 = arith.mulf %111, %45 : vector<8x12xf32>
    %113 = arith.addf %109, %112 : vector<8x12xf32>
    %114 = arith.addf %98, %113 : vector<8x12xf32>
    %115 = arith.negf %114 : vector<8x12xf32>
    %116 = math.exp %115 : vector<8x12xf32>
    %cst_16 = arith.constant 1.000000e+00 : f32
    %117 = vector.broadcast %cst_16 : f32 to vector<8x12xf32>
    %118 = arith.addf %117, %116 : vector<8x12xf32>
    %119 = arith.divf %117, %118 : vector<8x12xf32>
    %120 = vector.extract_strided_slice %119 {offsets = [0, 4], sizes = [8, 4], strides = [1, 1]} : vector<8x12xf32> to vector<8x4xf32>
    %121 = vector.extract_strided_slice %119 {offsets = [0, 8], sizes = [8, 4], strides = [1, 1]} : vector<8x12xf32> to vector<8x4xf32>
    %122 = vector.extract_strided_slice %98 {offsets = [0, 0], sizes = [8, 4], strides = [1, 1]} : vector<8x12xf32> to vector<8x4xf32>
    %123 = vector.extract_strided_slice %113 {offsets = [0, 0], sizes = [8, 4], strides = [1, 1]} : vector<8x12xf32> to vector<8x4xf32>
    %124 = arith.mulf %120, %123 : vector<8x4xf32>
    %125 = arith.addf %122, %124 : vector<8x4xf32>
    %126 = math.tanh %125 : vector<8x4xf32>
    %cst_17 = arith.constant 1.000000e+00 : f32
    %127 = vector.broadcast %cst_17 : f32 to vector<8x4xf32>
    %128 = arith.subf %127, %121 : vector<8x4xf32>
    %129 = arith.mulf %128, %126 : vector<8x4xf32>
    %130 = arith.mulf %121, %49 : vector<8x4xf32>
    %131 = arith.addf %129, %130 : vector<8x4xf32>
    %132 = vector.extract_strided_slice %47 {offsets = [8, 0], sizes = [8, 12], strides = [1, 1]} : vector<64x12xf32> to vector<8x12xf32>
    %133 = vector.extract_strided_slice %83 {offsets = [0, 0], sizes = [8, 1], strides = [1, 1]} : vector<8x4xf32> to vector<8x1xf32>
    %134 = vector.broadcast %133 : vector<8x1xf32> to vector<8x12xf32>
    %135 = arith.mulf %134, %10 : vector<8x12xf32>
    %136 = vector.extract_strided_slice %83 {offsets = [0, 1], sizes = [8, 1], strides = [1, 1]} : vector<8x4xf32> to vector<8x1xf32>
    %137 = vector.broadcast %136 : vector<8x1xf32> to vector<8x12xf32>
    %138 = arith.mulf %137, %13 : vector<8x12xf32>
    %139 = arith.addf %135, %138 : vector<8x12xf32>
    %140 = vector.extract_strided_slice %83 {offsets = [0, 2], sizes = [8, 1], strides = [1, 1]} : vector<8x4xf32> to vector<8x1xf32>
    %141 = vector.broadcast %140 : vector<8x1xf32> to vector<8x12xf32>
    %142 = arith.mulf %141, %16 : vector<8x12xf32>
    %143 = arith.addf %139, %142 : vector<8x12xf32>
    %144 = vector.extract_strided_slice %83 {offsets = [0, 3], sizes = [8, 1], strides = [1, 1]} : vector<8x4xf32> to vector<8x1xf32>
    %145 = vector.broadcast %144 : vector<8x1xf32> to vector<8x12xf32>
    %146 = arith.mulf %145, %19 : vector<8x12xf32>
    %147 = arith.addf %143, %146 : vector<8x12xf32>
    %148 = arith.addf %132, %147 : vector<8x12xf32>
    %149 = arith.negf %148 : vector<8x12xf32>
    %150 = math.exp %149 : vector<8x12xf32>
    %cst_18 = arith.constant 1.000000e+00 : f32
    %151 = vector.broadcast %cst_18 : f32 to vector<8x12xf32>
    %152 = arith.addf %151, %150 : vector<8x12xf32>
    %153 = arith.divf %151, %152 : vector<8x12xf32>
    %154 = vector.extract_strided_slice %153 {offsets = [0, 4], sizes = [8, 4], strides = [1, 1]} : vector<8x12xf32> to vector<8x4xf32>
    %155 = vector.extract_strided_slice %153 {offsets = [0, 8], sizes = [8, 4], strides = [1, 1]} : vector<8x12xf32> to vector<8x4xf32>
    %156 = vector.extract_strided_slice %132 {offsets = [0, 0], sizes = [8, 4], strides = [1, 1]} : vector<8x12xf32> to vector<8x4xf32>
    %157 = vector.extract_strided_slice %147 {offsets = [0, 0], sizes = [8, 4], strides = [1, 1]} : vector<8x12xf32> to vector<8x4xf32>
    %158 = arith.mulf %154, %157 : vector<8x4xf32>
    %159 = arith.addf %156, %158 : vector<8x4xf32>
    %160 = math.tanh %159 : vector<8x4xf32>
    %cst_19 = arith.constant 1.000000e+00 : f32
    %161 = vector.broadcast %cst_19 : f32 to vector<8x4xf32>
    %162 = arith.subf %161, %155 : vector<8x4xf32>
    %163 = arith.mulf %162, %160 : vector<8x4xf32>
    %164 = arith.mulf %155, %83 : vector<8x4xf32>
    %165 = arith.addf %163, %164 : vector<8x4xf32>
    %166 = vector.extract_strided_slice %165 {offsets = [0, 0], sizes = [8, 1], strides = [1, 1]} : vector<8x4xf32> to vector<8x1xf32>
    %167 = vector.broadcast %166 : vector<8x1xf32> to vector<8x12xf32>
    %168 = arith.mulf %167, %23 : vector<8x12xf32>
    %169 = vector.extract_strided_slice %165 {offsets = [0, 1], sizes = [8, 1], strides = [1, 1]} : vector<8x4xf32> to vector<8x1xf32>
    %170 = vector.broadcast %169 : vector<8x1xf32> to vector<8x12xf32>
    %171 = arith.mulf %170, %26 : vector<8x12xf32>
    %172 = arith.addf %168, %171 : vector<8x12xf32>
    %173 = vector.extract_strided_slice %165 {offsets = [0, 2], sizes = [8, 1], strides = [1, 1]} : vector<8x4xf32> to vector<8x1xf32>
    %174 = vector.broadcast %173 : vector<8x1xf32> to vector<8x12xf32>
    %175 = arith.mulf %174, %29 : vector<8x12xf32>
    %176 = arith.addf %172, %175 : vector<8x12xf32>
    %177 = vector.extract_strided_slice %165 {offsets = [0, 3], sizes = [8, 1], strides = [1, 1]} : vector<8x4xf32> to vector<8x1xf32>
    %178 = vector.broadcast %177 : vector<8x1xf32> to vector<8x12xf32>
    %179 = arith.mulf %178, %32 : vector<8x12xf32>
    %180 = arith.addf %176, %179 : vector<8x12xf32>
    %181 = vector.extract_strided_slice %131 {offsets = [0, 0], sizes = [8, 1], strides = [1, 1]} : vector<8x4xf32> to vector<8x1xf32>
    %182 = vector.broadcast %181 : vector<8x1xf32> to vector<8x12xf32>
    %183 = arith.mulf %182, %36 : vector<8x12xf32>
    %184 = vector.extract_strided_slice %131 {offsets = [0, 1], sizes = [8, 1], strides = [1, 1]} : vector<8x4xf32> to vector<8x1xf32>
    %185 = vector.broadcast %184 : vector<8x1xf32> to vector<8x12xf32>
    %186 = arith.mulf %185, %39 : vector<8x12xf32>
    %187 = arith.addf %183, %186 : vector<8x12xf32>
    %188 = vector.extract_strided_slice %131 {offsets = [0, 2], sizes = [8, 1], strides = [1, 1]} : vector<8x4xf32> to vector<8x1xf32>
    %189 = vector.broadcast %188 : vector<8x1xf32> to vector<8x12xf32>
    %190 = arith.mulf %189, %42 : vector<8x12xf32>
    %191 = arith.addf %187, %190 : vector<8x12xf32>
    %192 = vector.extract_strided_slice %131 {offsets = [0, 3], sizes = [8, 1], strides = [1, 1]} : vector<8x4xf32> to vector<8x1xf32>
    %193 = vector.broadcast %192 : vector<8x1xf32> to vector<8x12xf32>
    %194 = arith.mulf %193, %45 : vector<8x12xf32>
    %195 = arith.addf %191, %194 : vector<8x12xf32>
    %196 = arith.addf %180, %195 : vector<8x12xf32>
    %197 = arith.negf %196 : vector<8x12xf32>
    %198 = math.exp %197 : vector<8x12xf32>
    %cst_20 = arith.constant 1.000000e+00 : f32
    %199 = vector.broadcast %cst_20 : f32 to vector<8x12xf32>
    %200 = arith.addf %199, %198 : vector<8x12xf32>
    %201 = arith.divf %199, %200 : vector<8x12xf32>
    %202 = vector.extract_strided_slice %201 {offsets = [0, 4], sizes = [8, 4], strides = [1, 1]} : vector<8x12xf32> to vector<8x4xf32>
    %203 = vector.extract_strided_slice %201 {offsets = [0, 8], sizes = [8, 4], strides = [1, 1]} : vector<8x12xf32> to vector<8x4xf32>
    %204 = vector.extract_strided_slice %180 {offsets = [0, 0], sizes = [8, 4], strides = [1, 1]} : vector<8x12xf32> to vector<8x4xf32>
    %205 = vector.extract_strided_slice %195 {offsets = [0, 0], sizes = [8, 4], strides = [1, 1]} : vector<8x12xf32> to vector<8x4xf32>
    %206 = arith.mulf %202, %205 : vector<8x4xf32>
    %207 = arith.addf %204, %206 : vector<8x4xf32>
    %208 = math.tanh %207 : vector<8x4xf32>
    %cst_21 = arith.constant 1.000000e+00 : f32
    %209 = vector.broadcast %cst_21 : f32 to vector<8x4xf32>
    %210 = arith.subf %209, %203 : vector<8x4xf32>
    %211 = arith.mulf %210, %208 : vector<8x4xf32>
    %212 = arith.mulf %203, %131 : vector<8x4xf32>
    %213 = arith.addf %211, %212 : vector<8x4xf32>
    %214 = vector.extract_strided_slice %47 {offsets = [16, 0], sizes = [8, 12], strides = [1, 1]} : vector<64x12xf32> to vector<8x12xf32>
    %215 = vector.extract_strided_slice %165 {offsets = [0, 0], sizes = [8, 1], strides = [1, 1]} : vector<8x4xf32> to vector<8x1xf32>
    %216 = vector.broadcast %215 : vector<8x1xf32> to vector<8x12xf32>
    %217 = arith.mulf %216, %10 : vector<8x12xf32>
    %218 = vector.extract_strided_slice %165 {offsets = [0, 1], sizes = [8, 1], strides = [1, 1]} : vector<8x4xf32> to vector<8x1xf32>
    %219 = vector.broadcast %218 : vector<8x1xf32> to vector<8x12xf32>
    %220 = arith.mulf %219, %13 : vector<8x12xf32>
    %221 = arith.addf %217, %220 : vector<8x12xf32>
    %222 = vector.extract_strided_slice %165 {offsets = [0, 2], sizes = [8, 1], strides = [1, 1]} : vector<8x4xf32> to vector<8x1xf32>
    %223 = vector.broadcast %222 : vector<8x1xf32> to vector<8x12xf32>
    %224 = arith.mulf %223, %16 : vector<8x12xf32>
    %225 = arith.addf %221, %224 : vector<8x12xf32>
    %226 = vector.extract_strided_slice %165 {offsets = [0, 3], sizes = [8, 1], strides = [1, 1]} : vector<8x4xf32> to vector<8x1xf32>
    %227 = vector.broadcast %226 : vector<8x1xf32> to vector<8x12xf32>
    %228 = arith.mulf %227, %19 : vector<8x12xf32>
    %229 = arith.addf %225, %228 : vector<8x12xf32>
    %230 = arith.addf %214, %229 : vector<8x12xf32>
    %231 = arith.negf %230 : vector<8x12xf32>
    %232 = math.exp %231 : vector<8x12xf32>
    %cst_22 = arith.constant 1.000000e+00 : f32
    %233 = vector.broadcast %cst_22 : f32 to vector<8x12xf32>
    %234 = arith.addf %233, %232 : vector<8x12xf32>
    %235 = arith.divf %233, %234 : vector<8x12xf32>
    %236 = vector.extract_strided_slice %235 {offsets = [0, 4], sizes = [8, 4], strides = [1, 1]} : vector<8x12xf32> to vector<8x4xf32>
    %237 = vector.extract_strided_slice %235 {offsets = [0, 8], sizes = [8, 4], strides = [1, 1]} : vector<8x12xf32> to vector<8x4xf32>
    %238 = vector.extract_strided_slice %214 {offsets = [0, 0], sizes = [8, 4], strides = [1, 1]} : vector<8x12xf32> to vector<8x4xf32>
    %239 = vector.extract_strided_slice %229 {offsets = [0, 0], sizes = [8, 4], strides = [1, 1]} : vector<8x12xf32> to vector<8x4xf32>
    %240 = arith.mulf %236, %239 : vector<8x4xf32>
    %241 = arith.addf %238, %240 : vector<8x4xf32>
    %242 = math.tanh %241 : vector<8x4xf32>
    %cst_23 = arith.constant 1.000000e+00 : f32
    %243 = vector.broadcast %cst_23 : f32 to vector<8x4xf32>
    %244 = arith.subf %243, %237 : vector<8x4xf32>
    %245 = arith.mulf %244, %242 : vector<8x4xf32>
    %246 = arith.mulf %237, %165 : vector<8x4xf32>
    %247 = arith.addf %245, %246 : vector<8x4xf32>
    %248 = vector.extract_strided_slice %247 {offsets = [0, 0], sizes = [8, 1], strides = [1, 1]} : vector<8x4xf32> to vector<8x1xf32>
    %249 = vector.broadcast %248 : vector<8x1xf32> to vector<8x12xf32>
    %250 = arith.mulf %249, %23 : vector<8x12xf32>
    %251 = vector.extract_strided_slice %247 {offsets = [0, 1], sizes = [8, 1], strides = [1, 1]} : vector<8x4xf32> to vector<8x1xf32>
    %252 = vector.broadcast %251 : vector<8x1xf32> to vector<8x12xf32>
    %253 = arith.mulf %252, %26 : vector<8x12xf32>
    %254 = arith.addf %250, %253 : vector<8x12xf32>
    %255 = vector.extract_strided_slice %247 {offsets = [0, 2], sizes = [8, 1], strides = [1, 1]} : vector<8x4xf32> to vector<8x1xf32>
    %256 = vector.broadcast %255 : vector<8x1xf32> to vector<8x12xf32>
    %257 = arith.mulf %256, %29 : vector<8x12xf32>
    %258 = arith.addf %254, %257 : vector<8x12xf32>
    %259 = vector.extract_strided_slice %247 {offsets = [0, 3], sizes = [8, 1], strides = [1, 1]} : vector<8x4xf32> to vector<8x1xf32>
    %260 = vector.broadcast %259 : vector<8x1xf32> to vector<8x12xf32>
    %261 = arith.mulf %260, %32 : vector<8x12xf32>
    %262 = arith.addf %258, %261 : vector<8x12xf32>
    %263 = vector.extract_strided_slice %213 {offsets = [0, 0], sizes = [8, 1], strides = [1, 1]} : vector<8x4xf32> to vector<8x1xf32>
    %264 = vector.broadcast %263 : vector<8x1xf32> to vector<8x12xf32>
    %265 = arith.mulf %264, %36 : vector<8x12xf32>
    %266 = vector.extract_strided_slice %213 {offsets = [0, 1], sizes = [8, 1], strides = [1, 1]} : vector<8x4xf32> to vector<8x1xf32>
    %267 = vector.broadcast %266 : vector<8x1xf32> to vector<8x12xf32>
    %268 = arith.mulf %267, %39 : vector<8x12xf32>
    %269 = arith.addf %265, %268 : vector<8x12xf32>
    %270 = vector.extract_strided_slice %213 {offsets = [0, 2], sizes = [8, 1], strides = [1, 1]} : vector<8x4xf32> to vector<8x1xf32>
    %271 = vector.broadcast %270 : vector<8x1xf32> to vector<8x12xf32>
    %272 = arith.mulf %271, %42 : vector<8x12xf32>
    %273 = arith.addf %269, %272 : vector<8x12xf32>
    %274 = vector.extract_strided_slice %213 {offsets = [0, 3], sizes = [8, 1], strides = [1, 1]} : vector<8x4xf32> to vector<8x1xf32>
    %275 = vector.broadcast %274 : vector<8x1xf32> to vector<8x12xf32>
    %276 = arith.mulf %275, %45 : vector<8x12xf32>
    %277 = arith.addf %273, %276 : vector<8x12xf32>
    %278 = arith.addf %262, %277 : vector<8x12xf32>
    %279 = arith.negf %278 : vector<8x12xf32>
    %280 = math.exp %279 : vector<8x12xf32>
    %cst_24 = arith.constant 1.000000e+00 : f32
    %281 = vector.broadcast %cst_24 : f32 to vector<8x12xf32>
    %282 = arith.addf %281, %280 : vector<8x12xf32>
    %283 = arith.divf %281, %282 : vector<8x12xf32>
    %284 = vector.extract_strided_slice %283 {offsets = [0, 4], sizes = [8, 4], strides = [1, 1]} : vector<8x12xf32> to vector<8x4xf32>
    %285 = vector.extract_strided_slice %283 {offsets = [0, 8], sizes = [8, 4], strides = [1, 1]} : vector<8x12xf32> to vector<8x4xf32>
    %286 = vector.extract_strided_slice %262 {offsets = [0, 0], sizes = [8, 4], strides = [1, 1]} : vector<8x12xf32> to vector<8x4xf32>
    %287 = vector.extract_strided_slice %277 {offsets = [0, 0], sizes = [8, 4], strides = [1, 1]} : vector<8x12xf32> to vector<8x4xf32>
    %288 = arith.mulf %284, %287 : vector<8x4xf32>
    %289 = arith.addf %286, %288 : vector<8x4xf32>
    %290 = math.tanh %289 : vector<8x4xf32>
    %cst_25 = arith.constant 1.000000e+00 : f32
    %291 = vector.broadcast %cst_25 : f32 to vector<8x4xf32>
    %292 = arith.subf %291, %285 : vector<8x4xf32>
    %293 = arith.mulf %292, %290 : vector<8x4xf32>
    %294 = arith.mulf %285, %213 : vector<8x4xf32>
    %295 = arith.addf %293, %294 : vector<8x4xf32>
    %296 = vector.extract_strided_slice %47 {offsets = [24, 0], sizes = [8, 12], strides = [1, 1]} : vector<64x12xf32> to vector<8x12xf32>
    %297 = vector.extract_strided_slice %247 {offsets = [0, 0], sizes = [8, 1], strides = [1, 1]} : vector<8x4xf32> to vector<8x1xf32>
    %298 = vector.broadcast %297 : vector<8x1xf32> to vector<8x12xf32>
    %299 = arith.mulf %298, %10 : vector<8x12xf32>
    %300 = vector.extract_strided_slice %247 {offsets = [0, 1], sizes = [8, 1], strides = [1, 1]} : vector<8x4xf32> to vector<8x1xf32>
    %301 = vector.broadcast %300 : vector<8x1xf32> to vector<8x12xf32>
    %302 = arith.mulf %301, %13 : vector<8x12xf32>
    %303 = arith.addf %299, %302 : vector<8x12xf32>
    %304 = vector.extract_strided_slice %247 {offsets = [0, 2], sizes = [8, 1], strides = [1, 1]} : vector<8x4xf32> to vector<8x1xf32>
    %305 = vector.broadcast %304 : vector<8x1xf32> to vector<8x12xf32>
    %306 = arith.mulf %305, %16 : vector<8x12xf32>
    %307 = arith.addf %303, %306 : vector<8x12xf32>
    %308 = vector.extract_strided_slice %247 {offsets = [0, 3], sizes = [8, 1], strides = [1, 1]} : vector<8x4xf32> to vector<8x1xf32>
    %309 = vector.broadcast %308 : vector<8x1xf32> to vector<8x12xf32>
    %310 = arith.mulf %309, %19 : vector<8x12xf32>
    %311 = arith.addf %307, %310 : vector<8x12xf32>
    %312 = arith.addf %296, %311 : vector<8x12xf32>
    %313 = arith.negf %312 : vector<8x12xf32>
    %314 = math.exp %313 : vector<8x12xf32>
    %cst_26 = arith.constant 1.000000e+00 : f32
    %315 = vector.broadcast %cst_26 : f32 to vector<8x12xf32>
    %316 = arith.addf %315, %314 : vector<8x12xf32>
    %317 = arith.divf %315, %316 : vector<8x12xf32>
    %318 = vector.extract_strided_slice %317 {offsets = [0, 4], sizes = [8, 4], strides = [1, 1]} : vector<8x12xf32> to vector<8x4xf32>
    %319 = vector.extract_strided_slice %317 {offsets = [0, 8], sizes = [8, 4], strides = [1, 1]} : vector<8x12xf32> to vector<8x4xf32>
    %320 = vector.extract_strided_slice %296 {offsets = [0, 0], sizes = [8, 4], strides = [1, 1]} : vector<8x12xf32> to vector<8x4xf32>
    %321 = vector.extract_strided_slice %311 {offsets = [0, 0], sizes = [8, 4], strides = [1, 1]} : vector<8x12xf32> to vector<8x4xf32>
    %322 = arith.mulf %318, %321 : vector<8x4xf32>
    %323 = arith.addf %320, %322 : vector<8x4xf32>
    %324 = math.tanh %323 : vector<8x4xf32>
    %cst_27 = arith.constant 1.000000e+00 : f32
    %325 = vector.broadcast %cst_27 : f32 to vector<8x4xf32>
    %326 = arith.subf %325, %319 : vector<8x4xf32>
    %327 = arith.mulf %326, %324 : vector<8x4xf32>
    %328 = arith.mulf %319, %247 : vector<8x4xf32>
    %329 = arith.addf %327, %328 : vector<8x4xf32>
    %330 = vector.extract_strided_slice %329 {offsets = [0, 0], sizes = [8, 1], strides = [1, 1]} : vector<8x4xf32> to vector<8x1xf32>
    %331 = vector.broadcast %330 : vector<8x1xf32> to vector<8x12xf32>
    %332 = arith.mulf %331, %23 : vector<8x12xf32>
    %333 = vector.extract_strided_slice %329 {offsets = [0, 1], sizes = [8, 1], strides = [1, 1]} : vector<8x4xf32> to vector<8x1xf32>
    %334 = vector.broadcast %333 : vector<8x1xf32> to vector<8x12xf32>
    %335 = arith.mulf %334, %26 : vector<8x12xf32>
    %336 = arith.addf %332, %335 : vector<8x12xf32>
    %337 = vector.extract_strided_slice %329 {offsets = [0, 2], sizes = [8, 1], strides = [1, 1]} : vector<8x4xf32> to vector<8x1xf32>
    %338 = vector.broadcast %337 : vector<8x1xf32> to vector<8x12xf32>
    %339 = arith.mulf %338, %29 : vector<8x12xf32>
    %340 = arith.addf %336, %339 : vector<8x12xf32>
    %341 = vector.extract_strided_slice %329 {offsets = [0, 3], sizes = [8, 1], strides = [1, 1]} : vector<8x4xf32> to vector<8x1xf32>
    %342 = vector.broadcast %341 : vector<8x1xf32> to vector<8x12xf32>
    %343 = arith.mulf %342, %32 : vector<8x12xf32>
    %344 = arith.addf %340, %343 : vector<8x12xf32>
    %345 = vector.extract_strided_slice %295 {offsets = [0, 0], sizes = [8, 1], strides = [1, 1]} : vector<8x4xf32> to vector<8x1xf32>
    %346 = vector.broadcast %345 : vector<8x1xf32> to vector<8x12xf32>
    %347 = arith.mulf %346, %36 : vector<8x12xf32>
    %348 = vector.extract_strided_slice %295 {offsets = [0, 1], sizes = [8, 1], strides = [1, 1]} : vector<8x4xf32> to vector<8x1xf32>
    %349 = vector.broadcast %348 : vector<8x1xf32> to vector<8x12xf32>
    %350 = arith.mulf %349, %39 : vector<8x12xf32>
    %351 = arith.addf %347, %350 : vector<8x12xf32>
    %352 = vector.extract_strided_slice %295 {offsets = [0, 2], sizes = [8, 1], strides = [1, 1]} : vector<8x4xf32> to vector<8x1xf32>
    %353 = vector.broadcast %352 : vector<8x1xf32> to vector<8x12xf32>
    %354 = arith.mulf %353, %42 : vector<8x12xf32>
    %355 = arith.addf %351, %354 : vector<8x12xf32>
    %356 = vector.extract_strided_slice %295 {offsets = [0, 3], sizes = [8, 1], strides = [1, 1]} : vector<8x4xf32> to vector<8x1xf32>
    %357 = vector.broadcast %356 : vector<8x1xf32> to vector<8x12xf32>
    %358 = arith.mulf %357, %45 : vector<8x12xf32>
    %359 = arith.addf %355, %358 : vector<8x12xf32>
    %360 = arith.addf %344, %359 : vector<8x12xf32>
    %361 = arith.negf %360 : vector<8x12xf32>
    %362 = math.exp %361 : vector<8x12xf32>
    %cst_28 = arith.constant 1.000000e+00 : f32
    %363 = vector.broadcast %cst_28 : f32 to vector<8x12xf32>
    %364 = arith.addf %363, %362 : vector<8x12xf32>
    %365 = arith.divf %363, %364 : vector<8x12xf32>
    %366 = vector.extract_strided_slice %365 {offsets = [0, 4], sizes = [8, 4], strides = [1, 1]} : vector<8x12xf32> to vector<8x4xf32>
    %367 = vector.extract_strided_slice %365 {offsets = [0, 8], sizes = [8, 4], strides = [1, 1]} : vector<8x12xf32> to vector<8x4xf32>
    %368 = vector.extract_strided_slice %344 {offsets = [0, 0], sizes = [8, 4], strides = [1, 1]} : vector<8x12xf32> to vector<8x4xf32>
    %369 = vector.extract_strided_slice %359 {offsets = [0, 0], sizes = [8, 4], strides = [1, 1]} : vector<8x12xf32> to vector<8x4xf32>
    %370 = arith.mulf %366, %369 : vector<8x4xf32>
    %371 = arith.addf %368, %370 : vector<8x4xf32>
    %372 = math.tanh %371 : vector<8x4xf32>
    %cst_29 = arith.constant 1.000000e+00 : f32
    %373 = vector.broadcast %cst_29 : f32 to vector<8x4xf32>
    %374 = arith.subf %373, %367 : vector<8x4xf32>
    %375 = arith.mulf %374, %372 : vector<8x4xf32>
    %376 = arith.mulf %367, %295 : vector<8x4xf32>
    %377 = arith.addf %375, %376 : vector<8x4xf32>
    %378 = vector.extract_strided_slice %47 {offsets = [32, 0], sizes = [8, 12], strides = [1, 1]} : vector<64x12xf32> to vector<8x12xf32>
    %379 = vector.extract_strided_slice %329 {offsets = [0, 0], sizes = [8, 1], strides = [1, 1]} : vector<8x4xf32> to vector<8x1xf32>
    %380 = vector.broadcast %379 : vector<8x1xf32> to vector<8x12xf32>
    %381 = arith.mulf %380, %10 : vector<8x12xf32>
    %382 = vector.extract_strided_slice %329 {offsets = [0, 1], sizes = [8, 1], strides = [1, 1]} : vector<8x4xf32> to vector<8x1xf32>
    %383 = vector.broadcast %382 : vector<8x1xf32> to vector<8x12xf32>
    %384 = arith.mulf %383, %13 : vector<8x12xf32>
    %385 = arith.addf %381, %384 : vector<8x12xf32>
    %386 = vector.extract_strided_slice %329 {offsets = [0, 2], sizes = [8, 1], strides = [1, 1]} : vector<8x4xf32> to vector<8x1xf32>
    %387 = vector.broadcast %386 : vector<8x1xf32> to vector<8x12xf32>
    %388 = arith.mulf %387, %16 : vector<8x12xf32>
    %389 = arith.addf %385, %388 : vector<8x12xf32>
    %390 = vector.extract_strided_slice %329 {offsets = [0, 3], sizes = [8, 1], strides = [1, 1]} : vector<8x4xf32> to vector<8x1xf32>
    %391 = vector.broadcast %390 : vector<8x1xf32> to vector<8x12xf32>
    %392 = arith.mulf %391, %19 : vector<8x12xf32>
    %393 = arith.addf %389, %392 : vector<8x12xf32>
    %394 = arith.addf %378, %393 : vector<8x12xf32>
    %395 = arith.negf %394 : vector<8x12xf32>
    %396 = math.exp %395 : vector<8x12xf32>
    %cst_30 = arith.constant 1.000000e+00 : f32
    %397 = vector.broadcast %cst_30 : f32 to vector<8x12xf32>
    %398 = arith.addf %397, %396 : vector<8x12xf32>
    %399 = arith.divf %397, %398 : vector<8x12xf32>
    %400 = vector.extract_strided_slice %399 {offsets = [0, 4], sizes = [8, 4], strides = [1, 1]} : vector<8x12xf32> to vector<8x4xf32>
    %401 = vector.extract_strided_slice %399 {offsets = [0, 8], sizes = [8, 4], strides = [1, 1]} : vector<8x12xf32> to vector<8x4xf32>
    %402 = vector.extract_strided_slice %378 {offsets = [0, 0], sizes = [8, 4], strides = [1, 1]} : vector<8x12xf32> to vector<8x4xf32>
    %403 = vector.extract_strided_slice %393 {offsets = [0, 0], sizes = [8, 4], strides = [1, 1]} : vector<8x12xf32> to vector<8x4xf32>
    %404 = arith.mulf %400, %403 : vector<8x4xf32>
    %405 = arith.addf %402, %404 : vector<8x4xf32>
    %406 = math.tanh %405 : vector<8x4xf32>
    %cst_31 = arith.constant 1.000000e+00 : f32
    %407 = vector.broadcast %cst_31 : f32 to vector<8x4xf32>
    %408 = arith.subf %407, %401 : vector<8x4xf32>
    %409 = arith.mulf %408, %406 : vector<8x4xf32>
    %410 = arith.mulf %401, %329 : vector<8x4xf32>
    %411 = arith.addf %409, %410 : vector<8x4xf32>
    %412 = vector.extract_strided_slice %411 {offsets = [0, 0], sizes = [8, 1], strides = [1, 1]} : vector<8x4xf32> to vector<8x1xf32>
    %413 = vector.broadcast %412 : vector<8x1xf32> to vector<8x12xf32>
    %414 = arith.mulf %413, %23 : vector<8x12xf32>
    %415 = vector.extract_strided_slice %411 {offsets = [0, 1], sizes = [8, 1], strides = [1, 1]} : vector<8x4xf32> to vector<8x1xf32>
    %416 = vector.broadcast %415 : vector<8x1xf32> to vector<8x12xf32>
    %417 = arith.mulf %416, %26 : vector<8x12xf32>
    %418 = arith.addf %414, %417 : vector<8x12xf32>
    %419 = vector.extract_strided_slice %411 {offsets = [0, 2], sizes = [8, 1], strides = [1, 1]} : vector<8x4xf32> to vector<8x1xf32>
    %420 = vector.broadcast %419 : vector<8x1xf32> to vector<8x12xf32>
    %421 = arith.mulf %420, %29 : vector<8x12xf32>
    %422 = arith.addf %418, %421 : vector<8x12xf32>
    %423 = vector.extract_strided_slice %411 {offsets = [0, 3], sizes = [8, 1], strides = [1, 1]} : vector<8x4xf32> to vector<8x1xf32>
    %424 = vector.broadcast %423 : vector<8x1xf32> to vector<8x12xf32>
    %425 = arith.mulf %424, %32 : vector<8x12xf32>
    %426 = arith.addf %422, %425 : vector<8x12xf32>
    %427 = vector.extract_strided_slice %377 {offsets = [0, 0], sizes = [8, 1], strides = [1, 1]} : vector<8x4xf32> to vector<8x1xf32>
    %428 = vector.broadcast %427 : vector<8x1xf32> to vector<8x12xf32>
    %429 = arith.mulf %428, %36 : vector<8x12xf32>
    %430 = vector.extract_strided_slice %377 {offsets = [0, 1], sizes = [8, 1], strides = [1, 1]} : vector<8x4xf32> to vector<8x1xf32>
    %431 = vector.broadcast %430 : vector<8x1xf32> to vector<8x12xf32>
    %432 = arith.mulf %431, %39 : vector<8x12xf32>
    %433 = arith.addf %429, %432 : vector<8x12xf32>
    %434 = vector.extract_strided_slice %377 {offsets = [0, 2], sizes = [8, 1], strides = [1, 1]} : vector<8x4xf32> to vector<8x1xf32>
    %435 = vector.broadcast %434 : vector<8x1xf32> to vector<8x12xf32>
    %436 = arith.mulf %435, %42 : vector<8x12xf32>
    %437 = arith.addf %433, %436 : vector<8x12xf32>
    %438 = vector.extract_strided_slice %377 {offsets = [0, 3], sizes = [8, 1], strides = [1, 1]} : vector<8x4xf32> to vector<8x1xf32>
    %439 = vector.broadcast %438 : vector<8x1xf32> to vector<8x12xf32>
    %440 = arith.mulf %439, %45 : vector<8x12xf32>
    %441 = arith.addf %437, %440 : vector<8x12xf32>
    %442 = arith.addf %426, %441 : vector<8x12xf32>
    %443 = arith.negf %442 : vector<8x12xf32>
    %444 = math.exp %443 : vector<8x12xf32>
    %cst_32 = arith.constant 1.000000e+00 : f32
    %445 = vector.broadcast %cst_32 : f32 to vector<8x12xf32>
    %446 = arith.addf %445, %444 : vector<8x12xf32>
    %447 = arith.divf %445, %446 : vector<8x12xf32>
    %448 = vector.extract_strided_slice %447 {offsets = [0, 4], sizes = [8, 4], strides = [1, 1]} : vector<8x12xf32> to vector<8x4xf32>
    %449 = vector.extract_strided_slice %447 {offsets = [0, 8], sizes = [8, 4], strides = [1, 1]} : vector<8x12xf32> to vector<8x4xf32>
    %450 = vector.extract_strided_slice %426 {offsets = [0, 0], sizes = [8, 4], strides = [1, 1]} : vector<8x12xf32> to vector<8x4xf32>
    %451 = vector.extract_strided_slice %441 {offsets = [0, 0], sizes = [8, 4], strides = [1, 1]} : vector<8x12xf32> to vector<8x4xf32>
    %452 = arith.mulf %448, %451 : vector<8x4xf32>
    %453 = arith.addf %450, %452 : vector<8x4xf32>
    %454 = math.tanh %453 : vector<8x4xf32>
    %cst_33 = arith.constant 1.000000e+00 : f32
    %455 = vector.broadcast %cst_33 : f32 to vector<8x4xf32>
    %456 = arith.subf %455, %449 : vector<8x4xf32>
    %457 = arith.mulf %456, %454 : vector<8x4xf32>
    %458 = arith.mulf %449, %377 : vector<8x4xf32>
    %459 = arith.addf %457, %458 : vector<8x4xf32>
    %460 = vector.extract_strided_slice %47 {offsets = [40, 0], sizes = [8, 12], strides = [1, 1]} : vector<64x12xf32> to vector<8x12xf32>
    %461 = vector.extract_strided_slice %411 {offsets = [0, 0], sizes = [8, 1], strides = [1, 1]} : vector<8x4xf32> to vector<8x1xf32>
    %462 = vector.broadcast %461 : vector<8x1xf32> to vector<8x12xf32>
    %463 = arith.mulf %462, %10 : vector<8x12xf32>
    %464 = vector.extract_strided_slice %411 {offsets = [0, 1], sizes = [8, 1], strides = [1, 1]} : vector<8x4xf32> to vector<8x1xf32>
    %465 = vector.broadcast %464 : vector<8x1xf32> to vector<8x12xf32>
    %466 = arith.mulf %465, %13 : vector<8x12xf32>
    %467 = arith.addf %463, %466 : vector<8x12xf32>
    %468 = vector.extract_strided_slice %411 {offsets = [0, 2], sizes = [8, 1], strides = [1, 1]} : vector<8x4xf32> to vector<8x1xf32>
    %469 = vector.broadcast %468 : vector<8x1xf32> to vector<8x12xf32>
    %470 = arith.mulf %469, %16 : vector<8x12xf32>
    %471 = arith.addf %467, %470 : vector<8x12xf32>
    %472 = vector.extract_strided_slice %411 {offsets = [0, 3], sizes = [8, 1], strides = [1, 1]} : vector<8x4xf32> to vector<8x1xf32>
    %473 = vector.broadcast %472 : vector<8x1xf32> to vector<8x12xf32>
    %474 = arith.mulf %473, %19 : vector<8x12xf32>
    %475 = arith.addf %471, %474 : vector<8x12xf32>
    %476 = arith.addf %460, %475 : vector<8x12xf32>
    %477 = arith.negf %476 : vector<8x12xf32>
    %478 = math.exp %477 : vector<8x12xf32>
    %cst_34 = arith.constant 1.000000e+00 : f32
    %479 = vector.broadcast %cst_34 : f32 to vector<8x12xf32>
    %480 = arith.addf %479, %478 : vector<8x12xf32>
    %481 = arith.divf %479, %480 : vector<8x12xf32>
    %482 = vector.extract_strided_slice %481 {offsets = [0, 4], sizes = [8, 4], strides = [1, 1]} : vector<8x12xf32> to vector<8x4xf32>
    %483 = vector.extract_strided_slice %481 {offsets = [0, 8], sizes = [8, 4], strides = [1, 1]} : vector<8x12xf32> to vector<8x4xf32>
    %484 = vector.extract_strided_slice %460 {offsets = [0, 0], sizes = [8, 4], strides = [1, 1]} : vector<8x12xf32> to vector<8x4xf32>
    %485 = vector.extract_strided_slice %475 {offsets = [0, 0], sizes = [8, 4], strides = [1, 1]} : vector<8x12xf32> to vector<8x4xf32>
    %486 = arith.mulf %482, %485 : vector<8x4xf32>
    %487 = arith.addf %484, %486 : vector<8x4xf32>
    %488 = math.tanh %487 : vector<8x4xf32>
    %cst_35 = arith.constant 1.000000e+00 : f32
    %489 = vector.broadcast %cst_35 : f32 to vector<8x4xf32>
    %490 = arith.subf %489, %483 : vector<8x4xf32>
    %491 = arith.mulf %490, %488 : vector<8x4xf32>
    %492 = arith.mulf %483, %411 : vector<8x4xf32>
    %493 = arith.addf %491, %492 : vector<8x4xf32>
    %494 = vector.extract_strided_slice %493 {offsets = [0, 0], sizes = [8, 1], strides = [1, 1]} : vector<8x4xf32> to vector<8x1xf32>
    %495 = vector.broadcast %494 : vector<8x1xf32> to vector<8x12xf32>
    %496 = arith.mulf %495, %23 : vector<8x12xf32>
    %497 = vector.extract_strided_slice %493 {offsets = [0, 1], sizes = [8, 1], strides = [1, 1]} : vector<8x4xf32> to vector<8x1xf32>
    %498 = vector.broadcast %497 : vector<8x1xf32> to vector<8x12xf32>
    %499 = arith.mulf %498, %26 : vector<8x12xf32>
    %500 = arith.addf %496, %499 : vector<8x12xf32>
    %501 = vector.extract_strided_slice %493 {offsets = [0, 2], sizes = [8, 1], strides = [1, 1]} : vector<8x4xf32> to vector<8x1xf32>
    %502 = vector.broadcast %501 : vector<8x1xf32> to vector<8x12xf32>
    %503 = arith.mulf %502, %29 : vector<8x12xf32>
    %504 = arith.addf %500, %503 : vector<8x12xf32>
    %505 = vector.extract_strided_slice %493 {offsets = [0, 3], sizes = [8, 1], strides = [1, 1]} : vector<8x4xf32> to vector<8x1xf32>
    %506 = vector.broadcast %505 : vector<8x1xf32> to vector<8x12xf32>
    %507 = arith.mulf %506, %32 : vector<8x12xf32>
    %508 = arith.addf %504, %507 : vector<8x12xf32>
    %509 = vector.extract_strided_slice %459 {offsets = [0, 0], sizes = [8, 1], strides = [1, 1]} : vector<8x4xf32> to vector<8x1xf32>
    %510 = vector.broadcast %509 : vector<8x1xf32> to vector<8x12xf32>
    %511 = arith.mulf %510, %36 : vector<8x12xf32>
    %512 = vector.extract_strided_slice %459 {offsets = [0, 1], sizes = [8, 1], strides = [1, 1]} : vector<8x4xf32> to vector<8x1xf32>
    %513 = vector.broadcast %512 : vector<8x1xf32> to vector<8x12xf32>
    %514 = arith.mulf %513, %39 : vector<8x12xf32>
    %515 = arith.addf %511, %514 : vector<8x12xf32>
    %516 = vector.extract_strided_slice %459 {offsets = [0, 2], sizes = [8, 1], strides = [1, 1]} : vector<8x4xf32> to vector<8x1xf32>
    %517 = vector.broadcast %516 : vector<8x1xf32> to vector<8x12xf32>
    %518 = arith.mulf %517, %42 : vector<8x12xf32>
    %519 = arith.addf %515, %518 : vector<8x12xf32>
    %520 = vector.extract_strided_slice %459 {offsets = [0, 3], sizes = [8, 1], strides = [1, 1]} : vector<8x4xf32> to vector<8x1xf32>
    %521 = vector.broadcast %520 : vector<8x1xf32> to vector<8x12xf32>
    %522 = arith.mulf %521, %45 : vector<8x12xf32>
    %523 = arith.addf %519, %522 : vector<8x12xf32>
    %524 = arith.addf %508, %523 : vector<8x12xf32>
    %525 = arith.negf %524 : vector<8x12xf32>
    %526 = math.exp %525 : vector<8x12xf32>
    %cst_36 = arith.constant 1.000000e+00 : f32
    %527 = vector.broadcast %cst_36 : f32 to vector<8x12xf32>
    %528 = arith.addf %527, %526 : vector<8x12xf32>
    %529 = arith.divf %527, %528 : vector<8x12xf32>
    %530 = vector.extract_strided_slice %529 {offsets = [0, 4], sizes = [8, 4], strides = [1, 1]} : vector<8x12xf32> to vector<8x4xf32>
    %531 = vector.extract_strided_slice %529 {offsets = [0, 8], sizes = [8, 4], strides = [1, 1]} : vector<8x12xf32> to vector<8x4xf32>
    %532 = vector.extract_strided_slice %508 {offsets = [0, 0], sizes = [8, 4], strides = [1, 1]} : vector<8x12xf32> to vector<8x4xf32>
    %533 = vector.extract_strided_slice %523 {offsets = [0, 0], sizes = [8, 4], strides = [1, 1]} : vector<8x12xf32> to vector<8x4xf32>
    %534 = arith.mulf %530, %533 : vector<8x4xf32>
    %535 = arith.addf %532, %534 : vector<8x4xf32>
    %536 = math.tanh %535 : vector<8x4xf32>
    %cst_37 = arith.constant 1.000000e+00 : f32
    %537 = vector.broadcast %cst_37 : f32 to vector<8x4xf32>
    %538 = arith.subf %537, %531 : vector<8x4xf32>
    %539 = arith.mulf %538, %536 : vector<8x4xf32>
    %540 = arith.mulf %531, %459 : vector<8x4xf32>
    %541 = arith.addf %539, %540 : vector<8x4xf32>
    %542 = vector.extract_strided_slice %47 {offsets = [48, 0], sizes = [8, 12], strides = [1, 1]} : vector<64x12xf32> to vector<8x12xf32>
    %543 = vector.extract_strided_slice %493 {offsets = [0, 0], sizes = [8, 1], strides = [1, 1]} : vector<8x4xf32> to vector<8x1xf32>
    %544 = vector.broadcast %543 : vector<8x1xf32> to vector<8x12xf32>
    %545 = arith.mulf %544, %10 : vector<8x12xf32>
    %546 = vector.extract_strided_slice %493 {offsets = [0, 1], sizes = [8, 1], strides = [1, 1]} : vector<8x4xf32> to vector<8x1xf32>
    %547 = vector.broadcast %546 : vector<8x1xf32> to vector<8x12xf32>
    %548 = arith.mulf %547, %13 : vector<8x12xf32>
    %549 = arith.addf %545, %548 : vector<8x12xf32>
    %550 = vector.extract_strided_slice %493 {offsets = [0, 2], sizes = [8, 1], strides = [1, 1]} : vector<8x4xf32> to vector<8x1xf32>
    %551 = vector.broadcast %550 : vector<8x1xf32> to vector<8x12xf32>
    %552 = arith.mulf %551, %16 : vector<8x12xf32>
    %553 = arith.addf %549, %552 : vector<8x12xf32>
    %554 = vector.extract_strided_slice %493 {offsets = [0, 3], sizes = [8, 1], strides = [1, 1]} : vector<8x4xf32> to vector<8x1xf32>
    %555 = vector.broadcast %554 : vector<8x1xf32> to vector<8x12xf32>
    %556 = arith.mulf %555, %19 : vector<8x12xf32>
    %557 = arith.addf %553, %556 : vector<8x12xf32>
    %558 = arith.addf %542, %557 : vector<8x12xf32>
    %559 = arith.negf %558 : vector<8x12xf32>
    %560 = math.exp %559 : vector<8x12xf32>
    %cst_38 = arith.constant 1.000000e+00 : f32
    %561 = vector.broadcast %cst_38 : f32 to vector<8x12xf32>
    %562 = arith.addf %561, %560 : vector<8x12xf32>
    %563 = arith.divf %561, %562 : vector<8x12xf32>
    %564 = vector.extract_strided_slice %563 {offsets = [0, 4], sizes = [8, 4], strides = [1, 1]} : vector<8x12xf32> to vector<8x4xf32>
    %565 = vector.extract_strided_slice %563 {offsets = [0, 8], sizes = [8, 4], strides = [1, 1]} : vector<8x12xf32> to vector<8x4xf32>
    %566 = vector.extract_strided_slice %542 {offsets = [0, 0], sizes = [8, 4], strides = [1, 1]} : vector<8x12xf32> to vector<8x4xf32>
    %567 = vector.extract_strided_slice %557 {offsets = [0, 0], sizes = [8, 4], strides = [1, 1]} : vector<8x12xf32> to vector<8x4xf32>
    %568 = arith.mulf %564, %567 : vector<8x4xf32>
    %569 = arith.addf %566, %568 : vector<8x4xf32>
    %570 = math.tanh %569 : vector<8x4xf32>
    %cst_39 = arith.constant 1.000000e+00 : f32
    %571 = vector.broadcast %cst_39 : f32 to vector<8x4xf32>
    %572 = arith.subf %571, %565 : vector<8x4xf32>
    %573 = arith.mulf %572, %570 : vector<8x4xf32>
    %574 = arith.mulf %565, %493 : vector<8x4xf32>
    %575 = arith.addf %573, %574 : vector<8x4xf32>
    %576 = vector.extract_strided_slice %575 {offsets = [0, 0], sizes = [8, 1], strides = [1, 1]} : vector<8x4xf32> to vector<8x1xf32>
    %577 = vector.broadcast %576 : vector<8x1xf32> to vector<8x12xf32>
    %578 = arith.mulf %577, %23 : vector<8x12xf32>
    %579 = vector.extract_strided_slice %575 {offsets = [0, 1], sizes = [8, 1], strides = [1, 1]} : vector<8x4xf32> to vector<8x1xf32>
    %580 = vector.broadcast %579 : vector<8x1xf32> to vector<8x12xf32>
    %581 = arith.mulf %580, %26 : vector<8x12xf32>
    %582 = arith.addf %578, %581 : vector<8x12xf32>
    %583 = vector.extract_strided_slice %575 {offsets = [0, 2], sizes = [8, 1], strides = [1, 1]} : vector<8x4xf32> to vector<8x1xf32>
    %584 = vector.broadcast %583 : vector<8x1xf32> to vector<8x12xf32>
    %585 = arith.mulf %584, %29 : vector<8x12xf32>
    %586 = arith.addf %582, %585 : vector<8x12xf32>
    %587 = vector.extract_strided_slice %575 {offsets = [0, 3], sizes = [8, 1], strides = [1, 1]} : vector<8x4xf32> to vector<8x1xf32>
    %588 = vector.broadcast %587 : vector<8x1xf32> to vector<8x12xf32>
    %589 = arith.mulf %588, %32 : vector<8x12xf32>
    %590 = arith.addf %586, %589 : vector<8x12xf32>
    %591 = vector.extract_strided_slice %541 {offsets = [0, 0], sizes = [8, 1], strides = [1, 1]} : vector<8x4xf32> to vector<8x1xf32>
    %592 = vector.broadcast %591 : vector<8x1xf32> to vector<8x12xf32>
    %593 = arith.mulf %592, %36 : vector<8x12xf32>
    %594 = vector.extract_strided_slice %541 {offsets = [0, 1], sizes = [8, 1], strides = [1, 1]} : vector<8x4xf32> to vector<8x1xf32>
    %595 = vector.broadcast %594 : vector<8x1xf32> to vector<8x12xf32>
    %596 = arith.mulf %595, %39 : vector<8x12xf32>
    %597 = arith.addf %593, %596 : vector<8x12xf32>
    %598 = vector.extract_strided_slice %541 {offsets = [0, 2], sizes = [8, 1], strides = [1, 1]} : vector<8x4xf32> to vector<8x1xf32>
    %599 = vector.broadcast %598 : vector<8x1xf32> to vector<8x12xf32>
    %600 = arith.mulf %599, %42 : vector<8x12xf32>
    %601 = arith.addf %597, %600 : vector<8x12xf32>
    %602 = vector.extract_strided_slice %541 {offsets = [0, 3], sizes = [8, 1], strides = [1, 1]} : vector<8x4xf32> to vector<8x1xf32>
    %603 = vector.broadcast %602 : vector<8x1xf32> to vector<8x12xf32>
    %604 = arith.mulf %603, %45 : vector<8x12xf32>
    %605 = arith.addf %601, %604 : vector<8x12xf32>
    %606 = arith.addf %590, %605 : vector<8x12xf32>
    %607 = arith.negf %606 : vector<8x12xf32>
    %608 = math.exp %607 : vector<8x12xf32>
    %cst_40 = arith.constant 1.000000e+00 : f32
    %609 = vector.broadcast %cst_40 : f32 to vector<8x12xf32>
    %610 = arith.addf %609, %608 : vector<8x12xf32>
    %611 = arith.divf %609, %610 : vector<8x12xf32>
    %612 = vector.extract_strided_slice %611 {offsets = [0, 4], sizes = [8, 4], strides = [1, 1]} : vector<8x12xf32> to vector<8x4xf32>
    %613 = vector.extract_strided_slice %611 {offsets = [0, 8], sizes = [8, 4], strides = [1, 1]} : vector<8x12xf32> to vector<8x4xf32>
    %614 = vector.extract_strided_slice %590 {offsets = [0, 0], sizes = [8, 4], strides = [1, 1]} : vector<8x12xf32> to vector<8x4xf32>
    %615 = vector.extract_strided_slice %605 {offsets = [0, 0], sizes = [8, 4], strides = [1, 1]} : vector<8x12xf32> to vector<8x4xf32>
    %616 = arith.mulf %612, %615 : vector<8x4xf32>
    %617 = arith.addf %614, %616 : vector<8x4xf32>
    %618 = math.tanh %617 : vector<8x4xf32>
    %cst_41 = arith.constant 1.000000e+00 : f32
    %619 = vector.broadcast %cst_41 : f32 to vector<8x4xf32>
    %620 = arith.subf %619, %613 : vector<8x4xf32>
    %621 = arith.mulf %620, %618 : vector<8x4xf32>
    %622 = arith.mulf %613, %541 : vector<8x4xf32>
    %623 = arith.addf %621, %622 : vector<8x4xf32>
    %624 = vector.extract_strided_slice %47 {offsets = [56, 0], sizes = [8, 12], strides = [1, 1]} : vector<64x12xf32> to vector<8x12xf32>
    %625 = vector.extract_strided_slice %575 {offsets = [0, 0], sizes = [8, 1], strides = [1, 1]} : vector<8x4xf32> to vector<8x1xf32>
    %626 = vector.broadcast %625 : vector<8x1xf32> to vector<8x12xf32>
    %627 = arith.mulf %626, %10 : vector<8x12xf32>
    %628 = vector.extract_strided_slice %575 {offsets = [0, 1], sizes = [8, 1], strides = [1, 1]} : vector<8x4xf32> to vector<8x1xf32>
    %629 = vector.broadcast %628 : vector<8x1xf32> to vector<8x12xf32>
    %630 = arith.mulf %629, %13 : vector<8x12xf32>
    %631 = arith.addf %627, %630 : vector<8x12xf32>
    %632 = vector.extract_strided_slice %575 {offsets = [0, 2], sizes = [8, 1], strides = [1, 1]} : vector<8x4xf32> to vector<8x1xf32>
    %633 = vector.broadcast %632 : vector<8x1xf32> to vector<8x12xf32>
    %634 = arith.mulf %633, %16 : vector<8x12xf32>
    %635 = arith.addf %631, %634 : vector<8x12xf32>
    %636 = vector.extract_strided_slice %575 {offsets = [0, 3], sizes = [8, 1], strides = [1, 1]} : vector<8x4xf32> to vector<8x1xf32>
    %637 = vector.broadcast %636 : vector<8x1xf32> to vector<8x12xf32>
    %638 = arith.mulf %637, %19 : vector<8x12xf32>
    %639 = arith.addf %635, %638 : vector<8x12xf32>
    %640 = arith.addf %624, %639 : vector<8x12xf32>
    %641 = arith.negf %640 : vector<8x12xf32>
    %642 = math.exp %641 : vector<8x12xf32>
    %cst_42 = arith.constant 1.000000e+00 : f32
    %643 = vector.broadcast %cst_42 : f32 to vector<8x12xf32>
    %644 = arith.addf %643, %642 : vector<8x12xf32>
    %645 = arith.divf %643, %644 : vector<8x12xf32>
    %646 = vector.extract_strided_slice %645 {offsets = [0, 4], sizes = [8, 4], strides = [1, 1]} : vector<8x12xf32> to vector<8x4xf32>
    %647 = vector.extract_strided_slice %645 {offsets = [0, 8], sizes = [8, 4], strides = [1, 1]} : vector<8x12xf32> to vector<8x4xf32>
    %648 = vector.extract_strided_slice %624 {offsets = [0, 0], sizes = [8, 4], strides = [1, 1]} : vector<8x12xf32> to vector<8x4xf32>
    %649 = vector.extract_strided_slice %639 {offsets = [0, 0], sizes = [8, 4], strides = [1, 1]} : vector<8x12xf32> to vector<8x4xf32>
    %650 = arith.mulf %646, %649 : vector<8x4xf32>
    %651 = arith.addf %648, %650 : vector<8x4xf32>
    %652 = math.tanh %651 : vector<8x4xf32>
    %cst_43 = arith.constant 1.000000e+00 : f32
    %653 = vector.broadcast %cst_43 : f32 to vector<8x4xf32>
    %654 = arith.subf %653, %647 : vector<8x4xf32>
    %655 = arith.mulf %654, %652 : vector<8x4xf32>
    %656 = arith.mulf %647, %575 : vector<8x4xf32>
    %657 = arith.addf %655, %656 : vector<8x4xf32>
    %658 = vector.extract_strided_slice %657 {offsets = [0, 0], sizes = [8, 1], strides = [1, 1]} : vector<8x4xf32> to vector<8x1xf32>
    %659 = vector.broadcast %658 : vector<8x1xf32> to vector<8x12xf32>
    %660 = arith.mulf %659, %23 : vector<8x12xf32>
    %661 = vector.extract_strided_slice %657 {offsets = [0, 1], sizes = [8, 1], strides = [1, 1]} : vector<8x4xf32> to vector<8x1xf32>
    %662 = vector.broadcast %661 : vector<8x1xf32> to vector<8x12xf32>
    %663 = arith.mulf %662, %26 : vector<8x12xf32>
    %664 = arith.addf %660, %663 : vector<8x12xf32>
    %665 = vector.extract_strided_slice %657 {offsets = [0, 2], sizes = [8, 1], strides = [1, 1]} : vector<8x4xf32> to vector<8x1xf32>
    %666 = vector.broadcast %665 : vector<8x1xf32> to vector<8x12xf32>
    %667 = arith.mulf %666, %29 : vector<8x12xf32>
    %668 = arith.addf %664, %667 : vector<8x12xf32>
    %669 = vector.extract_strided_slice %657 {offsets = [0, 3], sizes = [8, 1], strides = [1, 1]} : vector<8x4xf32> to vector<8x1xf32>
    %670 = vector.broadcast %669 : vector<8x1xf32> to vector<8x12xf32>
    %671 = arith.mulf %670, %32 : vector<8x12xf32>
    %672 = arith.addf %668, %671 : vector<8x12xf32>
    %673 = vector.extract_strided_slice %623 {offsets = [0, 0], sizes = [8, 1], strides = [1, 1]} : vector<8x4xf32> to vector<8x1xf32>
    %674 = vector.broadcast %673 : vector<8x1xf32> to vector<8x12xf32>
    %675 = arith.mulf %674, %36 : vector<8x12xf32>
    %676 = vector.extract_strided_slice %623 {offsets = [0, 1], sizes = [8, 1], strides = [1, 1]} : vector<8x4xf32> to vector<8x1xf32>
    %677 = vector.broadcast %676 : vector<8x1xf32> to vector<8x12xf32>
    %678 = arith.mulf %677, %39 : vector<8x12xf32>
    %679 = arith.addf %675, %678 : vector<8x12xf32>
    %680 = vector.extract_strided_slice %623 {offsets = [0, 2], sizes = [8, 1], strides = [1, 1]} : vector<8x4xf32> to vector<8x1xf32>
    %681 = vector.broadcast %680 : vector<8x1xf32> to vector<8x12xf32>
    %682 = arith.mulf %681, %42 : vector<8x12xf32>
    %683 = arith.addf %679, %682 : vector<8x12xf32>
    %684 = vector.extract_strided_slice %623 {offsets = [0, 3], sizes = [8, 1], strides = [1, 1]} : vector<8x4xf32> to vector<8x1xf32>
    %685 = vector.broadcast %684 : vector<8x1xf32> to vector<8x12xf32>
    %686 = arith.mulf %685, %45 : vector<8x12xf32>
    %687 = arith.addf %683, %686 : vector<8x12xf32>
    %688 = arith.addf %672, %687 : vector<8x12xf32>
    %689 = arith.negf %688 : vector<8x12xf32>
    %690 = math.exp %689 : vector<8x12xf32>
    %cst_44 = arith.constant 1.000000e+00 : f32
    %691 = vector.broadcast %cst_44 : f32 to vector<8x12xf32>
    %692 = arith.addf %691, %690 : vector<8x12xf32>
    %693 = arith.divf %691, %692 : vector<8x12xf32>
    %694 = vector.extract_strided_slice %693 {offsets = [0, 4], sizes = [8, 4], strides = [1, 1]} : vector<8x12xf32> to vector<8x4xf32>
    %695 = vector.extract_strided_slice %693 {offsets = [0, 8], sizes = [8, 4], strides = [1, 1]} : vector<8x12xf32> to vector<8x4xf32>
    %696 = vector.extract_strided_slice %672 {offsets = [0, 0], sizes = [8, 4], strides = [1, 1]} : vector<8x12xf32> to vector<8x4xf32>
    %697 = vector.extract_strided_slice %687 {offsets = [0, 0], sizes = [8, 4], strides = [1, 1]} : vector<8x12xf32> to vector<8x4xf32>
    %698 = arith.mulf %694, %697 : vector<8x4xf32>
    %699 = arith.addf %696, %698 : vector<8x4xf32>
    %700 = math.tanh %699 : vector<8x4xf32>
    %cst_45 = arith.constant 1.000000e+00 : f32
    %701 = vector.broadcast %cst_45 : f32 to vector<8x4xf32>
    %702 = arith.subf %701, %695 : vector<8x4xf32>
    %703 = arith.mulf %702, %700 : vector<8x4xf32>
    %704 = arith.mulf %695, %623 : vector<8x4xf32>
    %705 = arith.addf %703, %704 : vector<8x4xf32>
    %cst_46 = arith.constant dense<0.000000e+00> : vector<8x54xf32>
    %706 = tpu.matmul %705, %1, %cst_46 {dimension_numbers = #tpu.dot_dimension_numbers<[1], [0], [0], [1], [0, 0, 1, 1], [], []>} : vector<8x4xf32>, vector<4x54xf32>, vector<8x54xf32> -> vector<8x54xf32>
    %cst_47 = arith.constant 0.000000e+00 : f32
    %707 = vector.broadcast %cst_47 : f32 to vector<1x18xf32>
    %cst_48 = arith.constant 0.000000e+00 : f32
    %708 = vector.broadcast %cst_48 : f32 to vector<1x18xf32>
    %cst_49 = arith.constant dense<0.000000e+00> : vector<1x54xf32>
    %709 = tpu.matmul %707, %2, %cst_49 {dimension_numbers = #tpu.dot_dimension_numbers<[1], [0], [0], [1], [0, 0, 1, 1], [], []>} : vector<1x18xf32>, vector<18x54xf32>, vector<1x54xf32> -> vector<1x54xf32>
    %710 = vector.extract_strided_slice %706 {offsets = [0, 0], sizes = [1, 54], strides = [1, 1]} : vector<8x54xf32> to vector<1x54xf32>
    %711 = arith.addf %710, %709 : vector<1x54xf32>
    %712 = arith.negf %711 : vector<1x54xf32>
    %713 = math.exp %712 : vector<1x54xf32>
    %cst_50 = arith.constant 1.000000e+00 : f32
    %714 = vector.broadcast %cst_50 : f32 to vector<1x54xf32>
    %715 = arith.addf %714, %713 : vector<1x54xf32>
    %716 = arith.divf %714, %715 : vector<1x54xf32>
    %717 = vector.extract_strided_slice %716 {offsets = [0, 18], sizes = [1, 18], strides = [1, 1]} : vector<1x54xf32> to vector<1x18xf32>
    %718 = vector.extract_strided_slice %716 {offsets = [0, 36], sizes = [1, 18], strides = [1, 1]} : vector<1x54xf32> to vector<1x18xf32>
    %719 = vector.extract_strided_slice %710 {offsets = [0, 0], sizes = [1, 18], strides = [1, 1]} : vector<1x54xf32> to vector<1x18xf32>
    %720 = vector.extract_strided_slice %709 {offsets = [0, 0], sizes = [1, 18], strides = [1, 1]} : vector<1x54xf32> to vector<1x18xf32>
    %721 = arith.mulf %717, %720 : vector<1x18xf32>
    %722 = arith.addf %719, %721 : vector<1x18xf32>
    %723 = math.tanh %722 : vector<1x18xf32>
    %cst_51 = arith.constant 1.000000e+00 : f32
    %724 = vector.broadcast %cst_51 : f32 to vector<1x18xf32>
    %725 = arith.subf %724, %718 : vector<1x18xf32>
    %726 = arith.mulf %725, %723 : vector<1x18xf32>
    %727 = arith.mulf %718, %707 : vector<1x18xf32>
    %728 = arith.addf %726, %727 : vector<1x18xf32>
    %cst_52 = arith.constant dense<0.000000e+00> : vector<1x54xf32>
    %729 = tpu.matmul %728, %3, %cst_52 {dimension_numbers = #tpu.dot_dimension_numbers<[1], [0], [0], [1], [0, 0, 1, 1], [], []>} : vector<1x18xf32>, vector<18x54xf32>, vector<1x54xf32> -> vector<1x54xf32>
    %cst_53 = arith.constant dense<0.000000e+00> : vector<1x54xf32>
    %730 = tpu.matmul %708, %4, %cst_53 {dimension_numbers = #tpu.dot_dimension_numbers<[1], [0], [0], [1], [0, 0, 1, 1], [], []>} : vector<1x18xf32>, vector<18x54xf32>, vector<1x54xf32> -> vector<1x54xf32>
    %731 = arith.addf %729, %730 : vector<1x54xf32>
    %732 = arith.negf %731 : vector<1x54xf32>
    %733 = math.exp %732 : vector<1x54xf32>
    %cst_54 = arith.constant 1.000000e+00 : f32
    %734 = vector.broadcast %cst_54 : f32 to vector<1x54xf32>
    %735 = arith.addf %734, %733 : vector<1x54xf32>
    %736 = arith.divf %734, %735 : vector<1x54xf32>
    %737 = vector.extract_strided_slice %736 {offsets = [0, 18], sizes = [1, 18], strides = [1, 1]} : vector<1x54xf32> to vector<1x18xf32>
    %738 = vector.extract_strided_slice %736 {offsets = [0, 36], sizes = [1, 18], strides = [1, 1]} : vector<1x54xf32> to vector<1x18xf32>
    %739 = vector.extract_strided_slice %729 {offsets = [0, 0], sizes = [1, 18], strides = [1, 1]} : vector<1x54xf32> to vector<1x18xf32>
    %740 = vector.extract_strided_slice %730 {offsets = [0, 0], sizes = [1, 18], strides = [1, 1]} : vector<1x54xf32> to vector<1x18xf32>
    %741 = arith.mulf %737, %740 : vector<1x18xf32>
    %742 = arith.addf %739, %741 : vector<1x18xf32>
    %743 = math.tanh %742 : vector<1x18xf32>
    %cst_55 = arith.constant 1.000000e+00 : f32
    %744 = vector.broadcast %cst_55 : f32 to vector<1x18xf32>
    %745 = arith.subf %744, %738 : vector<1x18xf32>
    %746 = arith.mulf %745, %743 : vector<1x18xf32>
    %747 = arith.mulf %738, %708 : vector<1x18xf32>
    %748 = arith.addf %746, %747 : vector<1x18xf32>
    %cst_56 = arith.constant dense<0.000000e+00> : vector<1x54xf32>
    %749 = tpu.matmul %728, %2, %cst_56 {dimension_numbers = #tpu.dot_dimension_numbers<[1], [0], [0], [1], [0, 0, 1, 1], [], []>} : vector<1x18xf32>, vector<18x54xf32>, vector<1x54xf32> -> vector<1x54xf32>
    %750 = vector.extract_strided_slice %706 {offsets = [1, 0], sizes = [1, 54], strides = [1, 1]} : vector<8x54xf32> to vector<1x54xf32>
    %751 = arith.addf %750, %749 : vector<1x54xf32>
    %752 = arith.negf %751 : vector<1x54xf32>
    %753 = math.exp %752 : vector<1x54xf32>
    %cst_57 = arith.constant 1.000000e+00 : f32
    %754 = vector.broadcast %cst_57 : f32 to vector<1x54xf32>
    %755 = arith.addf %754, %753 : vector<1x54xf32>
    %756 = arith.divf %754, %755 : vector<1x54xf32>
    %757 = vector.extract_strided_slice %756 {offsets = [0, 18], sizes = [1, 18], strides = [1, 1]} : vector<1x54xf32> to vector<1x18xf32>
    %758 = vector.extract_strided_slice %756 {offsets = [0, 36], sizes = [1, 18], strides = [1, 1]} : vector<1x54xf32> to vector<1x18xf32>
    %759 = vector.extract_strided_slice %750 {offsets = [0, 0], sizes = [1, 18], strides = [1, 1]} : vector<1x54xf32> to vector<1x18xf32>
    %760 = vector.extract_strided_slice %749 {offsets = [0, 0], sizes = [1, 18], strides = [1, 1]} : vector<1x54xf32> to vector<1x18xf32>
    %761 = arith.mulf %757, %760 : vector<1x18xf32>
    %762 = arith.addf %759, %761 : vector<1x18xf32>
    %763 = math.tanh %762 : vector<1x18xf32>
    %cst_58 = arith.constant 1.000000e+00 : f32
    %764 = vector.broadcast %cst_58 : f32 to vector<1x18xf32>
    %765 = arith.subf %764, %758 : vector<1x18xf32>
    %766 = arith.mulf %765, %763 : vector<1x18xf32>
    %767 = arith.mulf %758, %728 : vector<1x18xf32>
    %768 = arith.addf %766, %767 : vector<1x18xf32>
    %cst_59 = arith.constant dense<0.000000e+00> : vector<1x54xf32>
    %769 = tpu.matmul %768, %3, %cst_59 {dimension_numbers = #tpu.dot_dimension_numbers<[1], [0], [0], [1], [0, 0, 1, 1], [], []>} : vector<1x18xf32>, vector<18x54xf32>, vector<1x54xf32> -> vector<1x54xf32>
    %cst_60 = arith.constant dense<0.000000e+00> : vector<1x54xf32>
    %770 = tpu.matmul %748, %4, %cst_60 {dimension_numbers = #tpu.dot_dimension_numbers<[1], [0], [0], [1], [0, 0, 1, 1], [], []>} : vector<1x18xf32>, vector<18x54xf32>, vector<1x54xf32> -> vector<1x54xf32>
    %771 = arith.addf %769, %770 : vector<1x54xf32>
    %772 = arith.negf %771 : vector<1x54xf32>
    %773 = math.exp %772 : vector<1x54xf32>
    %cst_61 = arith.constant 1.000000e+00 : f32
    %774 = vector.broadcast %cst_61 : f32 to vector<1x54xf32>
    %775 = arith.addf %774, %773 : vector<1x54xf32>
    %776 = arith.divf %774, %775 : vector<1x54xf32>
    %777 = vector.extract_strided_slice %776 {offsets = [0, 18], sizes = [1, 18], strides = [1, 1]} : vector<1x54xf32> to vector<1x18xf32>
    %778 = vector.extract_strided_slice %776 {offsets = [0, 36], sizes = [1, 18], strides = [1, 1]} : vector<1x54xf32> to vector<1x18xf32>
    %779 = vector.extract_strided_slice %769 {offsets = [0, 0], sizes = [1, 18], strides = [1, 1]} : vector<1x54xf32> to vector<1x18xf32>
    %780 = vector.extract_strided_slice %770 {offsets = [0, 0], sizes = [1, 18], strides = [1, 1]} : vector<1x54xf32> to vector<1x18xf32>
    %781 = arith.mulf %777, %780 : vector<1x18xf32>
    %782 = arith.addf %779, %781 : vector<1x18xf32>
    %783 = math.tanh %782 : vector<1x18xf32>
    %cst_62 = arith.constant 1.000000e+00 : f32
    %784 = vector.broadcast %cst_62 : f32 to vector<1x18xf32>
    %785 = arith.subf %784, %778 : vector<1x18xf32>
    %786 = arith.mulf %785, %783 : vector<1x18xf32>
    %787 = arith.mulf %778, %748 : vector<1x18xf32>
    %788 = arith.addf %786, %787 : vector<1x18xf32>
    %cst_63 = arith.constant 0.000000e+00 : f32
    %789 = vector.broadcast %cst_63 : f32 to vector<6x18xf32>
    %790 = tpu.concatenate %748, %788, %789 in 0 : vector<1x18xf32>, vector<1x18xf32>, vector<6x18xf32> -> vector<8x18xf32>
    %cst_64 = arith.constant dense<0.000000e+00> : vector<8x18xf32>
    %791 = tpu.matmul %790, %5, %cst_64 {dimension_numbers = #tpu.dot_dimension_numbers<[1], [0], [0], [1], [0, 0, 1, 1], [], []>} : vector<8x18xf32>, vector<18x18xf32>, vector<8x18xf32> -> vector<8x18xf32>
    %792 = vector.broadcast %6 : vector<1x18xf32> to vector<8x18xf32>
    %793 = arith.addf %791, %792 : vector<8x18xf32>
    %c0_65 = arith.constant 0 : index
    %c0_66 = arith.constant 0 : index
    %794 = vector.load %arg2[%c0_65, %c0_66] : memref<8x18xf32, #tpu.memory_space<vmem>>, vector<8x18xf32>
    tpu.vector_store %arg2[%c0_65, %c0_66], %793 {strides = array<i32>} : memref<8x18xf32, #tpu.memory_space<vmem>>, vector<8x18xf32>,
    return
  }
}

</mosaic_0001>

<bundles_post_ra>
// kernel: tpu_custom_call.1
= control target key start
LH: loop header
LB: loop body
LE: loop exit
PB: predicated region body
PF: predicated region fallthrough
CT: control target
= control target key end

     0   :  { %vm77_vm0 = vcmask 1041408   ;;  %s2328_s0 = inlined_call_operand.vmem [shape: f32[64,18], index: 0, kind: input, shape index: {}]   ;;  %s2329_s1 = inlined_call_operand.vmem [shape: f32[160,54], index: 1, kind: input, shape index: {}]   ;;  %s2330_s2 = inlined_call_operand.hbm [shape: f32[8,18], index: 2, kind: output, shape index: {}]  }
   0x1   :  { %v14_v0 = vld [vmem:[%s2329_s1 + $0x10] sm:$0x3]  ;;  %v13_v1 = vld [vmem:[%s2329_s1 + $0x8] sm:$0xff]  ;;  %v12_v2 = vld [vmem:[%s2329_s1] sm:$0xff] }
   0x2   :  { %1559 = vmatpush.msk.msra.mxu0 %vm77_vm0, %v14_v0  ;;  %v29_v3 = vld [vmem:[%s2329_s1 + $0x18] sm:$0xf]  ;;  %1602 = vmatpush.msk.msra.mxu1 %vm77_vm0, %v14_v0 }
   0x3   :  { %v1876_v4 = vperm.slane %v29_v3, 0  ;;  %v1878_v5 = vperm.slane %v29_v3, 1  ;;  %v1880_v6 = vperm.slane %v29_v3, 2  ;;  %v1882_v7 = vperm.slane %v29_v3, 3  ;;  %1603 = vmatpush.msk.msra.mxu2 %vm77_vm0, %v14_v0  ;;  %1604 = vmatpush.msk.msra.mxu3 %vm77_vm0, %v14_v0 }
   0x4   :  { %7 = vsyncpa [#allocation3], 0  ;;  %95 = vmatpush.msra.mxu0 %v13_v1  ;;  %v44_v8 = vld [vmem:[%s2328_s0] sm:$0xff]  ;;  %vm52_vm1 = vcmask 146432   ;;  %1605 = vmatpush.msra.mxu1 %v13_v1  ;;  %s1833_s19 = smov 4   ;;  %s1834_s20 = smov 124  }
   0x5   :  { %v122_v9 = vmul.f32 0.0, %v1876_v4  ;;  %v123_v10 = vmul.f32 0.0, %v1878_v5  ;;  %v125_v11 = vmul.f32 0.0, %v1880_v6  ;;  %1606 = vmatpush.msra.mxu2 %v13_v1  ;;  %1607 = vmatpush.msra.mxu3 %v13_v1  ;;  %v127_v13 = vmul.f32 0.0, %v1882_v7  ;;  %s1835_s21 = smov 8   ;;  %v45_v36 = vld [vmem:[%s2328_s0 + $0x8] sm:$0xff] }
   0x6   :  { %96 = vmatpush.msra.mxu0 %v12_v2  ;;  %1608 = vmatpush.msra.mxu1 %v12_v2  ;;  %v1836_v37 = vmov 11   ;;  %v1837_v38 = vmov 9   ;;  %v1838_v39 = vmov 8   ;;  %v39_v40 = vld [vmem:[%s2329_s1 + $0x28] sm:$0xf]  ;;  %v1839_v57 = vmov 10  }
   0x7   :  { %1560 = vmatmul.msk.f32.vlgmr.msra.gmra.mxu0 %vm52_vm1, %v44_v8  ;;  %v124_v12 = vadd.f32 %v123_v10, %v122_v9  ;;  %1609 = vmatpush.msra.mxu2 %v12_v2  ;;  %v1907_v41 = vperm.slane %v39_v40, 0  ;;  %v1909_v42 = vperm.slane %v39_v40, 1  ;;  %v1911_v43 = vperm.slane %v39_v40, 2  ;;  %v34_v59 = vld [vmem:[%s2329_s1 + $0x20] sm:$0xf]  ;;  %s1844_s22 = smov 36  }
   0x8   :  { %1610 = vmatpush.msra.mxu3 %v12_v2  ;;  %1628 = vset.pattern.permute.xlu0 %v1836_v37  ;;  %v1915_v50 = vperm.slane %v39_v40, 3  ;;  %v1933_v60 = vperm.slane %v34_v59, 1  ;;  %v1935_v61 = vperm.slane %v34_v59, 0  ;;  %v1937_v62 = vperm.slane %v34_v59, 2  ;;  %s1845_s7 = smov 92   ;;  %s1846_s15 = smov [#allocation2]  }
   0x9   :  { %v126_v14 = vadd.f32 %v125_v11, %v124_v12  ;;  %1626 = vset.pattern.permute.xlu2 %v1837_v38  ;;  %1625 = vset.pattern.permute.xlu1 %v1838_v39  ;;  %v192_v44 = vmul.f32 0.0, %v1907_v41  ;;  %v193_v45 = vmul.f32 0.0, %v1909_v42  ;;  %v195_v52 = vmul.f32 0.0, %v1911_v43  ;;  %s1548_s16 = sshll.u32 %s1846_s15, 4  ;;  %s1549_s16 = int_to_ptr.vmem [resolvable:$true] %s1548_s16 }
   0xa   :  { %v197_v55 = vmul.f32 0.0, %v1915_v50  ;;  %v1939_v0 = vperm.slane %v34_v59, 3 }
   0xb   :  { %v128_v15 = vadd.f32 %v127_v13, %v126_v14  ;;  %v194_v51 = vadd.f32 %v193_v45, %v192_v44 }
   0xd   :  { %150 = vrot.lane.b32.xlu0 %v128_v15, %s1833_s19  ;;  %v196_v54 = vadd.f32 %v195_v52, %v194_v51 }
   0xf   :  { %1561 = vmatmul.msk.f32.gmra.mxu0 %vm52_vm1, %v45_v36  ;;  %v198_v56 = vadd.f32 %v197_v55, %v196_v54 }
  0x7f   :  { %v151_v28 = vpop.permute.xlu0 %150 }
  0x84   :  { %v98_v16 = vpop.f32.mrf.mxu0 }
  0x85   :  { %v129_v17 = vadd.f32 %v128_v15, %v98_v16 }
  0x87   :  { %v1568_v18 = vmul.f32 -1.442695, %v129_v17 }
  0x89   :  { %1687 = vpow2.f32 %v1568_v18 }
  0x8c   :  { %v101_v40 = vpop.f32.mrf.mxu0 }
  0x8f   :  { %v1688_v19 = vpop.eup %1687 }
  0x90   :  { %v133_v20 = vadd.f32 1.0, %v1688_v19 }
  0x92   :  { %1689 = vrcp.f32 %v133_v20  ;;  %v145_v24 = vand.u32 2147483648, %v133_v20  ;;  %v143_v26 = vand.u32 2147483647, %v133_v20  ;;  %vm139_vm3 = vweird.f32 %v133_v20 }
  0x94   :  { %v146_v29 = vor.u32 1.1754944e-38, %v145_v24  ;;  %vm144_vm5 = vcmp.eq.f32.partialorder %v143_v26, 8.507059e+37 }
  0x98   :  { %v1690_v21 = vpop.eup %1689 }
  0x99   :  { %v135_v22 = vmul.f32 %v1690_v21, %v133_v20  ;;  %vm140_vm2 = vweird.f32 %v1690_v21 }
  0x9a   :  { %vm141_vm4 = vmor %vm139_vm3, %vm140_vm2 }
  0x9b   :  { %v136_v23 = vsub.f32 1.0, %v135_v22 }
  0x9d   :  { %v137_v25 = vmul.f32 %v1690_v21, %v136_v23 }
  0x9f   :  { %v138_v27 = vadd.f32 %v1690_v21, %v137_v25 }
  0xa1   :  { %v142_v30 = vsel %vm141_vm4, %v1690_v21, %v138_v27 }
  0xa2   :  { %v147_v31 = vsel %vm144_vm5, %v146_v29, %v142_v30 }
  0xa3   :  { %v153_v32 = vmul.f32 %v151_v28, %v147_v31  ;;  %v160_v46 = vsub.f32 1.0, %v147_v31  ;;  %v166_v48 = vmul.f32 0.0, %v147_v31 }
  0xa5   :  { %155 = vrot.lane.b32.xlu0 %v153_v32, %s1834_s20 }
 0x117   :  { %v156_v33 = vpop.permute.xlu0 %155 }
 0x118   :  { %v158_v34 = vadd.f32 %v156_v33, %v98_v16 }
 0x11a   :  { %1691 = vtanh.f32 %v158_v34 }
 0x120   :  { %v1692_v35 = vpop.eup %1691 }
 0x121   :  { %162 = vrot.lane.b32.xlu1 %v1692_v35, %s1835_s21 }
 0x193   :  { %v163_v47 = vpop.permute.xlu1 %162 }
 0x194   :  { %v165_v49 = vmul.f32 %v163_v47, %v160_v46 }
 0x196   :  { %v1918_v53 = vadd.f32 %v166_v48, %v165_v49 }
 0x198   :  { %187 = vperm.xlu0 %1628, %v1918_v53   ;;  %175 = vperm.xlu2 %1626, %v1918_v53  }
 0x199   :  { %170 = vperm.xlu1 %1625, %v1918_v53  }
 0x1a0   :  { %1627 = vset.pattern.permute.xlu2 %v1839_v57  ;;  %1630 = vset.pattern.permute.xlu0 %v1837_v38 }
 0x1a1   :  { %181 = vperm.xlu2 %1627, %v1918_v53   ;;  %220 = vrot.lane.b32.xlu1 %v198_v56, %s1833_s19 }
 0x1a2   :  { %1631 = vset.pattern.permute.xlu1 %v1839_v57 }
 0x1a9   :  { %1629 = vset.pattern.permute.xlu2 %v1838_v39 }
 0x1f2   :  { %v176_v58 = vpop.permute.xlu2 %175 }
 0x1f3   :  { %v178_v2 = vmul.f32 %v176_v58, %v1933_v60  ;;  %v239_v3 = vmul.f32 %v176_v58, %v1878_v5 }
 0x1fb   :  { %v182_v63 = vpop.permute.xlu2 %181 }
 0x1fc   :  { %v184_v11 = vmul.f32 %v182_v63, %v1937_v62  ;;  %v241_v12 = vmul.f32 %v182_v63, %v1880_v6 }
 0x20a   :  { %v188_v10 = vpop.permute.xlu0 %187 }
 0x20b   :  { %v171_v1 = vpop.permute.xlu1 %170  ;;  %v190_v15 = vmul.f32 %v188_v10, %v1939_v0  ;;  %v243_v16 = vmul.f32 %v188_v10, %v1882_v7 }
 0x20c   :  { %v173_v8 = vmul.f32 %v171_v1, %v1935_v61  ;;  %v238_v9 = vmul.f32 %v171_v1, %v1876_v4 }
 0x20e   :  { %v179_v13 = vadd.f32 %v178_v2, %v173_v8  ;;  %v240_v14 = vadd.f32 %v239_v3, %v238_v9 }
 0x210   :  { %v185_v17 = vadd.f32 %v184_v11, %v179_v13  ;;  %v242_v18 = vadd.f32 %v241_v12, %v240_v14 }
 0x212   :  { %v191_v19 = vadd.f32 %v190_v15, %v185_v17  ;;  %v244_v20 = vadd.f32 %v243_v16, %v242_v18  ;;  %v46_v18 = vld [vmem:[%s2328_s0 + $0x10] sm:$0xff] }
 0x213   :  { %v221_v33 = vpop.permute.xlu1 %220  ;;  %1562 = vmatmul.msk.f32.gmra.mxu0 %vm52_vm1, %v46_v18 }
 0x214   :  { %v199_v21 = vadd.f32 %v198_v56, %v191_v19  ;;  %266 = vrot.lane.b32.xlu2 %v244_v20, %s1833_s19  ;;  %v245_v44 = vadd.f32 %v244_v20, %v101_v40 }
 0x216   :  { %v1569_v22 = vmul.f32 -1.442695, %v199_v21  ;;  %v1570_v45 = vmul.f32 -1.442695, %v245_v44 }
 0x218   :  { %1693 = vpow2.f32 %v1569_v22 }
 0x21e   :  { %v1694_v23 = vpop.eup %1693 }
 0x21f   :  { %v203_v24 = vadd.f32 1.0, %v1694_v23 }
 0x221   :  { %1695 = vrcp.f32 %v203_v24  ;;  %v215_v28 = vand.u32 2147483648, %v203_v24  ;;  %v213_v30 = vand.u32 2147483647, %v203_v24  ;;  %vm209_vm7 = vweird.f32 %v203_v24 }
 0x222   :  { %1697 = vpow2.f32 %v1570_v45 }
 0x223   :  { %v216_v32 = vor.u32 1.1754944e-38, %v215_v28  ;;  %vm214_vm9 = vcmp.eq.f32.partialorder %v213_v30, 8.507059e+37 }
 0x227   :  { %v1696_v25 = vpop.eup %1695 }
 0x228   :  { %v205_v26 = vmul.f32 %v1696_v25, %v203_v24  ;;  %vm210_vm6 = vweird.f32 %v1696_v25  ;;  %v1698_v46 = vpop.eup %1697 }
 0x229   :  { %vm211_vm8 = vmor %vm209_vm7, %vm210_vm6  ;;  %v249_v47 = vadd.f32 1.0, %v1698_v46 }
 0x22a   :  { %v206_v27 = vsub.f32 1.0, %v205_v26 }
 0x22b   :  { %1699 = vrcp.f32 %v249_v47  ;;  %v261_v55 = vand.u32 2147483648, %v249_v47  ;;  %vm255_vm11 = vweird.f32 %v249_v47  ;;  %v259_v56 = vand.u32 2147483647, %v249_v47 }
 0x22c   :  { %v207_v29 = vmul.f32 %v1696_v25, %v206_v27 }
 0x22d   :  { %v262_v59 = vor.u32 1.1754944e-38, %v261_v55  ;;  %vm260_vm13 = vcmp.eq.f32.partialorder %v259_v56, 8.507059e+37 }
 0x22e   :  { %v208_v31 = vadd.f32 %v1696_v25, %v207_v29 }
 0x230   :  { %v212_v34 = vsel %vm211_vm8, %v1696_v25, %v208_v31 }
 0x231   :  { %v217_v35 = vsel %vm214_vm9, %v216_v32, %v212_v34  ;;  %v1700_v48 = vpop.eup %1699 }
 0x232   :  { %v223_v36 = vmul.f32 %v221_v33, %v217_v35  ;;  %v251_v49 = vmul.f32 %v1700_v48, %v249_v47  ;;  %vm256_vm10 = vweird.f32 %v1700_v48  ;;  %v230_v13 = vsub.f32 1.0, %v217_v35 }
 0x233   :  { %vm257_vm12 = vmor %vm255_vm11, %vm256_vm10  ;;  %v236_v15 = vmul.f32 0.0, %v217_v35 }
 0x234   :  { %225 = vrot.lane.b32.xlu1 %v223_v36, %s1834_s20  ;;  %v252_v51 = vsub.f32 1.0, %v251_v49 }
 0x236   :  { %v253_v52 = vmul.f32 %v1700_v48, %v252_v51 }
 0x238   :  { %v254_v54 = vadd.f32 %v1700_v48, %v253_v52 }
 0x23a   :  { %v258_v58 = vsel %vm257_vm12, %v1700_v48, %v254_v54 }
 0x23b   :  { %v263_v1 = vsel %vm260_vm13, %v262_v59, %v258_v58 }
 0x23c   :  { %v282_v21 = vmul.f32 %v263_v1, %v1918_v53 }
 0x26e   :  { %v267_v63 = vpop.permute.xlu2 %266 }
 0x26f   :  { %v269_v2 = vmul.f32 %v267_v63, %v263_v1 }
 0x271   :  { %271 = vrot.lane.b32.xlu2 %v269_v2, %s1834_s20 }
 0x2a6   :  { %v226_v3 = vpop.permute.xlu1 %225 }
 0x2a7   :  { %v228_v8 = vadd.f32 %v226_v3, %v191_v19  ;;  %v276_v19 = vsub.f32 1.0, %v263_v1 }
 0x2a9   :  { %1701 = vtanh.f32 %v228_v8 }
 0x2af   :  { %v1702_v9 = vpop.eup %1701 }
 0x2b0   :  { %232 = vrot.lane.b32.xlu0 %v1702_v9, %s1835_s21 }
 0x2cb   :  { %v272_v10 = vpop.permute.xlu2 %271 }
 0x2cc   :  { %v274_v11 = vadd.f32 %v272_v10, %v101_v40 }
 0x2ce   :  { %1703 = vtanh.f32 %v274_v11 }
 0x2d4   :  { %v1704_v12 = vpop.eup %1703 }
 0x2d5   :  { %278 = vrot.lane.b32.xlu1 %v1704_v12, %s1835_s21 }
 0x322   :  { %v233_v14 = vpop.permute.xlu0 %232 }
 0x323   :  { %v235_v16 = vmul.f32 %v233_v14, %v230_v13 }
 0x325   :  { %v1954_v17 = vadd.f32 %v236_v15, %v235_v16 }
 0x327   :  { %315 = vperm.xlu0 %1630, %v1954_v17   ;;  %310 = vperm.xlu2 %1629, %v1954_v17  }
 0x328   :  { %321 = vperm.xlu1 %1631, %v1954_v17  }
 0x32f   :  { %1632 = vset.pattern.permute.xlu2 %v1836_v37  ;;  %1635 = vset.pattern.permute.xlu0 %v1839_v57 }
 0x330   :  { %327 = vperm.xlu2 %1632, %v1954_v17   ;;  %1633 = vset.pattern.permute.xlu1 %v1838_v39 }
 0x338   :  { %1634 = vset.pattern.permute.xlu2 %v1837_v38 }
 0x347   :  { %v279_v20 = vpop.permute.xlu1 %278 }
 0x348   :  { %v281_v22 = vmul.f32 %v279_v20, %v276_v19 }
 0x34a   :  { %v1969_v23 = vadd.f32 %v282_v21, %v281_v22  ;;  %v104_v22 = vpop.f32.mrf.mxu0 }
 0x34c   :  { %297 = vperm.xlu0 %1635, %v1969_v23   ;;  %291 = vperm.xlu2 %1634, %v1969_v23  }
 0x34d   :  { %286 = vperm.xlu1 %1633, %v1969_v23  }
 0x354   :  { %1637 = vset.pattern.permute.xlu0 %v1838_v39  ;;  %1639 = vset.pattern.permute.xlu2 %v1839_v57 }
 0x355   :  { %1636 = vset.pattern.permute.xlu1 %v1836_v37 }
 0x356   :  { %303 = vperm.xlu1 %1636, %v1969_v23  }
 0x35e   :  { %1638 = vset.pattern.permute.xlu1 %v1837_v38 }
 0x381   :  { %v311_v53 = vpop.permute.xlu2 %310 }
 0x382   :  { %v313_v25 = vmul.f32 %v311_v53, %v1907_v41 }
 0x38a   :  { %v328_v28 = vpop.permute.xlu2 %327 }
 0x38b   :  { %v330_v31 = vmul.f32 %v328_v28, %v1915_v50 }
 0x399   :  { %v316_v24 = vpop.permute.xlu0 %315 }
 0x39a   :  { %v318_v26 = vmul.f32 %v316_v24, %v1909_v42  ;;  %v322_v27 = vpop.permute.xlu1 %321 }
 0x39b   :  { %v324_v30 = vmul.f32 %v322_v27, %v1911_v43 }
 0x39c   :  { %v319_v29 = vadd.f32 %v318_v26, %v313_v25 }
 0x39e   :  { %v325_v32 = vadd.f32 %v324_v30, %v319_v29 }
 0x3a0   :  { %v331_v33 = vadd.f32 %v330_v31, %v325_v32 }
 0x3a2   :  { %353 = vrot.lane.b32.xlu2 %v331_v33, %s1833_s19 }
 0x3a6   :  { %v292_v35 = vpop.permute.xlu2 %291 }
 0x3a7   :  { %v294_v44 = vmul.f32 %v292_v35, %v1933_v60  ;;  %v372_v45 = vmul.f32 %v292_v35, %v1878_v5 }
 0x3be   :  { %v298_v46 = vpop.permute.xlu0 %297 }
 0x3bf   :  { %v287_v34 = vpop.permute.xlu1 %286  ;;  %v300_v49 = vmul.f32 %v298_v46, %v1937_v62  ;;  %v374_v51 = vmul.f32 %v298_v46, %v1880_v6 }
 0x3c0   :  { %v289_v36 = vmul.f32 %v287_v34, %v1935_v61  ;;  %v371_v40 = vmul.f32 %v287_v34, %v1876_v4 }
 0x3c2   :  { %v295_v47 = vadd.f32 %v294_v44, %v289_v36  ;;  %v373_v48 = vadd.f32 %v372_v45, %v371_v40 }
 0x3c4   :  { %v301_v54 = vadd.f32 %v300_v49, %v295_v47  ;;  %v375_v58 = vadd.f32 %v374_v51, %v373_v48 }
 0x3c8   :  { %v304_v52 = vpop.permute.xlu1 %303 }
 0x3c9   :  { %v306_v55 = vmul.f32 %v304_v52, %v1939_v0  ;;  %v376_v56 = vmul.f32 %v304_v52, %v1882_v7 }
 0x3cb   :  { %v307_v59 = vadd.f32 %v306_v55, %v301_v54  ;;  %v377_v63 = vadd.f32 %v376_v56, %v375_v58 }
 0x3cd   :  { %v332_v1 = vadd.f32 %v331_v33, %v307_v59  ;;  %399 = vrot.lane.b32.xlu1 %v377_v63, %s1833_s19  ;;  %v378_v53 = vadd.f32 %v377_v63, %v104_v22 }
 0x3cf   :  { %v1571_v2 = vmul.f32 -1.442695, %v332_v1  ;;  %v1572_v24 = vmul.f32 -1.442695, %v378_v53 }
 0x3d1   :  { %1705 = vpow2.f32 %v1571_v2 }
 0x3d7   :  { %v1706_v3 = vpop.eup %1705 }
 0x3d8   :  { %v336_v8 = vadd.f32 1.0, %v1706_v3 }
 0x3da   :  { %1707 = vrcp.f32 %v336_v8  ;;  %v348_v14 = vand.u32 2147483648, %v336_v8  ;;  %vm342_vm15 = vweird.f32 %v336_v8  ;;  %v346_v15 = vand.u32 2147483647, %v336_v8 }
 0x3db   :  { %1709 = vpow2.f32 %v1572_v24 }
 0x3dc   :  { %v349_v18 = vor.u32 1.1754944e-38, %v348_v14  ;;  %vm347_vm3 = vcmp.eq.f32.partialorder %v346_v15, 8.507059e+37 }
 0x3e0   :  { %v1708_v9 = vpop.eup %1707 }
 0x3e1   :  { %v338_v10 = vmul.f32 %v1708_v9, %v336_v8  ;;  %vm343_vm14 = vweird.f32 %v1708_v9  ;;  %v1710_v25 = vpop.eup %1709 }
 0x3e2   :  { %vm344_vm2 = vmor %vm342_vm15, %vm343_vm14  ;;  %v382_v26 = vadd.f32 1.0, %v1710_v25 }
 0x3e3   :  { %v339_v11 = vsub.f32 1.0, %v338_v10 }
 0x3e4   :  { %1711 = vrcp.f32 %v382_v26  ;;  %v394_v32 = vand.u32 2147483648, %v382_v26  ;;  %vm388_vm5 = vweird.f32 %v382_v26  ;;  %v392_v33 = vand.u32 2147483647, %v382_v26 }
 0x3e5   :  { %v340_v12 = vmul.f32 %v1708_v9, %v339_v11 }
 0x3e6   :  { %v395_v35 = vor.u32 1.1754944e-38, %v394_v32  ;;  %vm393_vm7 = vcmp.eq.f32.partialorder %v392_v33, 8.507059e+37 }
 0x3e7   :  { %v341_v13 = vadd.f32 %v1708_v9, %v340_v12 }
 0x3e9   :  { %v345_v16 = vsel %vm344_vm2, %v1708_v9, %v341_v13 }
 0x3ea   :  { %v350_v19 = vsel %vm347_vm3, %v349_v18, %v345_v16  ;;  %v1712_v27 = vpop.eup %1711 }
 0x3eb   :  { %v384_v28 = vmul.f32 %v1712_v27, %v382_v26  ;;  %vm389_vm4 = vweird.f32 %v1712_v27  ;;  %v363_v52 = vsub.f32 1.0, %v350_v19  ;;  %v369_v55 = vmul.f32 %v350_v19, %v1954_v17  ;;  %v47_v17 = vld [vmem:[%s2328_s0 + $0x18] sm:$0xff] }
 0x3ec   :  { %vm390_vm6 = vmor %vm388_vm5, %vm389_vm4  ;;  %1563 = vmatmul.msk.f32.gmra.mxu0 %vm52_vm1, %v47_v17 }
 0x3ed   :  { %v385_v29 = vsub.f32 1.0, %v384_v28 }
 0x3ef   :  { %v386_v30 = vmul.f32 %v1712_v27, %v385_v29 }
 0x3f1   :  { %v387_v31 = vadd.f32 %v1712_v27, %v386_v30 }
 0x3f3   :  { %v391_v34 = vsel %vm390_vm6, %v1712_v27, %v387_v31 }
 0x3f4   :  { %v396_v40 = vsel %vm393_vm7, %v395_v35, %v391_v34 }
 0x3f5   :  { %v415_v1 = vmul.f32 %v396_v40, %v1969_v23 }
 0x3fc   :  { %v354_v20 = vpop.permute.xlu2 %353 }
 0x3fd   :  { %v356_v21 = vmul.f32 %v354_v20, %v350_v19 }
 0x3ff   :  { %358 = vrot.lane.b32.xlu2 %v356_v21, %s1834_s20 }
 0x43f   :  { %v400_v36 = vpop.permute.xlu1 %399 }
 0x440   :  { %v402_v44 = vmul.f32 %v400_v36, %v396_v40 }
 0x442   :  { %404 = vrot.lane.b32.xlu0 %v402_v44, %s1834_s20 }
 0x459   :  { %v359_v45 = vpop.permute.xlu2 %358 }
 0x45a   :  { %v361_v46 = vadd.f32 %v359_v45, %v307_v59  ;;  %v409_v59 = vsub.f32 1.0, %v396_v40 }
 0x45c   :  { %1713 = vtanh.f32 %v361_v46 }
 0x462   :  { %v1714_v47 = vpop.eup %1713 }
 0x463   :  { %365 = vrot.lane.b32.xlu1 %v1714_v47, %s1835_s21 }
 0x4b4   :  { %v405_v48 = vpop.permute.xlu0 %404 }
 0x4b5   :  { %v407_v49 = vadd.f32 %v405_v48, %v104_v22 }
 0x4b7   :  { %1715 = vtanh.f32 %v407_v49 }
 0x4bd   :  { %v1716_v51 = vpop.eup %1715 }
 0x4be   :  { %411 = vrot.lane.b32.xlu2 %v1716_v51, %s1835_s21  ;;  %v107_v51 = vpop.f32.mrf.mxu0 }
 0x4d5   :  { %v366_v54 = vpop.permute.xlu1 %365 }
 0x4d6   :  { %v368_v56 = vmul.f32 %v366_v54, %v363_v52 }
 0x4d8   :  { %v1998_v58 = vadd.f32 %v369_v55, %v368_v56 }
 0x4da   :  { %448 = vperm.xlu1 %1638, %v1998_v58   ;;  %443 = vperm.xlu0 %1637, %v1998_v58  }
 0x4db   :  { %454 = vperm.xlu2 %1639, %v1998_v58  }
 0x4e2   :  { %1640 = vset.pattern.permute.xlu1 %v1836_v37  ;;  %1642 = vset.pattern.permute.xlu0 %v1837_v38 }
 0x4e3   :  { %460 = vperm.xlu1 %1640, %v1998_v58   ;;  %1641 = vset.pattern.permute.xlu2 %v1838_v39 }
 0x4eb   :  { %1643 = vset.pattern.permute.xlu1 %v1839_v57 }
 0x518   :  { %v412_v63 = vpop.permute.xlu2 %411 }
 0x519   :  { %v414_v2 = vmul.f32 %v412_v63, %v409_v59 }
 0x51b   :  { %v2013_v3 = vadd.f32 %v415_v1, %v414_v2 }
 0x51d   :  { %430 = vperm.xlu1 %1643, %v2013_v3   ;;  %424 = vperm.xlu0 %1642, %v2013_v3  }
 0x51e   :  { %419 = vperm.xlu2 %1641, %v2013_v3  }
 0x525   :  { %1645 = vset.pattern.permute.xlu1 %v1838_v39  ;;  %1647 = vset.pattern.permute.xlu0 %v1839_v57 }
 0x526   :  { %1644 = vset.pattern.permute.xlu2 %v1836_v37 }
 0x527   :  { %436 = vperm.xlu2 %1644, %v2013_v3  }
 0x52f   :  { %1646 = vset.pattern.permute.xlu2 %v1837_v38 }
 0x535   :  { %v455_v11 = vpop.permute.xlu2 %454 }
 0x536   :  { %v457_v13 = vmul.f32 %v455_v11, %v1911_v43 }
 0x54c   :  { %v449_v23 = vpop.permute.xlu1 %448  ;;  %v444_v8 = vpop.permute.xlu0 %443 }
 0x54d   :  { %v451_v9 = vmul.f32 %v449_v23, %v1909_v42  ;;  %v446_v10 = vmul.f32 %v444_v8, %v1907_v41 }
 0x54f   :  { %v452_v12 = vadd.f32 %v451_v9, %v446_v10 }
 0x551   :  { %v458_v15 = vadd.f32 %v457_v13, %v452_v12 }
 0x555   :  { %v461_v14 = vpop.permute.xlu1 %460 }
 0x556   :  { %v463_v16 = vmul.f32 %v461_v14, %v1915_v50 }
 0x558   :  { %v464_v18 = vadd.f32 %v463_v16, %v458_v15 }
 0x55a   :  { %486 = vrot.lane.b32.xlu1 %v464_v18, %s1833_s19 }
 0x578   :  { %v420_v19 = vpop.permute.xlu2 %419 }
 0x579   :  { %v422_v22 = vmul.f32 %v420_v19, %v1935_v61  ;;  %v504_v53 = vmul.f32 %v420_v19, %v1876_v4 }
 0x581   :  { %v437_v26 = vpop.permute.xlu2 %436 }
 0x582   :  { %v509_v31 = vmul.f32 %v437_v26, %v1882_v7  ;;  %v439_v34 = vmul.f32 %v437_v26, %v1939_v0 }
 0x58f   :  { %v431_v20 = vpop.permute.xlu1 %430  ;;  %v425_v21 = vpop.permute.xlu0 %424 }
 0x590   :  { %v427_v24 = vmul.f32 %v425_v21, %v1933_v60  ;;  %v505_v25 = vmul.f32 %v425_v21, %v1878_v5  ;;  %v433_v27 = vmul.f32 %v431_v20, %v1937_v62  ;;  %v507_v28 = vmul.f32 %v431_v20, %v1880_v6 }
 0x592   :  { %v428_v29 = vadd.f32 %v427_v24, %v422_v22  ;;  %v506_v30 = vadd.f32 %v505_v25, %v504_v53 }
 0x594   :  { %v434_v32 = vadd.f32 %v433_v27, %v428_v29  ;;  %v508_v33 = vadd.f32 %v507_v28, %v506_v30 }
 0x596   :  { %v510_v35 = vadd.f32 %v509_v31, %v508_v33  ;;  %v440_v36 = vadd.f32 %v439_v34, %v434_v32 }
 0x598   :  { %532 = vrot.lane.b32.xlu2 %v510_v35, %s1833_s19  ;;  %v465_v40 = vadd.f32 %v464_v18, %v440_v36  ;;  %v511_v52 = vadd.f32 %v510_v35, %v107_v51 }
 0x59a   :  { %v1573_v44 = vmul.f32 -1.442695, %v465_v40  ;;  %v1574_v55 = vmul.f32 -1.442695, %v511_v52 }
 0x59c   :  { %1717 = vpow2.f32 %v1573_v44 }
 0x5a2   :  { %v1718_v45 = vpop.eup %1717 }
 0x5a3   :  { %v469_v46 = vadd.f32 1.0, %v1718_v45 }
 0x5a5   :  { %1719 = vrcp.f32 %v469_v46  ;;  %v481_v17 = vand.u32 2147483648, %v469_v46  ;;  %vm475_vm9 = vweird.f32 %v469_v46  ;;  %v479_v59 = vand.u32 2147483647, %v469_v46 }
 0x5a6   :  { %1721 = vpow2.f32 %v1574_v55 }
 0x5a7   :  { %v482_v1 = vor.u32 1.1754944e-38, %v481_v17  ;;  %vm480_vm11 = vcmp.eq.f32.partialorder %v479_v59, 8.507059e+37 }
 0x5ab   :  { %v1720_v47 = vpop.eup %1719 }
 0x5ac   :  { %v471_v48 = vmul.f32 %v1720_v47, %v469_v46  ;;  %vm476_vm8 = vweird.f32 %v1720_v47  ;;  %v1722_v9 = vpop.eup %1721 }
 0x5ad   :  { %vm477_vm10 = vmor %vm475_vm9, %vm476_vm8  ;;  %v515_v10 = vadd.f32 1.0, %v1722_v9 }
 0x5ae   :  { %v472_v49 = vsub.f32 1.0, %v471_v48 }
 0x5af   :  { %1723 = vrcp.f32 %v515_v10  ;;  %v527_v16 = vand.u32 2147483648, %v515_v10  ;;  %vm521_vm13 = vweird.f32 %v515_v10  ;;  %v525_v18 = vand.u32 2147483647, %v515_v10 }
 0x5b0   :  { %v473_v54 = vmul.f32 %v1720_v47, %v472_v49 }
 0x5b1   :  { %v528_v20 = vor.u32 1.1754944e-38, %v527_v16  ;;  %vm526_vm15 = vcmp.eq.f32.partialorder %v525_v18, 8.507059e+37 }
 0x5b2   :  { %v474_v56 = vadd.f32 %v1720_v47, %v473_v54 }
 0x5b4   :  { %v478_v63 = vsel %vm477_vm10, %v1720_v47, %v474_v56 }
 0x5b5   :  { %v483_v23 = vsel %vm480_vm11, %v482_v1, %v478_v63  ;;  %v1724_v11 = vpop.eup %1723 }
 0x5b6   :  { %v517_v12 = vmul.f32 %v1724_v11, %v515_v10  ;;  %vm522_vm12 = vweird.f32 %v1724_v11  ;;  %v496_v30 = vsub.f32 1.0, %v483_v23  ;;  %v502_v32 = vmul.f32 %v483_v23, %v1998_v58  ;;  %v48_v58 = vld [vmem:[%s2328_s0 + $0x20] sm:$0xff] }
 0x5b7   :  { %vm523_vm14 = vmor %vm521_vm13, %vm522_vm12  ;;  %1564 = vmatmul.msk.f32.vlgmr.msra.gmra.mxu1 %vm52_vm1, %v48_v58 }
 0x5b8   :  { %v518_v13 = vsub.f32 1.0, %v517_v12 }
 0x5ba   :  { %v519_v14 = vmul.f32 %v1724_v11, %v518_v13 }
 0x5bc   :  { %v520_v15 = vadd.f32 %v1724_v11, %v519_v14 }
 0x5be   :  { %v524_v19 = vsel %vm523_vm14, %v1724_v11, %v520_v15 }
 0x5bf   :  { %v529_v22 = vsel %vm526_vm15, %v528_v20, %v524_v19 }
 0x5c0   :  { %v542_v35 = vsub.f32 1.0, %v529_v22  ;;  %v548_v40 = vmul.f32 %v529_v22, %v2013_v3 }
 0x5cc   :  { %v487_v2 = vpop.permute.xlu1 %486 }
 0x5cd   :  { %v489_v8 = vmul.f32 %v487_v2, %v483_v23 }
 0x5cf   :  { %491 = vrot.lane.b32.xlu0 %v489_v8, %s1834_s20 }
 0x5f2   :  { %v533_v21 = vpop.permute.xlu2 %532 }
 0x5f3   :  { %v535_v53 = vmul.f32 %v533_v21, %v529_v22 }
 0x5f5   :  { %537 = vrot.lane.b32.xlu1 %v535_v53, %s1834_s20 }
 0x641   :  { %v492_v24 = vpop.permute.xlu0 %491 }
 0x642   :  { %v494_v25 = vadd.f32 %v492_v24, %v440_v36 }
 0x644   :  { %1725 = vtanh.f32 %v494_v25 }
 0x64a   :  { %v1726_v26 = vpop.eup %1725 }
 0x64b   :  { %498 = vrot.lane.b32.xlu2 %v1726_v26, %s1835_s21 }
 0x667   :  { %v538_v27 = vpop.permute.xlu1 %537 }
 0x668   :  { %v540_v28 = vadd.f32 %v538_v27, %v107_v51  ;;  %v110_v27 = vpop.f32.mrf.mxu1 }
 0x66a   :  { %1727 = vtanh.f32 %v540_v28 }
 0x670   :  { %v1728_v29 = vpop.eup %1727 }
 0x671   :  { %544 = vrot.lane.b32.xlu0 %v1728_v29, %s1835_s21 }
 0x6a5   :  { %v499_v31 = vpop.permute.xlu2 %498 }
 0x6a6   :  { %v501_v33 = vmul.f32 %v499_v31, %v496_v30 }
 0x6a8   :  { %v2042_v34 = vadd.f32 %v502_v32, %v501_v33 }
 0x6aa   :  { %581 = vperm.xlu2 %1646, %v2042_v34   ;;  %576 = vperm.xlu1 %1645, %v2042_v34  }
 0x6ab   :  { %587 = vperm.xlu0 %1647, %v2042_v34  }
 0x6b2   :  { %1648 = vset.pattern.permute.xlu1 %v1836_v37  ;;  %1649 = vset.pattern.permute.xlu2 %v1838_v39 }
 0x6b3   :  { %593 = vperm.xlu1 %1648, %v2042_v34   ;;  %1652 = vset.pattern.permute.xlu0 %v1836_v37 }
 0x6bb   :  { %1650 = vset.pattern.permute.xlu1 %v1837_v38 }
 0x6e3   :  { %v545_v36 = vpop.permute.xlu0 %544 }
 0x6e4   :  { %v547_v44 = vmul.f32 %v545_v36, %v542_v35 }
 0x6e6   :  { %v2057_v45 = vadd.f32 %v548_v40, %v547_v44 }
 0x6e8   :  { %569 = vperm.xlu0 %1652, %v2057_v45   ;;  %557 = vperm.xlu1 %1650, %v2057_v45  }
 0x6e9   :  { %552 = vperm.xlu2 %1649, %v2057_v45  }
 0x6f0   :  { %1654 = vset.pattern.permute.xlu0 %v1837_v38  ;;  %1655 = vset.pattern.permute.xlu1 %v1839_v57 }
 0x6f1   :  { %1651 = vset.pattern.permute.xlu2 %v1839_v57 }
 0x6f2   :  { %563 = vperm.xlu2 %1651, %v2057_v45  }
 0x6fa   :  { %1653 = vset.pattern.permute.xlu2 %v1838_v39 }
 0x704   :  { %v582_v46 = vpop.permute.xlu2 %581 }
 0x705   :  { %v584_v48 = vmul.f32 %v582_v46, %v1909_v42 }
 0x71c   :  { %v577_v3 = vpop.permute.xlu1 %576 }
 0x71d   :  { %v579_v47 = vmul.f32 %v577_v3, %v1907_v41  ;;  %v588_v49 = vpop.permute.xlu0 %587 }
 0x71e   :  { %v590_v52 = vmul.f32 %v588_v49, %v1911_v43 }
 0x71f   :  { %v585_v51 = vadd.f32 %v584_v48, %v579_v47 }
 0x721   :  { %v591_v55 = vadd.f32 %v590_v52, %v585_v51 }
 0x725   :  { %v594_v54 = vpop.permute.xlu1 %593 }
 0x726   :  { %v596_v56 = vmul.f32 %v594_v54, %v1915_v50 }
 0x728   :  { %v597_v17 = vadd.f32 %v596_v56, %v591_v55 }
 0x72a   :  { %619 = vrot.lane.b32.xlu1 %v597_v17, %s1833_s19 }
 0x743   :  { %v553_v59 = vpop.permute.xlu2 %552 }
 0x744   :  { %v637_v2 = vmul.f32 %v553_v59, %v1876_v4  ;;  %v555_v10 = vmul.f32 %v553_v59, %v1935_v61 }
 0x74c   :  { %v564_v63 = vpop.permute.xlu2 %563 }
 0x74d   :  { %v640_v11 = vmul.f32 %v564_v63, %v1880_v6  ;;  %v566_v16 = vmul.f32 %v564_v63, %v1937_v62 }
 0x75a   :  { %v558_v1 = vpop.permute.xlu1 %557  ;;  %v570_v9 = vpop.permute.xlu0 %569 }
 0x75b   :  { %v560_v23 = vmul.f32 %v558_v1, %v1933_v60  ;;  %v638_v8 = vmul.f32 %v558_v1, %v1878_v5  ;;  %v642_v13 = vmul.f32 %v570_v9, %v1882_v7  ;;  %v572_v20 = vmul.f32 %v570_v9, %v1939_v0 }
 0x75d   :  { %v639_v12 = vadd.f32 %v638_v8, %v637_v2  ;;  %v561_v14 = vadd.f32 %v560_v23, %v555_v10 }
 0x75f   :  { %v641_v15 = vadd.f32 %v640_v11, %v639_v12  ;;  %v567_v19 = vadd.f32 %v566_v16, %v561_v14  ;;  %v49_v14 = vld [vmem:[%s2328_s0 + $0x28] sm:$0xff] }
 0x760   :  { %1565 = vmatmul.msk.f32.vlgmr.msra.gmra.mxu2 %vm52_vm1, %v49_v14 }
 0x761   :  { %v643_v18 = vadd.f32 %v642_v13, %v641_v15  ;;  %v573_v21 = vadd.f32 %v572_v20, %v567_v19 }
 0x763   :  { %665 = vrot.lane.b32.xlu2 %v643_v18, %s1833_s19  ;;  %v598_v22 = vadd.f32 %v597_v17, %v573_v21  ;;  %v644_v29 = vadd.f32 %v643_v18, %v110_v27 }
 0x765   :  { %v1575_v53 = vmul.f32 -1.442695, %v598_v22  ;;  %v1576_v31 = vmul.f32 -1.442695, %v644_v29 }
 0x767   :  { %1729 = vpow2.f32 %v1575_v53 }
 0x76d   :  { %v1730_v24 = vpop.eup %1729 }
 0x76e   :  { %v602_v25 = vadd.f32 1.0, %v1730_v24 }
 0x770   :  { %1731 = vrcp.f32 %v602_v25  ;;  %v614_v58 = vand.u32 2147483648, %v602_v25  ;;  %vm608_vm3 = vweird.f32 %v602_v25  ;;  %v612_v35 = vand.u32 2147483647, %v602_v25 }
 0x771   :  { %1733 = vpow2.f32 %v1576_v31 }
 0x772   :  { %v615_v44 = vor.u32 1.1754944e-38, %v614_v58  ;;  %vm613_vm5 = vcmp.eq.f32.partialorder %v612_v35, 8.507059e+37 }
 0x776   :  { %v1732_v26 = vpop.eup %1731 }
 0x777   :  { %v604_v28 = vmul.f32 %v1732_v26, %v602_v25  ;;  %vm609_vm2 = vweird.f32 %v1732_v26  ;;  %v1734_v40 = vpop.eup %1733 }
 0x778   :  { %vm610_vm4 = vmor %vm608_vm3, %vm609_vm2  ;;  %v648_v47 = vadd.f32 1.0, %v1734_v40 }
 0x779   :  { %v605_v30 = vsub.f32 1.0, %v604_v28 }
 0x77a   :  { %1735 = vrcp.f32 %v648_v47  ;;  %v660_v56 = vand.u32 2147483648, %v648_v47  ;;  %vm654_vm7 = vweird.f32 %v648_v47  ;;  %v658_v17 = vand.u32 2147483647, %v648_v47 }
 0x77b   :  { %v606_v32 = vmul.f32 %v1732_v26, %v605_v30 }
 0x77c   :  { %v661_v63 = vor.u32 1.1754944e-38, %v660_v56  ;;  %vm659_vm9 = vcmp.eq.f32.partialorder %v658_v17, 8.507059e+37 }
 0x77d   :  { %v607_v33 = vadd.f32 %v1732_v26, %v606_v32 }
 0x77f   :  { %v611_v36 = vsel %vm610_vm4, %v1732_v26, %v607_v33 }
 0x780   :  { %v616_v3 = vsel %vm613_vm5, %v615_v44, %v611_v36  ;;  %v1736_v49 = vpop.eup %1735 }
 0x781   :  { %v650_v51 = vmul.f32 %v1736_v49, %v648_v47  ;;  %vm655_vm6 = vweird.f32 %v1736_v49  ;;  %v629_v15 = vsub.f32 1.0, %v616_v3  ;;  %v635_v18 = vmul.f32 %v616_v3, %v2042_v34 }
 0x782   :  { %vm656_vm8 = vmor %vm654_vm7, %vm655_vm6 }
 0x783   :  { %v651_v52 = vsub.f32 1.0, %v650_v51 }
 0x785   :  { %v652_v54 = vmul.f32 %v1736_v49, %v651_v52 }
 0x787   :  { %v653_v55 = vadd.f32 %v1736_v49, %v652_v54 }
 0x789   :  { %v657_v59 = vsel %vm656_vm8, %v1736_v49, %v653_v55 }
 0x78a   :  { %v662_v2 = vsel %vm659_vm9, %v661_v63, %v657_v59 }
 0x78b   :  { %v681_v53 = vmul.f32 %v662_v2, %v2057_v45 }
 0x79c   :  { %v620_v46 = vpop.permute.xlu1 %619 }
 0x79d   :  { %v622_v48 = vmul.f32 %v620_v46, %v616_v3 }
 0x79f   :  { %624 = vrot.lane.b32.xlu1 %v622_v48, %s1834_s20 }
 0x7bd   :  { %v666_v1 = vpop.permute.xlu2 %665 }
 0x7be   :  { %v668_v23 = vmul.f32 %v666_v1, %v662_v2 }
 0x7c0   :  { %670 = vrot.lane.b32.xlu2 %v668_v23, %s1834_s20 }
 0x811   :  { %v625_v8 = vpop.permute.xlu1 %624 }
 0x812   :  { %v627_v9 = vadd.f32 %v625_v8, %v573_v21  ;;  %v675_v21 = vsub.f32 1.0, %v662_v2 }
 0x814   :  { %1737 = vtanh.f32 %v627_v9 }
 0x81a   :  { %v1738_v10 = vpop.eup %1737  ;;  %v671_v11 = vpop.permute.xlu2 %670 }
 0x81b   :  { %v673_v12 = vadd.f32 %v671_v11, %v110_v27  ;;  %631 = vrot.lane.b32.xlu0 %v1738_v10, %s1835_s21 }
 0x81d   :  { %1739 = vtanh.f32 %v673_v12 }
 0x823   :  { %v1740_v13 = vpop.eup %1739 }
 0x824   :  { %677 = vrot.lane.b32.xlu1 %v1740_v13, %s1835_s21  ;;  %v113_v13 = vpop.f32.mrf.mxu2 }
 0x88d   :  { %v632_v16 = vpop.permute.xlu0 %631 }
 0x88e   :  { %v634_v19 = vmul.f32 %v632_v16, %v629_v15 }
 0x890   :  { %v2090_v20 = vadd.f32 %v635_v18, %v634_v19 }
 0x892   :  { %720 = vperm.xlu1 %1655, %v2090_v20   ;;  %714 = vperm.xlu0 %1654, %v2090_v20  }
 0x893   :  { %709 = vperm.xlu2 %1653, %v2090_v20  }
 0x896   :  { %v678_v22 = vpop.permute.xlu1 %677 }
 0x897   :  { %v680_v24 = vmul.f32 %v678_v22, %v675_v21 }
 0x899   :  { %v2096_v25 = vadd.f32 %v681_v53, %v680_v24 }
 0x89a   :  { %1657 = vset.pattern.permute.xlu1 %v1838_v39  ;;  %1659 = vset.pattern.permute.xlu0 %v1839_v57 }
 0x89b   :  { %1656 = vset.pattern.permute.xlu2 %v1836_v37  ;;  %696 = vperm.xlu0 %1659, %v2096_v25  }
 0x89c   :  { %726 = vperm.xlu2 %1656, %v2090_v20   ;;  %685 = vperm.xlu1 %1657, %v2096_v25  }
 0x8a3   :  { %1661 = vset.pattern.permute.xlu0 %v1838_v39 }
 0x8a4   :  { %1658 = vset.pattern.permute.xlu2 %v1837_v38  ;;  %1660 = vset.pattern.permute.xlu1 %v1836_v37 }
 0x8a5   :  { %690 = vperm.xlu2 %1658, %v2096_v25   ;;  %702 = vperm.xlu1 %1660, %v2096_v25  }
 0x8ad   :  { %1663 = vset.pattern.permute.xlu2 %v1839_v57  ;;  %1662 = vset.pattern.permute.xlu1 %v1837_v38 }
 0x8ed   :  { %v710_v34 = vpop.permute.xlu2 %709 }
 0x8ee   :  { %v712_v27 = vmul.f32 %v710_v34, %v1907_v41 }
 0x8f6   :  { %v727_v28 = vpop.permute.xlu2 %726 }
 0x8f7   :  { %v729_v32 = vmul.f32 %v727_v28, %v1915_v50 }
 0x8ff   :  { %v691_v36 = vpop.permute.xlu2 %690 }
 0x900   :  { %v771_v44 = vmul.f32 %v691_v36, %v1878_v5  ;;  %v693_v55 = vmul.f32 %v691_v36, %v1933_v60 }
 0x904   :  { %v715_v45 = vpop.permute.xlu0 %714  ;;  %v721_v26 = vpop.permute.xlu1 %720 }
 0x905   :  { %v717_v29 = vmul.f32 %v715_v45, %v1909_v42  ;;  %v723_v31 = vmul.f32 %v721_v26, %v1911_v43 }
 0x907   :  { %v718_v30 = vadd.f32 %v717_v29, %v712_v27 }
 0x909   :  { %v724_v33 = vadd.f32 %v723_v31, %v718_v30 }
 0x90b   :  { %v730_v58 = vadd.f32 %v729_v32, %v724_v33 }
 0x90d   :  { %752 = vrot.lane.b32.xlu2 %v730_v58, %s1833_s19  ;;  %v697_v3 = vpop.permute.xlu0 %696 }
 0x90e   :  { %v686_v35 = vpop.permute.xlu1 %685  ;;  %v773_v47 = vmul.f32 %v697_v3, %v1880_v6  ;;  %v699_v17 = vmul.f32 %v697_v3, %v1937_v62 }
 0x90f   :  { %v770_v40 = vmul.f32 %v686_v35, %v1876_v4  ;;  %v688_v54 = vmul.f32 %v686_v35, %v1935_v61 }
 0x911   :  { %v772_v46 = vadd.f32 %v771_v44, %v770_v40  ;;  %v694_v56 = vadd.f32 %v693_v55, %v688_v54  ;;  %v50_v54 = vld [vmem:[%s2328_s0 + $0x30] sm:$0xff] }
 0x912   :  { %1566 = vmatmul.msk.f32.vlgmr.msra.gmra.mxu3 %vm52_vm1, %v50_v54 }
 0x913   :  { %v774_v51 = vadd.f32 %v773_v47, %v772_v46  ;;  %v700_v63 = vadd.f32 %v699_v17, %v694_v56 }
 0x917   :  { %v703_v48 = vpop.permute.xlu1 %702 }
 0x918   :  { %v775_v49 = vmul.f32 %v703_v48, %v1882_v7  ;;  %v705_v59 = vmul.f32 %v703_v48, %v1939_v0 }
 0x91a   :  { %v776_v52 = vadd.f32 %v775_v49, %v774_v51  ;;  %v706_v1 = vadd.f32 %v705_v59, %v700_v63 }
 0x91c   :  { %798 = vrot.lane.b32.xlu1 %v776_v52, %s1833_s19  ;;  %v731_v2 = vadd.f32 %v730_v58, %v706_v1  ;;  %v777_v15 = vadd.f32 %v776_v52, %v113_v13 }
 0x91e   :  { %v1577_v23 = vmul.f32 -1.442695, %v731_v2  ;;  %v1578_v18 = vmul.f32 -1.442695, %v777_v15 }
 0x920   :  { %1741 = vpow2.f32 %v1577_v23 }
 0x926   :  { %v1742_v8 = vpop.eup %1741 }
 0x927   :  { %v735_v9 = vadd.f32 1.0, %v1742_v8 }
 0x929   :  { %1743 = vrcp.f32 %v735_v9  ;;  %v747_v19 = vand.u32 2147483648, %v735_v9  ;;  %vm741_vm11 = vweird.f32 %v735_v9  ;;  %v745_v21 = vand.u32 2147483647, %v735_v9 }
 0x92a   :  { %1745 = vpow2.f32 %v1578_v18 }
 0x92b   :  { %v748_v53 = vor.u32 1.1754944e-38, %v747_v19  ;;  %vm746_vm13 = vcmp.eq.f32.partialorder %v745_v21, 8.507059e+37 }
 0x92f   :  { %v1744_v10 = vpop.eup %1743 }
 0x930   :  { %v737_v11 = vmul.f32 %v1744_v10, %v735_v9  ;;  %vm742_vm10 = vweird.f32 %v1744_v10  ;;  %v1746_v26 = vpop.eup %1745 }
 0x931   :  { %vm743_vm12 = vmor %vm741_vm11, %vm742_vm10  ;;  %v781_v27 = vadd.f32 1.0, %v1746_v26 }
 0x932   :  { %v738_v12 = vsub.f32 1.0, %v737_v11 }
 0x933   :  { %1747 = vrcp.f32 %v781_v27  ;;  %v793_v33 = vand.u32 2147483648, %v781_v27  ;;  %vm787_vm15 = vweird.f32 %v781_v27  ;;  %v791_v58 = vand.u32 2147483647, %v781_v27 }
 0x934   :  { %v739_v14 = vmul.f32 %v1744_v10, %v738_v12 }
 0x935   :  { %v794_v36 = vor.u32 1.1754944e-38, %v793_v33  ;;  %vm792_vm3 = vcmp.eq.f32.partialorder %v791_v58, 8.507059e+37 }
 0x936   :  { %v740_v16 = vadd.f32 %v1744_v10, %v739_v14 }
 0x938   :  { %v744_v22 = vsel %vm743_vm12, %v1744_v10, %v740_v16 }
 0x939   :  { %v749_v34 = vsel %vm746_vm13, %v748_v53, %v744_v22  ;;  %v1748_v28 = vpop.eup %1747 }
 0x93a   :  { %v783_v29 = vmul.f32 %v1748_v28, %v781_v27  ;;  %vm788_vm14 = vweird.f32 %v1748_v28  ;;  %v762_v55 = vsub.f32 1.0, %v749_v34  ;;  %v768_v17 = vmul.f32 %v749_v34, %v2090_v20 }
 0x93b   :  { %vm789_vm2 = vmor %vm787_vm15, %vm788_vm14 }
 0x93c   :  { %v784_v30 = vsub.f32 1.0, %v783_v29 }
 0x93e   :  { %v785_v31 = vmul.f32 %v1748_v28, %v784_v30 }
 0x940   :  { %v786_v32 = vadd.f32 %v1748_v28, %v785_v31 }
 0x942   :  { %v790_v35 = vsel %vm789_vm2, %v1748_v28, %v786_v32 }
 0x943   :  { %v795_v44 = vsel %vm792_vm3, %v794_v36, %v790_v35 }
 0x944   :  { %v808_v20 = vsub.f32 1.0, %v795_v44  ;;  %v814_v2 = vmul.f32 %v795_v44, %v2096_v25 }
 0x967   :  { %v753_v24 = vpop.permute.xlu2 %752 }
 0x968   :  { %v755_v45 = vmul.f32 %v753_v24, %v749_v34 }
 0x96a   :  { %757 = vrot.lane.b32.xlu2 %v755_v45, %s1834_s20 }
 0x98e   :  { %v799_v40 = vpop.permute.xlu1 %798 }
 0x98f   :  { %v801_v3 = vmul.f32 %v799_v40, %v795_v44 }
 0x991   :  { %803 = vrot.lane.b32.xlu0 %v801_v3, %s1834_s20 }
 0x9c4   :  { %v758_v46 = vpop.permute.xlu2 %757 }
 0x9c5   :  { %v760_v47 = vadd.f32 %v758_v46, %v706_v1  ;;  %v116_v46 = vpop.f32.mrf.mxu3 }
 0x9c7   :  { %1749 = vtanh.f32 %v760_v47 }
 0x9cd   :  { %v1750_v48 = vpop.eup %1749 }
 0x9ce   :  { %764 = vrot.lane.b32.xlu1 %v1750_v48, %s1835_s21 }
 0xa03   :  { %v804_v49 = vpop.permute.xlu0 %803 }
 0xa04   :  { %v806_v51 = vadd.f32 %v804_v49, %v113_v13 }
 0xa06   :  { %1751 = vtanh.f32 %v806_v51 }
 0xa0c   :  { %v1752_v52 = vpop.eup %1751 }
 0xa0d   :  { %810 = vrot.lane.b32.xlu2 %v1752_v52, %s1835_s21 }
 0xa40   :  { %v765_v56 = vpop.permute.xlu1 %764 }
 0xa41   :  { %v767_v59 = vmul.f32 %v765_v56, %v762_v55 }
 0xa43   :  { %v2134_v63 = vadd.f32 %v768_v17, %v767_v59 }
 0xa45   :  { %853 = vperm.xlu2 %1663, %v2134_v63   ;;  %847 = vperm.xlu1 %1662, %v2134_v63  }
 0xa46   :  { %842 = vperm.xlu0 %1661, %v2134_v63  }
 0xa4d   :  { %1664 = vset.pattern.permute.xlu1 %v1836_v37  ;;  %1665 = vset.pattern.permute.xlu2 %v1838_v39 }
 0xa4e   :  { %859 = vperm.xlu1 %1664, %v2134_v63   ;;  %1666 = vset.pattern.permute.xlu0 %v1837_v38 }
 0xa56   :  { %1667 = vset.pattern.permute.xlu1 %v1839_v57 }
 0xa67   :  { %v811_v1 = vpop.permute.xlu2 %810 }
 0xa68   :  { %v813_v23 = vmul.f32 %v811_v1, %v808_v20 }
 0xa6a   :  { %v2145_v8 = vadd.f32 %v814_v2, %v813_v23 }
 0xa6c   :  { %829 = vperm.xlu1 %1667, %v2145_v8   ;;  %823 = vperm.xlu0 %1666, %v2145_v8  }
 0xa6d   :  { %818 = vperm.xlu2 %1665, %v2145_v8  }
 0xa74   :  { %1669 = vset.pattern.permute.xlu1 %v1838_v39  ;;  %1671 = vset.pattern.permute.xlu0 %v1839_v57 }
 0xa75   :  { %1668 = vset.pattern.permute.xlu2 %v1836_v37 }
 0xa76   :  { %835 = vperm.xlu2 %1668, %v2145_v8  }
 0xa7e   :  { %1670 = vset.pattern.permute.xlu2 %v1837_v38 }
 0xa9f   :  { %v854_v12 = vpop.permute.xlu2 %853 }
 0xaa0   :  { %v856_v14 = vmul.f32 %v854_v12, %v1911_v43 }
 0xab7   :  { %v848_v25 = vpop.permute.xlu1 %847 }
 0xab8   :  { %v843_v9 = vpop.permute.xlu0 %842  ;;  %v850_v10 = vmul.f32 %v848_v25, %v1909_v42 }
 0xab9   :  { %v845_v11 = vmul.f32 %v843_v9, %v1907_v41 }
 0xabb   :  { %v851_v13 = vadd.f32 %v850_v10, %v845_v11 }
 0xabd   :  { %v857_v16 = vadd.f32 %v856_v14, %v851_v13 }
 0xac0   :  { %v860_v15 = vpop.permute.xlu1 %859 }
 0xac1   :  { %v862_v18 = vmul.f32 %v860_v15, %v1915_v50 }
 0xac3   :  { %v863_v19 = vadd.f32 %v862_v18, %v857_v16 }
 0xac5   :  { %885 = vrot.lane.b32.xlu1 %v863_v19, %s1833_s19 }
 0xac7   :  { %v819_v21 = vpop.permute.xlu2 %818 }
 0xac8   :  { %v903_v24 = vmul.f32 %v819_v21, %v1876_v4  ;;  %v821_v32 = vmul.f32 %v819_v21, %v1935_v61 }
 0xad0   :  { %v836_v45 = vpop.permute.xlu2 %835 }
 0xad1   :  { %v908_v28 = vmul.f32 %v836_v45, %v1882_v7  ;;  %v838_v36 = vmul.f32 %v836_v45, %v1939_v0 }
 0xade   :  { %v830_v22 = vpop.permute.xlu1 %829  ;;  %v824_v53 = vpop.permute.xlu0 %823 }
 0xadf   :  { %v904_v34 = vmul.f32 %v824_v53, %v1878_v5  ;;  %v906_v26 = vmul.f32 %v830_v22, %v1880_v6  ;;  %v826_v31 = vmul.f32 %v824_v53, %v1933_v60  ;;  %v832_v58 = vmul.f32 %v830_v22, %v1937_v62 }
 0xae1   :  { %v905_v27 = vadd.f32 %v904_v34, %v903_v24  ;;  %v827_v33 = vadd.f32 %v826_v31, %v821_v32  ;;  %v51_v31 = vld [vmem:[%s2328_s0 + $0x38] sm:$0xff] }
 0xae2   :  { %1567 = vmatmul.msk.f32.gmra.mxu3 %vm52_vm1, %v51_v31 }
 0xae3   :  { %v907_v29 = vadd.f32 %v906_v26, %v905_v27  ;;  %v833_v35 = vadd.f32 %v832_v58, %v827_v33 }
 0xae5   :  { %v909_v30 = vadd.f32 %v908_v28, %v907_v29  ;;  %v839_v40 = vadd.f32 %v838_v36, %v833_v35 }
 0xae7   :  { %931 = vrot.lane.b32.xlu2 %v909_v30, %s1833_s19  ;;  %v864_v44 = vadd.f32 %v863_v19, %v839_v40  ;;  %v910_v47 = vadd.f32 %v909_v30, %v116_v46 }
 0xae9   :  { %v1579_v3 = vmul.f32 -1.442695, %v864_v44  ;;  %v1580_v49 = vmul.f32 -1.442695, %v910_v47 }
 0xaeb   :  { %1753 = vpow2.f32 %v1579_v3 }
 0xaec   :  { %1755 = vpow2.f32 %v1580_v49 }
 0xaf1   :  { %v1754_v48 = vpop.eup %1753 }
 0xaf2   :  { %v868_v51 = vadd.f32 1.0, %v1754_v48  ;;  %v1756_v52 = vpop.eup %1755 }
 0xaf3   :  { %v914_v55 = vadd.f32 1.0, %v1756_v52 }
 0xaf4   :  { %1757 = vrcp.f32 %v868_v51  ;;  %v880_v23 = vand.u32 2147483648, %v868_v51  ;;  %vm874_vm5 = vweird.f32 %v868_v51  ;;  %v878_v25 = vand.u32 2147483647, %v868_v51 }
 0xaf5   :  { %1759 = vrcp.f32 %v914_v55  ;;  %v926_v18 = vand.u32 2147483648, %v914_v55  ;;  %vm920_vm9 = vweird.f32 %v914_v55  ;;  %v924_v19 = vand.u32 2147483647, %v914_v55 }
 0xaf6   :  { %v881_v11 = vor.u32 1.1754944e-38, %v880_v23  ;;  %vm879_vm7 = vcmp.eq.f32.partialorder %v878_v25, 8.507059e+37 }
 0xaf7   :  { %v927_v22 = vor.u32 1.1754944e-38, %v926_v18  ;;  %vm925_vm11 = vcmp.eq.f32.partialorder %v924_v19, 8.507059e+37 }
 0xafa   :  { %v1758_v54 = vpop.eup %1757 }
 0xafb   :  { %v870_v56 = vmul.f32 %v1758_v54, %v868_v51  ;;  %v1760_v59 = vpop.eup %1759  ;;  %vm875_vm4 = vweird.f32 %v1758_v54 }
 0xafc   :  { %v916_v1 = vmul.f32 %v1760_v59, %v914_v55  ;;  %vm876_vm6 = vmor %vm874_vm5, %vm875_vm4  ;;  %vm921_vm8 = vweird.f32 %v1760_v59 }
 0xafd   :  { %v871_v17 = vsub.f32 1.0, %v870_v56  ;;  %vm922_vm10 = vmor %vm920_vm9, %vm921_vm8 }
 0xafe   :  { %v917_v9 = vsub.f32 1.0, %v916_v1 }
 0xaff   :  { %v872_v20 = vmul.f32 %v1758_v54, %v871_v17 }
 0xb00   :  { %v918_v12 = vmul.f32 %v1760_v59, %v917_v9 }
 0xb01   :  { %v873_v2 = vadd.f32 %v1758_v54, %v872_v20 }
 0xb02   :  { %v919_v16 = vadd.f32 %v1760_v59, %v918_v12 }
 0xb03   :  { %v877_v10 = vsel %vm876_vm6, %v1758_v54, %v873_v2 }
 0xb04   :  { %v882_v14 = vsel %vm879_vm7, %v881_v11, %v877_v10  ;;  %v923_v21 = vsel %vm922_vm10, %v1760_v59, %v919_v16  ;;  %vm1175_vm10 = vcmask 1043456  }
 0xb05   :  { %v928_v24 = vsel %vm925_vm11, %v927_v22, %v923_v21  ;;  %v895_v32 = vsub.f32 1.0, %v882_v14  ;;  %v901_v58 = vmul.f32 %v882_v14, %v2134_v63  ;;  %vm1172_vm11 = vcmask 31744  }
 0xb06   :  { %v941_v63 = vsub.f32 1.0, %v928_v24  ;;  %v947_v44 = vmul.f32 %v928_v24, %v2145_v8 }
 0xb37   :  { %v886_v13 = vpop.permute.xlu1 %885 }
 0xb38   :  { %v888_v15 = vmul.f32 %v886_v13, %v882_v14 }
 0xb3a   :  { %890 = vrot.lane.b32.xlu0 %v888_v15, %s1834_s20 }
 0xb41   :  { %v932_v53 = vpop.permute.xlu2 %931 }
 0xb42   :  { %v934_v34 = vmul.f32 %v932_v53, %v928_v24 }
 0xb44   :  { %936 = vrot.lane.b32.xlu1 %v934_v34, %s1834_s20 }
 0xbac   :  { %v891_v45 = vpop.permute.xlu0 %890 }
 0xbad   :  { %v893_v26 = vadd.f32 %v891_v45, %v839_v40 }
 0xbaf   :  { %1761 = vtanh.f32 %v893_v26 }
 0xbb5   :  { %v1762_v27 = vpop.eup %1761 }
 0xbb6   :  { %v937_v28 = vpop.permute.xlu1 %936  ;;  %897 = vrot.lane.b32.xlu2 %v1762_v27, %s1835_s21 }
 0xbb7   :  { %v939_v29 = vadd.f32 %v937_v28, %v116_v46 }
 0xbb9   :  { %1763 = vtanh.f32 %v939_v29 }
 0xbbf   :  { %v1764_v30 = vpop.eup %1763 }
 0xbc0   :  { %943 = vrot.lane.b32.xlu0 %v1764_v30, %s1835_s21 }
 0xc10   :  { %v898_v33 = vpop.permute.xlu2 %897 }
 0xc11   :  { %v900_v35 = vmul.f32 %v898_v33, %v895_v32 }
 0xc13   :  { %v2178_v36 = vadd.f32 %v901_v58, %v900_v35 }
 0xc15   :  { %986 = vperm.xlu0 %1671, %v2178_v36   ;;  %980 = vperm.xlu2 %1670, %v2178_v36  }
 0xc16   :  { %975 = vperm.xlu1 %1669, %v2178_v36  }
 0xc1d   :  { %1676 = vset.pattern.permute.xlu0 %v1836_v37  ;;  %1673 = vset.pattern.permute.xlu2 %v1838_v39 }
 0xc1e   :  { %1672 = vset.pattern.permute.xlu1 %v1836_v37 }
 0xc1f   :  { %992 = vperm.xlu1 %1672, %v2178_v36  }
 0xc27   :  { %1674 = vset.pattern.permute.xlu1 %v1837_v38 }
 0xc32   :  { %v944_v40 = vpop.permute.xlu0 %943 }
 0xc33   :  { %v946_v3 = vmul.f32 %v944_v40, %v941_v63 }
 0xc35   :  { %v2189_v46 = vadd.f32 %v947_v44, %v946_v3 }
 0xc37   :  { %968 = vperm.xlu0 %1676, %v2189_v46   ;;  %956 = vperm.xlu1 %1674, %v2189_v46  }
 0xc38   :  { %951 = vperm.xlu2 %1673, %v2189_v46  }
 0xc3f   :  { %1678 = vset.pattern.permute.xlu0 %v1837_v38  ;;  %1679 = vset.pattern.permute.xlu1 %v1839_v57 }
 0xc40   :  { %1675 = vset.pattern.permute.xlu2 %v1839_v57 }
 0xc41   :  { %962 = vperm.xlu2 %1675, %v2189_v46  }
 0xc49   :  { %1677 = vset.pattern.permute.xlu2 %v1838_v39 }
 0xc6f   :  { %v981_v47 = vpop.permute.xlu2 %980 }
 0xc70   :  { %v983_v49 = vmul.f32 %v981_v47, %v1909_v42 }
 0xc87   :  { %v987_v51 = vpop.permute.xlu0 %986 }
 0xc88   :  { %v976_v8 = vpop.permute.xlu1 %975  ;;  %v989_v54 = vmul.f32 %v987_v51, %v1911_v43 }
 0xc89   :  { %v978_v48 = vmul.f32 %v976_v8, %v1907_v41 }
 0xc8b   :  { %v984_v52 = vadd.f32 %v983_v49, %v978_v48 }
 0xc8d   :  { %v990_v56 = vadd.f32 %v989_v54, %v984_v52 }
 0xc91   :  { %v993_v55 = vpop.permute.xlu1 %992 }
 0xc92   :  { %v995_v17 = vmul.f32 %v993_v55, %v1915_v50  ;;  %v952_v20 = vpop.permute.xlu2 %951 }
 0xc93   :  { %v1036_v23 = vmul.f32 %v952_v20, %v1876_v4  ;;  %v954_v16 = vmul.f32 %v952_v20, %v1935_v61 }
 0xc94   :  { %v996_v59 = vadd.f32 %v995_v17, %v990_v56 }
 0xc96   :  { %1018 = vrot.lane.b32.xlu1 %v996_v59, %s1833_s19 }
 0xc9b   :  { %v963_v1 = vpop.permute.xlu2 %962 }
 0xc9c   :  { %v1039_v10 = vmul.f32 %v963_v1, %v1880_v6  ;;  %v965_v19 = vmul.f32 %v963_v1, %v1937_v62  ;;  %v119_v6 = vpop.f32.mrf.mxu3 }
 0xca9   :  { %v957_v2 = vpop.permute.xlu1 %956  ;;  %v969_v9 = vpop.permute.xlu0 %968 }
 0xcaa   :  { %v1037_v25 = vmul.f32 %v957_v2, %v1878_v5  ;;  %v1041_v12 = vmul.f32 %v969_v9, %v1882_v7  ;;  %v959_v15 = vmul.f32 %v957_v2, %v1933_v60  ;;  %v971_v5 = vmul.f32 %v969_v9, %v1939_v0 }
 0xcac   :  { %v1038_v11 = vadd.f32 %v1037_v25, %v1036_v23  ;;  %v960_v18 = vadd.f32 %v959_v15, %v954_v16 }
 0xcae   :  { %v1040_v13 = vadd.f32 %v1039_v10, %v1038_v11  ;;  %v966_v4 = vadd.f32 %v965_v19, %v960_v18 }
 0xcb0   :  { %v1042_v14 = vadd.f32 %v1041_v12, %v1040_v13  ;;  %v972_v21 = vadd.f32 %v971_v5, %v966_v4 }
 0xcb2   :  { %1064 = vrot.lane.b32.xlu2 %v1042_v14, %s1833_s19  ;;  %v997_v22 = vadd.f32 %v996_v59, %v972_v21  ;;  %v1043_v24 = vadd.f32 %v1042_v14, %v119_v6 }
 0xcb4   :  { %v1581_v53 = vmul.f32 -1.442695, %v997_v22  ;;  %v1582_v7 = vmul.f32 -1.442695, %v1043_v24 }
 0xcb6   :  { %1765 = vpow2.f32 %v1581_v53 }
 0xcb7   :  { %1767 = vpow2.f32 %v1582_v7 }
 0xcbc   :  { %v1766_v34 = vpop.eup %1765 }
 0xcbd   :  { %v1001_v45 = vadd.f32 1.0, %v1766_v34  ;;  %v1768_v26 = vpop.eup %1767 }
 0xcbe   :  { %v1047_v27 = vadd.f32 1.0, %v1768_v26 }
 0xcbf   :  { %1769 = vrcp.f32 %v1001_v45  ;;  %v1013_v40 = vand.u32 2147483648, %v1001_v45  ;;  %vm1007_vm13 = vweird.f32 %v1001_v45  ;;  %v1011_v44 = vand.u32 2147483647, %v1001_v45 }
 0xcc0   :  { %1771 = vrcp.f32 %v1047_v27  ;;  %v1059_v48 = vand.u32 2147483648, %v1047_v27  ;;  %vm1053_vm3 = vweird.f32 %v1047_v27  ;;  %v1057_v49 = vand.u32 2147483647, %v1047_v27 }
 0xcc1   :  { %v1014_v47 = vor.u32 1.1754944e-38, %v1013_v40  ;;  %vm1012_vm2 = vcmp.eq.f32.partialorder %v1011_v44, 8.507059e+37 }
 0xcc2   :  { %v1060_v56 = vor.u32 1.1754944e-38, %v1059_v48  ;;  %vm1058_vm5 = vcmp.eq.f32.partialorder %v1057_v49, 8.507059e+37 }
 0xcc5   :  { %v1770_v28 = vpop.eup %1769 }
 0xcc6   :  { %v1003_v29 = vmul.f32 %v1770_v28, %v1001_v45  ;;  %v1772_v30 = vpop.eup %1771  ;;  %vm1008_vm12 = vweird.f32 %v1770_v28 }
 0xcc7   :  { %v1049_v32 = vmul.f32 %v1772_v30, %v1047_v27  ;;  %vm1009_vm14 = vmor %vm1007_vm13, %vm1008_vm12  ;;  %vm1054_vm15 = vweird.f32 %v1772_v30 }
 0xcc8   :  { %v1004_v31 = vsub.f32 1.0, %v1003_v29  ;;  %vm1055_vm4 = vmor %vm1053_vm3, %vm1054_vm15 }
 0xcc9   :  { %v1050_v58 = vsub.f32 1.0, %v1049_v32 }
 0xcca   :  { %v1005_v33 = vmul.f32 %v1770_v28, %v1004_v31 }
 0xccb   :  { %v1051_v63 = vmul.f32 %v1772_v30, %v1050_v58 }
 0xccc   :  { %v1006_v35 = vadd.f32 %v1770_v28, %v1005_v33 }
 0xccd   :  { %v1052_v8 = vadd.f32 %v1772_v30, %v1051_v63 }
 0xcce   :  { %v1010_v3 = vsel %vm1009_vm14, %v1770_v28, %v1006_v35 }
 0xccf   :  { %v1015_v52 = vsel %vm1012_vm2, %v1014_v47, %v1010_v3  ;;  %v1056_v55 = vsel %vm1055_vm4, %v1772_v30, %v1052_v8 }
 0xcd0   :  { %v1061_v59 = vsel %vm1058_vm5, %v1060_v56, %v1056_v55  ;;  %v1028_v11 = vsub.f32 1.0, %v1015_v52  ;;  %v1034_v13 = vmul.f32 %v1015_v52, %v2178_v36  ;;  %v15_v55 = vld [vmem:[%s2329_s1 + $0x30] sm:$0xf]  ;;  %v16_v56 = vld [vmem:[%s2329_s1 + $0x38] sm:$0xff] }
 0xcd1   :  { %v1074_v18 = vsub.f32 1.0, %v1061_v59  ;;  %v1080_v4 = vmul.f32 %v1061_v59, %v2189_v46  ;;  %1584 = vmatpush.msk.msrb.mxu1 %vm1175_vm10, %v15_v55 }
 0xd08   :  { %v1019_v51 = vpop.permute.xlu1 %1018 }
 0xd09   :  { %v1021_v54 = vmul.f32 %v1019_v51, %v1015_v52  ;;  %v18_v52 = vld [vmem:[%s2329_s1 + $0x48] sm:$0x3] }
 0xd0a   :  { %1586 = vmatpush.msk.msrb.mxu2 %vm77_vm0, %v18_v52 }
 0xd0b   :  { %1023 = vrot.lane.b32.xlu1 %v1021_v54, %s1834_s20  ;;  %v17_v54 = vld [vmem:[%s2329_s1 + $0x40] sm:$0xff] }
 0xd0c   :  { %v1065_v17 = vpop.permute.xlu2 %1064  ;;  %1219 = vmatpush.msrb.mxu2 %v17_v54 }
 0xd0d   :  { %v1067_v20 = vmul.f32 %v1065_v17, %v1061_v59  ;;  %v1840_v17 = vmov 0.0  }
 0xd0e   :  { %1220 = vmatpush.msrb.mxu2 %v16_v56 }
 0xd0f   :  { %1069 = vrot.lane.b32.xlu2 %v1067_v20, %s1834_s20  ;;  %1221 = vmatmul.f32.vlgmr.msrb.gmra.mxu2 %v1840_v17 }
 0xd10   :  { %1592 = vmatpush.msk.msra.mxu2 %vm77_vm0, %v18_v52 }
 0xd12   :  { %1368 = vmatpush.msra.mxu2 %v17_v54 }
 0xd14   :  { %1369 = vmatpush.msra.mxu2 %v16_v56 }
 0xd69   :  { %v1070_v1 = vpop.permute.xlu2 %1069 }
 0xd6a   :  { %v1072_v2 = vadd.f32 %v1070_v1, %v119_v6 }
 0xd6c   :  { %1773 = vtanh.f32 %v1072_v2 }
 0xd72   :  { %v1774_v23 = vpop.eup %1773 }
 0xd73   :  { %1076 = vrot.lane.b32.xlu1 %v1774_v23, %s1835_s21 }
 0xd7d   :  { %v1024_v25 = vpop.permute.xlu1 %1023 }
 0xd7e   :  { %v1026_v9 = vadd.f32 %v1024_v25, %v972_v21 }
 0xd80   :  { %1775 = vtanh.f32 %v1026_v9 }
 0xd86   :  { %v1776_v10 = vpop.eup %1775 }
 0xd87   :  { %1030 = vrot.lane.b32.xlu0 %v1776_v10, %s1835_s21 }
 0xd92   :  { %v1222_v25 = vpop.f32.mrf.mxu2 }
 0xde5   :  { %v1077_v16 = vpop.permute.xlu1 %1076 }
 0xde6   :  { %v1079_v19 = vmul.f32 %v1077_v16, %v1074_v18 }
 0xde8   :  { %v1081_v5 = vadd.f32 %v1080_v4, %v1079_v19 }
 0xdf9   :  { %v1031_v12 = vpop.permute.xlu0 %1030 }
 0xdfa   :  { %v1033_v14 = vmul.f32 %v1031_v12, %v1028_v11 }
 0xdfc   :  { %v2218_v15 = vadd.f32 %v1034_v13, %v1033_v14 }
 0xdfe   :  { %1119 = vperm.xlu1 %1679, %v2218_v15   ;;  %1113 = vperm.xlu0 %1678, %v2218_v15  }
 0xdff   :  { %1108 = vperm.xlu2 %1677, %v2218_v15  }
 0xe06   :  { %1681 = vset.pattern.permute.xlu1 %v1838_v39  ;;  %1683 = vset.pattern.permute.xlu0 %v1839_v57 }
 0xe07   :  { %1680 = vset.pattern.permute.xlu2 %v1836_v37  ;;  %1095 = vperm.xlu0 %1683, %v1081_v5  }
 0xe08   :  { %1125 = vperm.xlu2 %1680, %v2218_v15   ;;  %1084 = vperm.xlu1 %1681, %v1081_v5  }
 0xe0f   :  { %1685 = vset.pattern.permute.xlu0 %v1836_v37 }
 0xe10   :  { %1682 = vset.pattern.permute.xlu2 %v1837_v38  ;;  %1684 = vset.pattern.permute.xlu1 %v1836_v37 }
 0xe11   :  { %1089 = vperm.xlu2 %1682, %v1081_v5   ;;  %1101 = vperm.xlu1 %1684, %v1081_v5  }
 0xe59   :  { %v1109_v36 = vpop.permute.xlu2 %1108 }
 0xe5a   :  { %v1111_v39 = vmul.f32 %v1109_v36, %v1907_v41 }
 0xe62   :  { %v1126_v22 = vpop.permute.xlu2 %1125 }
 0xe63   :  { %v1128_v24 = vmul.f32 %v1126_v22, %v1915_v50 }
 0xe6b   :  { %v1090_v38 = vpop.permute.xlu2 %1089 }
 0xe6c   :  { %v1092_v26 = vmul.f32 %v1090_v38, %v1933_v60  ;;  %v20_v38 = vld [vmem:[%s2329_s1 + $0x58] sm:$0xff] }
 0xe70   :  { %v1114_v46 = vpop.permute.xlu0 %1113  ;;  %v1120_v21 = vpop.permute.xlu1 %1119 }
 0xe71   :  { %v1116_v57 = vmul.f32 %v1114_v46, %v1909_v42  ;;  %v1122_v53 = vmul.f32 %v1120_v21, %v1911_v43 }
 0xe73   :  { %v1117_v6 = vadd.f32 %v1116_v57, %v1111_v39 }
 0xe75   :  { %v1123_v7 = vadd.f32 %v1122_v53, %v1117_v6 }
 0xe77   :  { %v1129_v34 = vadd.f32 %v1128_v24, %v1123_v7  ;;  %v24_v7 = vld [vmem:[%s2329_s1 + $0x78] sm:$0x3] }
 0xe78   :  { %1590 = vmatpush.msk.msra.mxu1 %vm77_vm0, %v24_v7 }
 0xe79   :  { %1151 = vrot.lane.b32.xlu2 %v1129_v34, %s1833_s19  ;;  %v1096_v27 = vpop.permute.xlu0 %1095  ;;  %s1841_s19 = smov 120  }
 0xe7a   :  { %v1085_v37 = vpop.permute.xlu1 %1084  ;;  %v1098_v42 = vmul.f32 %v1096_v27, %v1937_v62 }
 0xe7b   :  { %v1087_v45 = vmul.f32 %v1085_v37, %v1935_v61  ;;  %v21_v37 = vld [vmem:[%s2329_s1 + $0x60] sm:$0x3] }
 0xe7c   :  { %1588 = vmatpush.msk.msrb.mxu3 %vm77_vm0, %v21_v37 }
 0xe7d   :  { %v1093_v28 = vadd.f32 %v1092_v26, %v1087_v45  ;;  %v22_v45 = vld [vmem:[%s2329_s1 + $0x68] sm:$0xff]  ;;  %v19_v26 = vld [vmem:[%s2329_s1 + $0x50] sm:$0xff] }
 0xe7e   :  { %1286 = vmatpush.msrb.mxu3 %v20_v38 }
 0xe7f   :  { %v1099_v43 = vadd.f32 %v1098_v42, %v1093_v28 }
 0xe80   :  { %1287 = vmatpush.msrb.mxu3 %v19_v26 }
 0xe82   :  { %1595 = vmatpush.msk.msra.mxu3 %vm77_vm0, %v21_v37 }
 0xe83   :  { %v1102_v41 = vpop.permute.xlu1 %1101 }
 0xe84   :  { %v1104_v29 = vmul.f32 %v1102_v41, %v1939_v0  ;;  %1437 = vmatpush.msra.mxu3 %v20_v38 }
 0xe86   :  { %v1105_v30 = vadd.f32 %v1104_v29, %v1099_v43  ;;  %1438 = vmatpush.msra.mxu3 %v19_v26 }
 0xe88   :  { %v1130_v50 = vadd.f32 %v1129_v34, %v1105_v30  ;;  %v23_v34 = vld [vmem:[%s2329_s1 + $0x70] sm:$0xff] }
 0xe89   :  { %1309 = vmatpush.msra.mxu1 %v23_v34 }
 0xe8a   :  { %v1583_v31 = vmul.f32 -1.442695, %v1130_v50 }
 0xe8b   :  { %1310 = vmatpush.msra.mxu1 %v22_v45 }
 0xe8c   :  { %1777 = vpow2.f32 %v1583_v31 }
 0xe92   :  { %v1778_v32 = vpop.eup %1777 }
 0xe93   :  { %v1134_v33 = vadd.f32 1.0, %v1778_v32 }
 0xe95   :  { %1779 = vrcp.f32 %v1134_v33  ;;  %v1146_v40 = vand.u32 2147483648, %v1134_v33  ;;  %vm1140_vm7 = vweird.f32 %v1134_v33  ;;  %v1144_v44 = vand.u32 2147483647, %v1134_v33 }
 0xe97   :  { %v1147_v0 = vor.u32 1.1754944e-38, %v1146_v40  ;;  %vm1145_vm9 = vcmp.eq.f32.partialorder %v1144_v44, 8.507059e+37 }
 0xe9b   :  { %v1780_v58 = vpop.eup %1779 }
 0xe9c   :  { %v1136_v35 = vmul.f32 %v1780_v58, %v1134_v33  ;;  %vm1141_vm6 = vweird.f32 %v1780_v58 }
 0xe9d   :  { %vm1142_vm8 = vmor %vm1140_vm7, %vm1141_vm6 }
 0xe9e   :  { %v1137_v61 = vsub.f32 1.0, %v1136_v35 }
 0xea0   :  { %v1138_v63 = vmul.f32 %v1780_v58, %v1137_v61 }
 0xea2   :  { %v1139_v60 = vadd.f32 %v1780_v58, %v1138_v63 }
 0xea4   :  { %v1143_v62 = vsel %vm1142_vm8, %v1780_v58, %v1139_v60 }
 0xea5   :  { %v1148_v8 = vsel %vm1145_vm9, %v1147_v0, %v1143_v62 }
 0xea6   :  { %v1161_v59 = vsub.f32 1.0, %v1148_v8  ;;  %v1167_v1 = vmul.f32 %v1148_v8, %v2218_v15 }
 0xed3   :  { %v1152_v3 = vpop.permute.xlu2 %1151 }
 0xed4   :  { %v1154_v47 = vmul.f32 %v1152_v3, %v1148_v8 }
 0xed6   :  { %1156 = vrot.lane.b32.xlu1 %v1154_v47, %s1834_s20  ;;  %s1842_s20 = smov 18  }
 0xede   :  { %1246 = vrot.lane.b32.xlu1 %v1222_v25, %s1842_s20 }
 0xf48   :  { %v1157_v48 = vpop.permute.xlu1 %1156 }
 0xf49   :  { %v1159_v49 = vadd.f32 %v1157_v48, %v1105_v30 }
 0xf4b   :  { %1781 = vtanh.f32 %v1159_v49 }
 0xf50   :  { %v1247_v21 = vpop.permute.xlu1 %1246 }
 0xf51   :  { %v1782_v51 = vpop.eup %1781 }
 0xf52   :  { %1163 = vrot.lane.b32.xlu2 %v1782_v51, %s1835_s21  ;;  %s1843_s21 = smov 110  }
 0xfac   :  { %v1164_v20 = vpop.permute.xlu2 %1163 }
 0xfad   :  { %v1166_v2 = vmul.f32 %v1164_v20, %v1161_v59 }
 0xfaf   :  { %v1168_v23 = vadd.f32 %v1167_v1, %v1166_v2 }
 0xfb1   :  { %1170 = vrot.lane.b32.xlu0 %v1168_v23, %s1841_s19  ;;  %s1550_s19 = sshll.u32 %s2330_s2, 4  ;;  %s1551_s19 = int_to_ptr.hbm [resolvable:$true] %s1550_s19 }
0x1023   :  { %v1171_v9 = vpop.permute.xlu0 %1170 }
0x1024   :  { %1585 = vmatmul.msk.f32.vlgmr.msrb.gmra.mxu1 %vm1172_vm11, %v1171_v9 }
0x1025   :  { %1597 = vmatpush.msk.msrb.mxu1 %vm77_vm0, %v24_v7 }
0x1027   :  { %1462 = vmatpush.msrb.mxu1 %v23_v34 }
0x1029   :  { %1463 = vmatpush.msrb.mxu1 %v22_v45 }
0x102c   :  { %1311 = vmatmul.f32.vlgmr.msra.gmra.mxu1 %v1840_v17 }
0x10a1   :  { %v2258_v10 = vpop.f32.mrf.mxu1 }
0x10a2   :  { %v1225_v11 = vadd.f32 %v1222_v25, %v2258_v10 }
0x10a4   :  { %v1587_v12 = vmul.f32 -1.442695, %v1225_v11 }
0x10a6   :  { %1783 = vpow2.f32 %v1587_v12 }
0x10a9   :  { %v1312_v43 = vpop.f32.mrf.mxu1 }
0x10ac   :  { %v1784_v13 = vpop.eup %1783 }
0x10ad   :  { %v1229_v14 = vadd.f32 1.0, %v1784_v13 }
0x10af   :  { %1785 = vrcp.f32 %v1229_v14  ;;  %v1241_v19 = vand.u32 2147483648, %v1229_v14  ;;  %v1239_v5 = vand.u32 2147483647, %v1229_v14  ;;  %vm1235_vm13 = vweird.f32 %v1229_v14 }
0x10b1   :  { %v1242_v46 = vor.u32 1.1754944e-38, %v1241_v19  ;;  %vm1240_vm15 = vcmp.eq.f32.partialorder %v1239_v5, 8.507059e+37 }
0x10b5   :  { %v1786_v15 = vpop.eup %1785 }
0x10b6   :  { %v1231_v16 = vmul.f32 %v1786_v15, %v1229_v14  ;;  %vm1236_vm12 = vweird.f32 %v1786_v15 }
0x10b7   :  { %vm1237_vm14 = vmor %vm1235_vm13, %vm1236_vm12 }
0x10b8   :  { %v1232_v18 = vsub.f32 1.0, %v1231_v16 }
0x10ba   :  { %v1233_v4 = vmul.f32 %v1786_v15, %v1232_v18 }
0x10bc   :  { %v1234_v36 = vadd.f32 %v1786_v15, %v1233_v4 }
0x10be   :  { %v1238_v39 = vsel %vm1237_vm14, %v1786_v15, %v1234_v36  ;;  %vm1510_vm14 = vcmask 1040384  }
0x10bf   :  { %v1243_v57 = vsel %vm1240_vm15, %v1242_v46, %v1238_v39 }
0x10c0   :  { %v1249_v22 = vmul.f32 %v1247_v21, %v1243_v57  ;;  %v1256_v27 = vsub.f32 1.0, %v1243_v57  ;;  %v1262_v28 = vmul.f32 0.0, %v1243_v57 }
0x10c2   :  { %1251 = vrot.lane.b32.xlu2 %v1249_v22, %s1843_s21 }
0x10ca   :  { %1336 = vrot.lane.b32.xlu2 %v1312_v43, %s1842_s20 }
0x111c   :  { %v1252_v6 = vpop.permute.xlu2 %1251 }
0x111d   :  { %v1254_v53 = vadd.f32 %v1252_v6, %v2258_v10 }
0x111f   :  { %1787 = vtanh.f32 %v1254_v53 }
0x1124   :  { %v1337_v47 = vpop.permute.xlu2 %1336 }
0x1125   :  { %v1788_v24 = vpop.eup %1787 }
0x1126   :  { %1258 = vrot.lane.b32.xlu0 %v1788_v24, %s1844_s22 }
0x1198   :  { %v1259_v41 = vpop.permute.xlu0 %1258 }
0x1199   :  { %v1261_v42 = vmul.f32 %v1259_v41, %v1256_v27 }
0x119b   :  { %v2286_v29 = vadd.f32 %v1262_v28, %v1261_v42 }
0x119d   :  { %1265 = vrot.lane.b32.xlu1 %v2286_v29, %s1845_s7  ;;  %v1413_v22 = vrot.slane %v2286_v29, 7 }
0x120f   :  { %v1266_v30 = vpop.permute.xlu1 %1265 }
0x1210   :  { %1589 = vmatmul.msk.f32.vlgmr.msrb.gmra.mxu3 %vm52_vm1, %v1266_v30  ;;  %1593 = vmatmul.msk.f32.vlgmr.msra.gmra.mxu2 %vm52_vm1, %v1266_v30 }
0x1293   :  { %v1289_v50 = vpop.f32.mrf.mxu3  ;;  %v1371_v31 = vpop.f32.mrf.mxu2 }
0x1294   :  { %v1315_v32 = vadd.f32 %v1312_v43, %v1289_v50  ;;  %v1375_v33 = vrot.slane %v1371_v31, 7 }
0x1296   :  { %v1591_v58 = vmul.f32 -1.442695, %v1315_v32  ;;  %1397 = vrot.lane.b32.xlu0 %v1375_v33, %s1842_s20  ;;  %v1377_v52 = vadd.f32 %v1375_v33, %v2258_v10 }
0x1298   :  { %1789 = vpow2.f32 %v1591_v58  ;;  %v1594_v54 = vmul.f32 -1.442695, %v1377_v52 }
0x129e   :  { %v1790_v35 = vpop.eup %1789 }
0x129f   :  { %v1319_v61 = vadd.f32 1.0, %v1790_v35 }
0x12a1   :  { %1791 = vrcp.f32 %v1319_v61  ;;  %v1331_v44 = vand.u32 2147483648, %v1319_v61  ;;  %v1329_v0 = vand.u32 2147483647, %v1319_v61  ;;  %vm1325_vm3 = vweird.f32 %v1319_v61 }
0x12a2   :  { %1793 = vpow2.f32 %v1594_v54 }
0x12a3   :  { %v1332_v8 = vor.u32 1.1754944e-38, %v1331_v44  ;;  %vm1330_vm5 = vcmp.eq.f32.partialorder %v1329_v0, 8.507059e+37  ;;  %v27_v0 = vld [vmem:[%s2329_s1 + $0x90] sm:$0x3] }
0x12a4   :  { %1600 = vmatpush.msk.msrb.mxu2 %vm77_vm0, %v27_v0 }
0x12a7   :  { %v1792_v63 = vpop.eup %1791 }
0x12a8   :  { %v1321_v60 = vmul.f32 %v1792_v63, %v1319_v61  ;;  %vm1326_vm2 = vweird.f32 %v1792_v63  ;;  %v1794_v55 = vpop.eup %1793 }
0x12a9   :  { %vm1327_vm4 = vmor %vm1325_vm3, %vm1326_vm2  ;;  %v1381_v56 = vadd.f32 1.0, %v1794_v55 }
0x12aa   :  { %v1322_v40 = vsub.f32 1.0, %v1321_v60 }
0x12ab   :  { %1795 = vrcp.f32 %v1381_v56  ;;  %v1393_v23 = vand.u32 2147483648, %v1381_v56  ;;  %vm1387_vm7 = vweird.f32 %v1381_v56  ;;  %v1391_v25 = vand.u32 2147483647, %v1381_v56 }
0x12ac   :  { %v1323_v62 = vmul.f32 %v1792_v63, %v1322_v40 }
0x12ad   :  { %v1394_v11 = vor.u32 1.1754944e-38, %v1393_v23  ;;  %vm1392_vm9 = vcmp.eq.f32.partialorder %v1391_v25, 8.507059e+37 }
0x12ae   :  { %v1324_v3 = vadd.f32 %v1792_v63, %v1323_v62 }
0x12b0   :  { %v1328_v48 = vsel %vm1327_vm4, %v1792_v63, %v1324_v3  ;;  %v26_v3 = vld [vmem:[%s2329_s1 + $0x88] sm:$0xff] }
0x12b1   :  { %v1333_v49 = vsel %vm1330_vm5, %v1332_v8, %v1328_v48  ;;  %v1796_v17 = vpop.eup %1795  ;;  %v25_v8 = vld [vmem:[%s2329_s1 + $0x80] sm:$0xff]  ;;  %1536 = vmatpush.msrb.mxu2 %v26_v3 }
0x12b2   :  { %v1339_v51 = vmul.f32 %v1337_v47, %v1333_v49  ;;  %v1383_v59 = vmul.f32 %v1796_v17, %v1381_v56  ;;  %vm1388_vm6 = vweird.f32 %v1796_v17  ;;  %v1346_v36 = vsub.f32 1.0, %v1333_v49 }
0x12b3   :  { %vm1389_vm8 = vmor %vm1387_vm7, %vm1388_vm6  ;;  %v1352_v21 = vmul.f32 0.0, %v1333_v49  ;;  %1537 = vmatpush.msrb.mxu2 %v25_v8 }
0x12b4   :  { %1341 = vrot.lane.b32.xlu1 %v1339_v51, %s1843_s21  ;;  %v1384_v20 = vsub.f32 1.0, %v1383_v59  ;;  %v1686_v59 = vld [vmem:[%s2329_s1 + $0x98] ss:$0 sm:$0xff] }
0x12b6   :  { %v1385_v1 = vmul.f32 %v1796_v17, %v1384_v20 }
0x12b8   :  { %v1386_v2 = vadd.f32 %v1796_v17, %v1385_v1 }
0x12ba   :  { %v1390_v9 = vsel %vm1389_vm8, %v1796_v17, %v1386_v2 }
0x12bb   :  { %v1395_v13 = vsel %vm1392_vm9, %v1394_v11, %v1390_v9 }
0x12bc   :  { %v1407_v6 = vsub.f32 1.0, %v1395_v13  ;;  %v1415_v24 = vmul.f32 %v1413_v22, %v1395_v13 }
0x1308   :  { %v1398_v12 = vpop.permute.xlu0 %1397 }
0x1309   :  { %v1400_v14 = vmul.f32 %v1398_v12, %v1395_v13 }
0x130b   :  { %1402 = vrot.lane.b32.xlu2 %v1400_v14, %s1843_s21 }
0x1326   :  { %v1342_v15 = vpop.permute.xlu1 %1341 }
0x1327   :  { %v1344_v16 = vadd.f32 %v1342_v15, %v1289_v50 }
0x1329   :  { %1797 = vtanh.f32 %v1344_v16 }
0x132f   :  { %v1798_v18 = vpop.eup %1797 }
0x1330   :  { %1348 = vrot.lane.b32.xlu0 %v1798_v18, %s1844_s22 }
0x1365   :  { %v1403_v19 = vpop.permute.xlu2 %1402 }
0x1366   :  { %v1405_v4 = vadd.f32 %v1403_v19, %v2258_v10 }
0x1368   :  { %1799 = vtanh.f32 %v1405_v4 }
0x136e   :  { %v1800_v5 = vpop.eup %1799 }
0x136f   :  { %1409 = vrot.lane.b32.xlu1 %v1800_v5, %s1844_s22 }
0x13a2   :  { %v1349_v46 = vpop.permute.xlu0 %1348 }
0x13a3   :  { %v1351_v39 = vmul.f32 %v1349_v46, %v1346_v36 }
0x13a5   :  { %v1353_v57 = vadd.f32 %v1352_v21, %v1351_v39 }
0x13a7   :  { %1444 = vrot.lane.b32.xlu2 %v1353_v57, %s1845_s7 }
0x13e1   :  { %v1410_v53 = vpop.permute.xlu1 %1409 }
0x13e2   :  { %v1412_v7 = vmul.f32 %v1410_v53, %v1407_v6 }
0x13e4   :  { %v1416_v34 = vadd.f32 %v1415_v24, %v1412_v7 }
0x13e6   :  { %v1418_v37 = vrot.slane %v1416_v34, 1 }
0x13e8   :  { %1419 = vrot.lane.b32.xlu0 %v1418_v37, %s1845_s7 }
0x1401   :  { %v1445_v10 = vpop.permute.xlu2 %1444 }
0x1402   :  { %1598 = vmatmul.msk.f32.vlgmr.msrb.gmra.mxu1 %vm52_vm1, %v1445_v10 }
0x145a   :  { %v1420_v38 = vpop.permute.xlu0 %1419 }
0x145b   :  { %1596 = vmatmul.msk.f32.vlgmr.msra.gmra.mxu3 %vm52_vm1, %v1420_v38 }
0x147f   :  { %v1465_v45 = vpop.f32.mrf.mxu1 }
0x1480   :  { %1489 = vrot.lane.b32.xlu1 %v1465_v45, %s1842_s20 }
0x14de   :  { %v1440_v26 = vpop.f32.mrf.mxu3 }
0x14df   :  { %v1468_v27 = vadd.f32 %v1465_v45, %v1440_v26 }
0x14e1   :  { %v1599_v41 = vmul.f32 -1.442695, %v1468_v27 }
0x14e3   :  { %1801 = vpow2.f32 %v1599_v41 }
0x14e9   :  { %v1802_v28 = vpop.eup %1801 }
0x14ea   :  { %v1472_v42 = vadd.f32 1.0, %v1802_v28 }
0x14ec   :  { %1803 = vrcp.f32 %v1472_v42  ;;  %v1484_v50 = vand.u32 2147483648, %v1472_v42  ;;  %v1482_v32 = vand.u32 2147483647, %v1472_v42  ;;  %vm1478_vm11 = vweird.f32 %v1472_v42 }
0x14ee   :  { %v1485_v58 = vor.u32 1.1754944e-38, %v1484_v50  ;;  %vm1483_vm13 = vcmp.eq.f32.partialorder %v1482_v32, 8.507059e+37 }
0x14f2   :  { %v1804_v29 = vpop.eup %1803  ;;  %v1490_v61 = vpop.permute.xlu1 %1489 }
0x14f3   :  { %v1474_v43 = vmul.f32 %v1804_v29, %v1472_v42  ;;  %vm1479_vm10 = vweird.f32 %v1804_v29 }
0x14f4   :  { %vm1480_vm12 = vmor %vm1478_vm11, %vm1479_vm10 }
0x14f5   :  { %v1475_v30 = vsub.f32 1.0, %v1474_v43 }
0x14f7   :  { %v1476_v31 = vmul.f32 %v1804_v29, %v1475_v30 }
0x14f9   :  { %v1477_v33 = vadd.f32 %v1804_v29, %v1476_v31 }
0x14fb   :  { %v1481_v35 = vsel %vm1480_vm12, %v1804_v29, %v1477_v33 }
0x14fc   :  { %v1486_v63 = vsel %vm1483_vm13, %v1485_v58, %v1481_v35 }
0x14fd   :  { %v1492_v60 = vmul.f32 %v1490_v61, %v1486_v63  ;;  %v1499_v47 = vsub.f32 1.0, %v1486_v63  ;;  %v1505_v49 = vmul.f32 %v1486_v63, %v1353_v57 }
0x14ff   :  { %1494 = vrot.lane.b32.xlu2 %v1492_v60, %s1843_s21 }
0x1559   :  { %v1495_v40 = vpop.permute.xlu2 %1494 }
0x155a   :  { %v1497_v44 = vadd.f32 %v1495_v40, %v1440_v26 }
0x155c   :  { %1805 = vtanh.f32 %v1497_v44 }
0x1562   :  { %v1806_v62 = vpop.eup %1805 }
0x1563   :  { %1501 = vrot.lane.b32.xlu0 %v1806_v62, %s1844_s22 }
0x15d5   :  { %v1502_v48 = vpop.permute.xlu0 %1501 }
0x15d6   :  { %v1504_v51 = vmul.f32 %v1502_v48, %v1499_v47 }
0x15d8   :  { %v1506_v52 = vadd.f32 %v1505_v49, %v1504_v51 }
0x15da   :  { %v1508_v54 = vrot.slane %v1506_v52, 7 }
0x15dc   :  { %v1511_v55 = vsel %vm1510_vm14, %v1353_v57, %v1508_v54 }
0x15dd   :  { %v1512_v56 = vsel %vm77_vm0, %v1511_v55, 0.0 }
0x15de   :  { %1515 = vrot.lane.b32.xlu1 %v1512_v56, %s1845_s7 }
0x1650   :  { %v1516_v17 = vpop.permute.xlu1 %1515 }
0x1651   :  { %1601 = vmatmul.msk.f32.vlgmr.msrb.gmra.mxu2 %vm52_vm1, %v1516_v17 }
0x16d4   :  { %v1539_v20 = vpop.f32.mrf.mxu2 }
0x16d5   :  { %v1540_v1 = vadd.f32 %v1686_v59, %v1539_v20 }
0x16d7   :  { %1542 = vst.msk [vmem:[#allocation2] sm:$0xff] %vm52_vm1, %v1540_v1 }
0x16d8   :  { %1553 = dma.vmem_to_hbm [thread:$0]  %s1549_s16, 128, %s1551_s19, [#allocation3]  }
0x16d9   :  { %1831 = dma.done.wait [#allocation3], 128  }
0x16da   :  { %1832 = vsyncadd [#allocation3], 4294967168 }
0x16db   :  { %1558 = vsyncpa [#allocation3], 1 }

</bundles_post_ra>
